<compile_context>
chip_gen: v5e
topology: v5e:2x2
jax: 0.10.0
libtpu: 0.0.40
codegen_flags: <defaults>
</compile_context>

<pallas_src>
import functools

import jax
import jax.numpy as jnp
from jax.experimental import pallas as pl
from jax.experimental.pallas import tpu as pltpu

BN_EPS = 1e-5
LANE = 128


def _round_up(x, m):
    return (x + m - 1) // m * m


def _vmem_limit_bytes():
    """Adapt the scoped-VMEM cap: leave headroom on 64-MiB parts (v7x)."""
    try:
        cap = int(getattr(pltpu.get_tpu_info(), "vmem_capacity_bytes", 0))
    except Exception:  # interpret mode / older API -- fall back conservatively
        cap = 0
    if cap and cap <= 64 * 1024 * 1024:
        return 36 * 1024 * 1024
    return 48 * 1024 * 1024


def _mosaic(sem):
    return pltpu.CompilerParams(dimension_semantics=sem,
                                vmem_limit_bytes=_vmem_limit_bytes())


def _invariant_spec(shape):
    """BlockSpec for a grid-invariant operand (weights / per-channel vectors).

    They are revisited every grid step and never re-fetched, so a second
    pipeline buffer is pure VMEM waste -> single-buffer them.
    """
    nd = len(shape)

    def index_map(i):
        return (0,) * nd

    try:
        return pl.BlockSpec(shape, index_map, pipeline_mode=pl.Buffered(1))
    except (TypeError, AttributeError):   # older pallas without pipeline_mode
        return pl.BlockSpec(shape, index_map)


def _row_block_spec(shape):
    """Per-grid-step block along the leading (batch) axis."""
    nd = len(shape)

    def index_map(i):
        return (i,) + (0,) * (nd - 1)

    return pl.BlockSpec(shape, index_map)


# ----------------------------- Pallas kernels -------------------------------
def _conv_bn_stats_kernel(taps, cin, cp, ho, wo,
                          x_ref, w_ref, y_ref, s_ref, q_ref):
    """3x3 conv of one image via 9 shifted-window matmuls (no HBM im2col).

    x_ref: (1, s*s, Hph, Wph, Cin) bf16 phase-decomposed padded activation.
    w_ref: (9*Cin, Cp) bf16 weights, tap-major / cin-minor.
    Emits bf16 activation rows plus f32 per-image partial (sum, sumsq).
    """
    acc = jnp.zeros((ho * wo, cp), jnp.float32)
    for t, (p, oy, ox) in enumerate(taps):
        xs = x_ref[0, p, oy:oy + ho, ox:ox + wo, :].reshape(ho * wo, cin)
        acc = acc + jnp.dot(xs, w_ref[t * cin:(t + 1) * cin, :],
                            preferred_element_type=jnp.float32)
    y_ref[0] = acc.astype(y_ref.dtype)
    s_ref[0] = jnp.sum(acc, axis=0, keepdims=True)
    q_ref[0] = jnp.sum(acc * acc, axis=0, keepdims=True)


def _conv_bn_stats_proj_kernel(taps, sc_tap, cin, cp, ho, wo,
                               x_ref, w_ref, wsc_ref,
                               y_ref, ysc_ref, s_ref, q_ref, ssc_ref, qsc_ref):
    """conv1 (3x3) fused with the 1x1 projection shortcut on the same block."""
    acc = jnp.zeros((ho * wo, cp), jnp.float32)
    for t, (p, oy, ox) in enumerate(taps):
        xs = x_ref[0, p, oy:oy + ho, ox:ox + wo, :].reshape(ho * wo, cin)
        acc = acc + jnp.dot(xs, w_ref[t * cin:(t + 1) * cin, :],
                            preferred_element_type=jnp.float32)
    y_ref[0] = acc.astype(y_ref.dtype)
    s_ref[0] = jnp.sum(acc, axis=0, keepdims=True)
    q_ref[0] = jnp.sum(acc * acc, axis=0, keepdims=True)

    sp, soy, sox = sc_tap   # the 1x1 stride-s conv is just one more window
    xsc = x_ref[0, sp, soy:soy + ho, sox:sox + wo, :].reshape(ho * wo, cin)
    ysc = jnp.dot(xsc, wsc_ref[...], preferred_element_type=jnp.float32)
    ysc_ref[0] = ysc.astype(ysc_ref.dtype)
    ssc_ref[0] = jnp.sum(ysc, axis=0, keepdims=True)
    qsc_ref[0] = jnp.sum(ysc * ysc, axis=0, keepdims=True)


def _bn_relu_pad_kernel(ho, wo, cp, y_ref, a_ref, b_ref, o_ref):
    """out = relu(y*scale + shift), written into a zero spatial-pad border
    so the result can feed conv2 directly (fused padding)."""
    o_ref[...] = jnp.zeros_like(o_ref)
    y = y_ref[0].astype(jnp.float32)
    act = jnp.maximum(y * a_ref[...] + b_ref[...], 0.0)
    o_ref[0, 1:1 + ho, 1:1 + wo, :] = act.reshape(ho, wo, cp).astype(o_ref.dtype)


def _bn_add_relu_proj_kernel(y_ref, r_ref, a2_ref, b2_ref, asc_ref, bsc_ref,
                             o_ref):
    """out = relu( bn2(y) + bn_sc(proj_residual) ), both BNs as scale/shift."""
    main = y_ref[0].astype(jnp.float32) * a2_ref[...] + b2_ref[...]
    sc = r_ref[0].astype(jnp.float32) * asc_ref[...] + bsc_ref[...]
    o_ref[0] = jnp.maximum(main + sc, 0.0).astype(o_ref.dtype)


def _bn_add_relu_id_kernel(cin, cp, y_ref, x_ref, a2_ref, b2_ref, o_ref):
    """out = relu( bn2(y) + x )  -- identity residual read in place."""
    main = y_ref[0].astype(jnp.float32) * a2_ref[...] + b2_ref[...]
    res = x_ref[0].astype(jnp.float32)
    if cp > cin:   # lane-pad the residual to the Cp-wide main path
        res = jnp.concatenate(
            [res, jnp.zeros((res.shape[0], cp - cin), jnp.float32)], axis=-1)
    o_ref[0] = jnp.maximum(main + res, 0.0).astype(o_ref.dtype)


# --------------------------- pallas_call wrappers ----------------------------
def conv_bn_stats(phases, w, ho, wo, cp, taps):
    n, s2, hph, wph, cin = phases.shape
    kern = functools.partial(_conv_bn_stats_kernel, taps, cin, cp, ho, wo)
    return pl.pallas_call(
        kern,
        out_shape=(jax.ShapeDtypeStruct((n, ho * wo, cp), jnp.bfloat16),
                   jax.ShapeDtypeStruct((n, 1, cp), jnp.float32),
                   jax.ShapeDtypeStruct((n, 1, cp), jnp.float32)),
        grid=(n,),
        in_specs=[_row_block_spec((1, s2, hph, wph, cin)),
                  _invariant_spec((9 * cin, cp))],
        out_specs=(_row_block_spec((1, ho * wo, cp)),
                   _row_block_spec((1, 1, cp)),
                   _row_block_spec((1, 1, cp))),
        compiler_params=_mosaic(("parallel",)),
    )(phases, w)


def conv_bn_stats_proj(phases, w, wsc, ho, wo, cp, taps, sc_tap):
    n, s2, hph, wph, cin = phases.shape
    kern = functools.partial(_conv_bn_stats_proj_kernel, taps, sc_tap,
                             cin, cp, ho, wo)
    return pl.pallas_call(
        kern,
        out_shape=(jax.ShapeDtypeStruct((n, ho * wo, cp), jnp.bfloat16),
                   jax.ShapeDtypeStruct((n, ho * wo, cp), jnp.bfloat16),
                   jax.ShapeDtypeStruct((n, 1, cp), jnp.float32),
                   jax.ShapeDtypeStruct((n, 1, cp), jnp.float32),
                   jax.ShapeDtypeStruct((n, 1, cp), jnp.float32),
                   jax.ShapeDtypeStruct((n, 1, cp), jnp.float32)),
        grid=(n,),
        in_specs=[_row_block_spec((1, s2, hph, wph, cin)),
                  _invariant_spec((9 * cin, cp)),
                  _invariant_spec((cin, cp))],
        out_specs=(_row_block_spec((1, ho * wo, cp)),
                   _row_block_spec((1, ho * wo, cp)),
                   _row_block_spec((1, 1, cp)),
                   _row_block_spec((1, 1, cp)),
                   _row_block_spec((1, 1, cp)),
                   _row_block_spec((1, 1, cp))),
        compiler_params=_mosaic(("parallel",)),
    )(phases, w, wsc)


def bn_relu_pad(y, a, b, ho, wo, cp):
    n = y.shape[0]
    kern = functools.partial(_bn_relu_pad_kernel, ho, wo, cp)
    return pl.pallas_call(
        kern,
        out_shape=jax.ShapeDtypeStruct((n, ho + 2, wo + 2, cp), jnp.bfloat16),
        grid=(n,),
        in_specs=[_row_block_spec((1, ho * wo, cp)),
                  _invariant_spec((1, cp)),
                  _invariant_spec((1, cp))],
        out_specs=_row_block_spec((1, ho + 2, wo + 2, cp)),
        compiler_params=_mosaic(("parallel",)),
    )(y, a, b)


def bn_add_relu_proj(y, r, a2, b2, asc, bsc, cp):
    n, rw, _ = y.shape
    return pl.pallas_call(
        _bn_add_relu_proj_kernel,
        out_shape=jax.ShapeDtypeStruct((n, rw, cp), jnp.float32),
        grid=(n,),
        in_specs=[_row_block_spec((1, rw, cp)),
                  _row_block_spec((1, rw, cp)),
                  _invariant_spec((1, cp)),
                  _invariant_spec((1, cp)),
                  _invariant_spec((1, cp)),
                  _invariant_spec((1, cp))],
        out_specs=_row_block_spec((1, rw, cp)),
        compiler_params=_mosaic(("parallel",)),
    )(y, r, a2, b2, asc, bsc)


def bn_add_relu_identity(y, x_rows, a2, b2, cp):
    n, rw, cin = x_rows.shape
    kern = functools.partial(_bn_add_relu_id_kernel, cin, cp)
    return pl.pallas_call(
        kern,
        out_shape=jax.ShapeDtypeStruct((n, rw, cp), jnp.float32),
        grid=(n,),
        in_specs=[_row_block_spec((1, rw, cp)),
                  _row_block_spec((1, rw, cin)),
                  _invariant_spec((1, cp)),
                  _invariant_spec((1, cp))],
        out_specs=_row_block_spec((1, rw, cp)),
        compiler_params=_mosaic(("parallel",)),
    )(y, x_rows, a2, b2)


# ------------------------------- glue (JAX) ----------------------------------
def _make_phases(x_nhwc, stride, ksize=3, pad=1):
    """Pad spatially and split into the s*s stride phases (space-to-depth).

    Tap (ky, kx) of a 3x3/stride-s conv then reads the unit-stride window
    phases[:, (ky%s)*s+(kx%s), ky//s : ky//s+Ho, kx//s : kx//s+Wo, :].
    Total bytes == padded input (no 9x duplication).
    """
    n, h, w, c = x_nhwc.shape
    xp = jnp.pad(x_nhwc, ((0, 0), (pad, pad), (pad, pad), (0, 0)))
    ho = (h + 2 * pad - ksize) // stride + 1
    wo = (w + 2 * pad - ksize) // stride + 1
    ext = (ksize - 1) // stride
    hph, wph = ho + ext, wo + ext
    phs = []
    for py in range(stride):
        for px in range(stride):
            ph = xp[:, py::stride, px::stride, :][:, :hph, :wph, :]
            ph = jnp.pad(ph, ((0, 0), (0, hph - ph.shape[1]),
                              (0, wph - ph.shape[2]), (0, 0)))
            phs.append(ph)
    phases = jnp.stack(phs, axis=1).astype(jnp.bfloat16)   # (N, s*s, Hph, Wph, C)
    return phases, ho, wo


def _make_taps(stride, ksize=3):
    return tuple(((ky % stride) * stride + (kx % stride), ky // stride, kx // stride)
                 for ky in range(ksize) for kx in range(ksize))


def _bn_scale_shift(s_sum, s_sq, gamma, beta, n_rows):
    """Fold batch stats + gamma/beta into per-channel scale & shift (f32)."""
    mean = s_sum / n_rows
    var = jnp.maximum(s_sq / n_rows - mean * mean, 0.0)   # biased var (train)
    scale = gamma * jax.lax.rsqrt(var + BN_EPS)
    shift = beta - mean * scale
    return scale, shift


def _pad_cols(a, cols):
    return jnp.pad(a, ((0, 0), (0, cols - a.shape[1])))


def init_basic_block_params(key, in_planes, planes, stride):
    """Deterministic parameter init (kaiming-ish normals, BN gamma=1 beta=0)."""
    k1, k2, k3 = jax.random.split(key, 3)
    std1 = (2.0 / (9 * in_planes)) ** 0.5
    std2 = (2.0 / (9 * planes)) ** 0.5
    params = {
        # conv weights as (kH, kW, Cin, Cout) so reshape matches tap order
        "w1": jax.random.normal(k1, (3, 3, in_planes, planes), jnp.float32) * std1,
        "w2": jax.random.normal(k2, (3, 3, planes, planes), jnp.float32) * std2,
        "g1": jnp.ones((1, planes), jnp.float32),
        "b1": jnp.zeros((1, planes), jnp.float32),
        "g2": jnp.ones((1, planes), jnp.float32),
        "b2": jnp.zeros((1, planes), jnp.float32),
    }
    if stride != 1 or in_planes != planes:
        std_sc = (2.0 / in_planes) ** 0.5
        params["w_sc"] = jax.random.normal(k3, (in_planes, planes), jnp.float32) * std_sc
        params["g_sc"] = jnp.ones((1, planes), jnp.float32)
        params["b_sc"] = jnp.zeros((1, planes), jnp.float32)
    return params


@functools.partial(jax.jit, static_argnums=(2, 3, 4))
def basic_block_forward(x_nchw, params, in_planes, planes, stride):
    """Forward pass of BasicBlock.  Input/output in NCHW (PyTorch convention)."""
    x = jnp.transpose(x_nchw, (0, 2, 3, 1)).astype(jnp.float32)   # NHWC
    n, h, w, _ = x.shape
    has_proj = (stride != 1) or (in_planes != planes)
    # Lane-dense output channels; multiples of 256 for wide layers (v6e MXU).
    cp = _round_up(planes, 256) if planes >= 256 else _round_up(planes, LANE)

    # -- conv1 (3x3, stride s) + BN1 stats: 9 shifted-window matmuls ---------
    ph1, ho, wo = _make_phases(x, stride)
    taps1 = _make_taps(stride)
    r = float(n * ho * wo)
    w1 = _pad_cols(params["w1"].reshape(9 * in_planes, planes), cp).astype(jnp.bfloat16)
    g1, b1 = _pad_cols(params["g1"], cp), _pad_cols(params["b1"], cp)

    if has_proj:
        wsc = _pad_cols(params["w_sc"], cp).astype(jnp.bfloat16)
        # the 1x1/stride-s shortcut is one more static window of one phase
        sc_tap = ((1 % stride) * stride + (1 % stride), 1 // stride, 1 // stride)
        y1, ysc, s1, q1, ssc, qsc = conv_bn_stats_proj(
            ph1, w1, wsc, ho, wo, cp, taps1, sc_tap)
        asc, bsc = _bn_scale_shift(ssc.sum(axis=0), qsc.sum(axis=0),
                                   _pad_cols(params["g_sc"], cp),
                                   _pad_cols(params["b_sc"], cp), r)
    else:
        y1, s1, q1 = conv_bn_stats(ph1, w1, ho, wo, cp, taps1)

    a1, sh1 = _bn_scale_shift(s1.sum(axis=0), q1.sum(axis=0), g1, b1, r)

    # -- BN1 apply + ReLU, fused with the zero padding conv2 needs -----------
    out1p = bn_relu_pad(y1, a1, sh1, ho, wo, cp)      # (N, Ho+2, Wo+2, Cp) bf16

    # -- conv2 (3x3, stride 1) + BN2 stats ------------------------------------
    w2 = jnp.pad(params["w2"],
                 ((0, 0), (0, 0), (0, cp - planes), (0, cp - planes)))
    w2 = w2.reshape(9 * cp, cp).astype(jnp.bfloat16)
    ph2 = out1p.reshape(n, 1, ho + 2, wo + 2, cp)     # single phase (stride 1)
    y2, s2, q2 = conv_bn_stats(ph2, w2, ho, wo, cp, _make_taps(1))
    a2, sh2 = _bn_scale_shift(s2.sum(axis=0), q2.sum(axis=0),
                              _pad_cols(params["g2"], cp),
                              _pad_cols(params["b2"], cp), r)

    # -- BN2 + shortcut + add + ReLU ------------------------------------------
    if has_proj:
        out = bn_add_relu_proj(y2, ysc, a2, sh2, asc, bsc, cp)
    else:
        x_rows = x.reshape(n, h * w, in_planes)       # identity residual, in place
        out = bn_add_relu_identity(y2, x_rows, a2, sh2, cp)

    out = out[:, :, :planes].reshape(n, ho, wo, planes)
    return jnp.transpose(out, (0, 3, 1, 2))           # back to NCHW


# ----------------------- pure-JAX reference (validation) ---------------------
def _reference_forward(x_nchw, params, in_planes, planes, stride):
    def conv(x, w, s, pad):
        return jax.lax.conv_general_dilated(
            x, w, (s, s), ((pad, pad), (pad, pad)),
            dimension_numbers=("NCHW", "HWIO", "NCHW"))

    def bn(y, gamma, beta):
        mean = y.mean(axis=(0, 2, 3), keepdims=True)
        var = y.var(axis=(0, 2, 3), keepdims=True)
        g = gamma.reshape(1, -1, 1, 1)
        b = beta.reshape(1, -1, 1, 1)
        return (y - mean) * jax.lax.rsqrt(var + BN_EPS) * g + b

    x = x_nchw.astype(jnp.float32)
    out = jax.nn.relu(bn(conv(x, params["w1"], stride, 1),
                         params["g1"], params["b1"]))
    out = bn(conv(out, params["w2"], 1, 1), params["g2"], params["b2"])
    if stride != 1 or in_planes != planes:
        sc = conv(x, params["w_sc"].reshape(1, 1, in_planes, planes), stride, 0)
        sc = bn(sc, params["g_sc"], params["b_sc"])
    else:
        sc = x
    return jax.nn.relu(out + sc)


if __name__ == "__main__":
    key = jax.random.PRNGKey(0)
    kx, kp1, kp2 = jax.random.split(key, 3)

    # Block 1: projection shortcut (stride=2, 4 -> 8 channels)
    N, Cin, H, W = 2, 4, 16, 16
    planes1, stride1 = 8, 2
    x = jax.random.normal(kx, (N, Cin, H, W), jnp.float32)
    params1 = init_basic_block_params(kp1, Cin, planes1, stride1)
    y1 = basic_block_forward(x, params1, Cin, planes1, stride1)
    y1 = jax.block_until_ready(y1)
    assert y1.shape == (N, planes1, H // stride1, W // stride1)

    # Block 2: identity shortcut (stride=1, 8 -> 8 channels)
    params2 = init_basic_block_params(kp2, planes1, planes1, 1)
    y2 = basic_block_forward(y1, params2, planes1, planes1, 1)
    y2 = jax.block_until_ready(y2)
    assert y2.shape == y1.shape

    assert bool(jnp.all(jnp.isfinite(y1))) and bool(jnp.all(jnp.isfinite(y2)))

    # Validate against a pure-JAX reference (bf16 matmul inputs -> loose tol).
    ref1 = _reference_forward(x, params1, Cin, planes1, stride1)
    ref2 = _reference_forward(y1, params2, planes1, planes1, 1)
    err1 = float(jnp.max(jnp.abs(y1 - ref1)))
    err2 = float(jnp.max(jnp.abs(y2 - ref2)))
    assert err1 < 0.25, f"block1 mismatch vs reference: max abs err {err1}"
    assert err2 < 0.25, f"block2 mismatch vs reference: max abs err {err2}"

    print("KERNEL_OK")
</pallas_src>

<mosaic_0001>
module attributes {stable_mosaic.version = 11 : i64} {
  func.func @_conv_bn_stats_proj_kernel(%arg0: i32, %arg1: memref<1x4x9x9x4xbf16, #tpu.memory_space<vmem>>, %arg2: memref<36x128xbf16, #tpu.memory_space<vmem>>, %arg3: memref<4x128xbf16, #tpu.memory_space<vmem>>, %arg4: memref<1x64x128xbf16, #tpu.memory_space<vmem>>, %arg5: memref<1x64x128xbf16, #tpu.memory_space<vmem>>, %arg6: memref<1x1x128xf32, #tpu.memory_space<vmem>>, %arg7: memref<1x1x128xf32, #tpu.memory_space<vmem>>, %arg8: memref<1x1x128xf32, #tpu.memory_space<vmem>>, %arg9: memref<1x1x128xf32, #tpu.memory_space<vmem>>) attributes {dimension_semantics = [#tpu.dimension_semantics<parallel>], iteration_bounds = array<i64: 2>, scalar_prefetch = 0 : i64, scratch_operands = 0 : i64, tpu.core_type = #tpu.core_type<tc>, window_params = [{transform_indices = @transform_0, window_bounds = array<i64: 1, 4, 9, 9, 4>}, {pipeline_mode = #tpu.pipeline_mode<synchronous>, transform_indices = @transform_1, window_bounds = array<i64: 36, 128>}, {pipeline_mode = #tpu.pipeline_mode<synchronous>, transform_indices = @transform_2, window_bounds = array<i64: 4, 128>}, {transform_indices = @transform_3, window_bounds = array<i64: 1, 64, 128>}, {transform_indices = @transform_4, window_bounds = array<i64: 1, 64, 128>}, {transform_indices = @transform_5, window_bounds = array<i64: 1, 1, 128>}, {transform_indices = @transform_6, window_bounds = array<i64: 1, 1, 128>}, {transform_indices = @transform_7, window_bounds = array<i64: 1, 1, 128>}, {transform_indices = @transform_8, window_bounds = array<i64: 1, 1, 128>}]} {
    %cst = arith.constant 0.000000e+00 : f32
    %0 = vector.broadcast %cst : f32 to vector<64x128xf32>
    %c0 = arith.constant 0 : index
    %c0_0 = arith.constant 0 : index
    %c0_1 = arith.constant 0 : index
    %c0_2 = arith.constant 0 : index
    %c0_3 = arith.constant 0 : index
    %1 = vector.load %arg1[%c0, %c0_0, %c0_1, %c0_2, %c0_3] : memref<1x4x9x9x4xbf16, #tpu.memory_space<vmem>>, vector<1x1x8x8x4xbf16>
    %2 = vector.shape_cast %1 : vector<1x1x8x8x4xbf16> to vector<8x8x4xbf16>
    %3 = vector.shape_cast %2 : vector<8x8x4xbf16> to vector<64x4xbf16>
    %c0_4 = arith.constant 0 : index
    %c0_5 = arith.constant 0 : index
    %4 = vector.load %arg2[%c0_4, %c0_5] : memref<36x128xbf16, #tpu.memory_space<vmem>>, vector<4x128xbf16>
    %cst_6 = arith.constant dense<0.000000e+00> : vector<64x128xf32>
    %5 = tpu.matmul %3, %4, %cst_6 {dimension_numbers = #tpu.dot_dimension_numbers<[1], [0], [0], [1], [0, 0, 1, 1], [], []>} : vector<64x4xbf16>, vector<4x128xbf16>, vector<64x128xf32> -> vector<64x128xf32>
    %6 = arith.addf %0, %5 : vector<64x128xf32>
    %c0_7 = arith.constant 0 : index
    %c1 = arith.constant 1 : index
    %c0_8 = arith.constant 0 : index
    %c0_9 = arith.constant 0 : index
    %c0_10 = arith.constant 0 : index
    %7 = vector.load %arg1[%c0_7, %c1, %c0_8, %c0_9, %c0_10] : memref<1x4x9x9x4xbf16, #tpu.memory_space<vmem>>, vector<1x1x8x8x4xbf16>
    %8 = vector.shape_cast %7 : vector<1x1x8x8x4xbf16> to vector<8x8x4xbf16>
    %9 = vector.shape_cast %8 : vector<8x8x4xbf16> to vector<64x4xbf16>
    %c4 = arith.constant 4 : index
    %c0_11 = arith.constant 0 : index
    %10 = vector.load %arg2[%c4, %c0_11] : memref<36x128xbf16, #tpu.memory_space<vmem>>, vector<4x128xbf16>
    %cst_12 = arith.constant dense<0.000000e+00> : vector<64x128xf32>
    %11 = tpu.matmul %9, %10, %cst_12 {dimension_numbers = #tpu.dot_dimension_numbers<[1], [0], [0], [1], [0, 0, 1, 1], [], []>} : vector<64x4xbf16>, vector<4x128xbf16>, vector<64x128xf32> -> vector<64x128xf32>
    %12 = arith.addf %6, %11 : vector<64x128xf32>
    %c0_13 = arith.constant 0 : index
    %c0_14 = arith.constant 0 : index
    %c0_15 = arith.constant 0 : index
    %c1_16 = arith.constant 1 : index
    %c0_17 = arith.constant 0 : index
    %13 = vector.load %arg1[%c0_13, %c0_14, %c0_15, %c1_16, %c0_17] : memref<1x4x9x9x4xbf16, #tpu.memory_space<vmem>>, vector<1x1x8x8x4xbf16>
    %14 = vector.shape_cast %13 : vector<1x1x8x8x4xbf16> to vector<8x8x4xbf16>
    %15 = vector.shape_cast %14 : vector<8x8x4xbf16> to vector<64x4xbf16>
    %c8 = arith.constant 8 : index
    %c0_18 = arith.constant 0 : index
    %16 = vector.load %arg2[%c8, %c0_18] : memref<36x128xbf16, #tpu.memory_space<vmem>>, vector<4x128xbf16>
    %cst_19 = arith.constant dense<0.000000e+00> : vector<64x128xf32>
    %17 = tpu.matmul %15, %16, %cst_19 {dimension_numbers = #tpu.dot_dimension_numbers<[1], [0], [0], [1], [0, 0, 1, 1], [], []>} : vector<64x4xbf16>, vector<4x128xbf16>, vector<64x128xf32> -> vector<64x128xf32>
    %18 = arith.addf %12, %17 : vector<64x128xf32>
    %c0_20 = arith.constant 0 : index
    %c2 = arith.constant 2 : index
    %c0_21 = arith.constant 0 : index
    %c0_22 = arith.constant 0 : index
    %c0_23 = arith.constant 0 : index
    %19 = vector.load %arg1[%c0_20, %c2, %c0_21, %c0_22, %c0_23] : memref<1x4x9x9x4xbf16, #tpu.memory_space<vmem>>, vector<1x1x8x8x4xbf16>
    %20 = vector.shape_cast %19 : vector<1x1x8x8x4xbf16> to vector<8x8x4xbf16>
    %21 = vector.shape_cast %20 : vector<8x8x4xbf16> to vector<64x4xbf16>
    %c12 = arith.constant 12 : index
    %c0_24 = arith.constant 0 : index
    %22 = vector.load %arg2[%c12, %c0_24] : memref<36x128xbf16, #tpu.memory_space<vmem>>, vector<4x128xbf16>
    %cst_25 = arith.constant dense<0.000000e+00> : vector<64x128xf32>
    %23 = tpu.matmul %21, %22, %cst_25 {dimension_numbers = #tpu.dot_dimension_numbers<[1], [0], [0], [1], [0, 0, 1, 1], [], []>} : vector<64x4xbf16>, vector<4x128xbf16>, vector<64x128xf32> -> vector<64x128xf32>
    %24 = arith.addf %18, %23 : vector<64x128xf32>
    %c0_26 = arith.constant 0 : index
    %c3 = arith.constant 3 : index
    %c0_27 = arith.constant 0 : index
    %c0_28 = arith.constant 0 : index
    %c0_29 = arith.constant 0 : index
    %25 = vector.load %arg1[%c0_26, %c3, %c0_27, %c0_28, %c0_29] : memref<1x4x9x9x4xbf16, #tpu.memory_space<vmem>>, vector<1x1x8x8x4xbf16>
    %26 = vector.shape_cast %25 : vector<1x1x8x8x4xbf16> to vector<8x8x4xbf16>
    %27 = vector.shape_cast %26 : vector<8x8x4xbf16> to vector<64x4xbf16>
    %c16 = arith.constant 16 : index
    %c0_30 = arith.constant 0 : index
    %28 = vector.load %arg2[%c16, %c0_30] : memref<36x128xbf16, #tpu.memory_space<vmem>>, vector<4x128xbf16>
    %cst_31 = arith.constant dense<0.000000e+00> : vector<64x128xf32>
    %29 = tpu.matmul %27, %28, %cst_31 {dimension_numbers = #tpu.dot_dimension_numbers<[1], [0], [0], [1], [0, 0, 1, 1], [], []>} : vector<64x4xbf16>, vector<4x128xbf16>, vector<64x128xf32> -> vector<64x128xf32>
    %30 = arith.addf %24, %29 : vector<64x128xf32>
    %c0_32 = arith.constant 0 : index
    %c2_33 = arith.constant 2 : index
    %c0_34 = arith.constant 0 : index
    %c1_35 = arith.constant 1 : index
    %c0_36 = arith.constant 0 : index
    %31 = vector.load %arg1[%c0_32, %c2_33, %c0_34, %c1_35, %c0_36] : memref<1x4x9x9x4xbf16, #tpu.memory_space<vmem>>, vector<1x1x8x8x4xbf16>
    %32 = vector.shape_cast %31 : vector<1x1x8x8x4xbf16> to vector<8x8x4xbf16>
    %33 = vector.shape_cast %32 : vector<8x8x4xbf16> to vector<64x4xbf16>
    %c20 = arith.constant 20 : index
    %c0_37 = arith.constant 0 : index
    %34 = vector.load %arg2[%c20, %c0_37] : memref<36x128xbf16, #tpu.memory_space<vmem>>, vector<4x128xbf16>
    %cst_38 = arith.constant dense<0.000000e+00> : vector<64x128xf32>
    %35 = tpu.matmul %33, %34, %cst_38 {dimension_numbers = #tpu.dot_dimension_numbers<[1], [0], [0], [1], [0, 0, 1, 1], [], []>} : vector<64x4xbf16>, vector<4x128xbf16>, vector<64x128xf32> -> vector<64x128xf32>
    %36 = arith.addf %30, %35 : vector<64x128xf32>
    %c0_39 = arith.constant 0 : index
    %c0_40 = arith.constant 0 : index
    %c1_41 = arith.constant 1 : index
    %c0_42 = arith.constant 0 : index
    %c0_43 = arith.constant 0 : index
    %37 = vector.load %arg1[%c0_39, %c0_40, %c1_41, %c0_42, %c0_43] : memref<1x4x9x9x4xbf16, #tpu.memory_space<vmem>>, vector<1x1x8x8x4xbf16>
    %38 = vector.shape_cast %37 : vector<1x1x8x8x4xbf16> to vector<8x8x4xbf16>
    %39 = vector.shape_cast %38 : vector<8x8x4xbf16> to vector<64x4xbf16>
    %c24 = arith.constant 24 : index
    %c0_44 = arith.constant 0 : index
    %40 = vector.load %arg2[%c24, %c0_44] : memref<36x128xbf16, #tpu.memory_space<vmem>>, vector<4x128xbf16>
    %cst_45 = arith.constant dense<0.000000e+00> : vector<64x128xf32>
    %41 = tpu.matmul %39, %40, %cst_45 {dimension_numbers = #tpu.dot_dimension_numbers<[1], [0], [0], [1], [0, 0, 1, 1], [], []>} : vector<64x4xbf16>, vector<4x128xbf16>, vector<64x128xf32> -> vector<64x128xf32>
    %42 = arith.addf %36, %41 : vector<64x128xf32>
    %c0_46 = arith.constant 0 : index
    %c1_47 = arith.constant 1 : index
    %c1_48 = arith.constant 1 : index
    %c0_49 = arith.constant 0 : index
    %c0_50 = arith.constant 0 : index
    %43 = vector.load %arg1[%c0_46, %c1_47, %c1_48, %c0_49, %c0_50] : memref<1x4x9x9x4xbf16, #tpu.memory_space<vmem>>, vector<1x1x8x8x4xbf16>
    %44 = vector.shape_cast %43 : vector<1x1x8x8x4xbf16> to vector<8x8x4xbf16>
    %45 = vector.shape_cast %44 : vector<8x8x4xbf16> to vector<64x4xbf16>
    %c28 = arith.constant 28 : index
    %c0_51 = arith.constant 0 : index
    %46 = vector.load %arg2[%c28, %c0_51] : memref<36x128xbf16, #tpu.memory_space<vmem>>, vector<4x128xbf16>
    %cst_52 = arith.constant dense<0.000000e+00> : vector<64x128xf32>
    %47 = tpu.matmul %45, %46, %cst_52 {dimension_numbers = #tpu.dot_dimension_numbers<[1], [0], [0], [1], [0, 0, 1, 1], [], []>} : vector<64x4xbf16>, vector<4x128xbf16>, vector<64x128xf32> -> vector<64x128xf32>
    %48 = arith.addf %42, %47 : vector<64x128xf32>
    %c0_53 = arith.constant 0 : index
    %c0_54 = arith.constant 0 : index
    %c1_55 = arith.constant 1 : index
    %c1_56 = arith.constant 1 : index
    %c0_57 = arith.constant 0 : index
    %49 = vector.load %arg1[%c0_53, %c0_54, %c1_55, %c1_56, %c0_57] : memref<1x4x9x9x4xbf16, #tpu.memory_space<vmem>>, vector<1x1x8x8x4xbf16>
    %50 = vector.shape_cast %49 : vector<1x1x8x8x4xbf16> to vector<8x8x4xbf16>
    %51 = vector.shape_cast %50 : vector<8x8x4xbf16> to vector<64x4xbf16>
    %c32 = arith.constant 32 : index
    %c0_58 = arith.constant 0 : index
    %52 = vector.load %arg2[%c32, %c0_58] : memref<36x128xbf16, #tpu.memory_space<vmem>>, vector<4x128xbf16>
    %cst_59 = arith.constant dense<0.000000e+00> : vector<64x128xf32>
    %53 = tpu.matmul %51, %52, %cst_59 {dimension_numbers = #tpu.dot_dimension_numbers<[1], [0], [0], [1], [0, 0, 1, 1], [], []>} : vector<64x4xbf16>, vector<4x128xbf16>, vector<64x128xf32> -> vector<64x128xf32>
    %54 = arith.addf %48, %53 : vector<64x128xf32>
    %55 = arith.truncf %54 : vector<64x128xf32> to vector<64x128xbf16>
    %c0_60 = arith.constant 0 : index
    %c0_61 = arith.constant 0 : index
    %c0_62 = arith.constant 0 : index
    %56 = vector.load %arg4[%c0_60, %c0_61, %c0_62] : memref<1x64x128xbf16, #tpu.memory_space<vmem>>, vector<1x64x128xbf16>
    %57 = vector.shape_cast %56 : vector<1x64x128xbf16> to vector<64x128xbf16>
    %58 = vector.shape_cast %55 : vector<64x128xbf16> to vector<1x64x128xbf16>
    tpu.vector_store %arg4[%c0_60, %c0_61, %c0_62], %58 {strides = array<i32>} : memref<1x64x128xbf16, #tpu.memory_space<vmem>>, vector<1x64x128xbf16>,
    %cst_63 = arith.constant dense<0.000000e+00> : vector<128xf32>
    %59 = vector.multi_reduction <add>, %54, %cst_63 [0] : vector<64x128xf32> to vector<128xf32>
    %60 = vector.shape_cast %59 : vector<128xf32> to vector<1x128xf32>
    %c0_64 = arith.constant 0 : index
    %c0_65 = arith.constant 0 : index
    %c0_66 = arith.constant 0 : index
    %61 = vector.load %arg6[%c0_64, %c0_65, %c0_66] : memref<1x1x128xf32, #tpu.memory_space<vmem>>, vector<1x1x128xf32>
    %62 = vector.shape_cast %61 : vector<1x1x128xf32> to vector<1x128xf32>
    %63 = vector.shape_cast %60 : vector<1x128xf32> to vector<1x1x128xf32>
    tpu.vector_store %arg6[%c0_64, %c0_65, %c0_66], %63 {strides = array<i32>} : memref<1x1x128xf32, #tpu.memory_space<vmem>>, vector<1x1x128xf32>,
    %64 = arith.mulf %54, %54 : vector<64x128xf32>
    %cst_67 = arith.constant dense<0.000000e+00> : vector<128xf32>
    %65 = vector.multi_reduction <add>, %64, %cst_67 [0] : vector<64x128xf32> to vector<128xf32>
    %66 = vector.shape_cast %65 : vector<128xf32> to vector<1x128xf32>
    %c0_68 = arith.constant 0 : index
    %c0_69 = arith.constant 0 : index
    %c0_70 = arith.constant 0 : index
    %67 = vector.load %arg7[%c0_68, %c0_69, %c0_70] : memref<1x1x128xf32, #tpu.memory_space<vmem>>, vector<1x1x128xf32>
    %68 = vector.shape_cast %67 : vector<1x1x128xf32> to vector<1x128xf32>
    %69 = vector.shape_cast %66 : vector<1x128xf32> to vector<1x1x128xf32>
    tpu.vector_store %arg7[%c0_68, %c0_69, %c0_70], %69 {strides = array<i32>} : memref<1x1x128xf32, #tpu.memory_space<vmem>>, vector<1x1x128xf32>,
    %c0_71 = arith.constant 0 : index
    %c3_72 = arith.constant 3 : index
    %c0_73 = arith.constant 0 : index
    %c0_74 = arith.constant 0 : index
    %c0_75 = arith.constant 0 : index
    %70 = vector.load %arg1[%c0_71, %c3_72, %c0_73, %c0_74, %c0_75] : memref<1x4x9x9x4xbf16, #tpu.memory_space<vmem>>, vector<1x1x8x8x4xbf16>
    %71 = vector.shape_cast %70 : vector<1x1x8x8x4xbf16> to vector<8x8x4xbf16>
    %72 = vector.shape_cast %71 : vector<8x8x4xbf16> to vector<64x4xbf16>
    %c0_76 = arith.constant 0 : index
    %c0_77 = arith.constant 0 : index
    %73 = vector.load %arg3[%c0_76, %c0_77] : memref<4x128xbf16, #tpu.memory_space<vmem>>, vector<4x128xbf16>
    %cst_78 = arith.constant dense<0.000000e+00> : vector<64x128xf32>
    %74 = tpu.matmul %72, %73, %cst_78 {dimension_numbers = #tpu.dot_dimension_numbers<[1], [0], [0], [1], [0, 0, 1, 1], [], []>} : vector<64x4xbf16>, vector<4x128xbf16>, vector<64x128xf32> -> vector<64x128xf32>
    %75 = arith.truncf %74 : vector<64x128xf32> to vector<64x128xbf16>
    %c0_79 = arith.constant 0 : index
    %c0_80 = arith.constant 0 : index
    %c0_81 = arith.constant 0 : index
    %76 = vector.load %arg5[%c0_79, %c0_80, %c0_81] : memref<1x64x128xbf16, #tpu.memory_space<vmem>>, vector<1x64x128xbf16>
    %77 = vector.shape_cast %76 : vector<1x64x128xbf16> to vector<64x128xbf16>
    %78 = vector.shape_cast %75 : vector<64x128xbf16> to vector<1x64x128xbf16>
    tpu.vector_store %arg5[%c0_79, %c0_80, %c0_81], %78 {strides = array<i32>} : memref<1x64x128xbf16, #tpu.memory_space<vmem>>, vector<1x64x128xbf16>,
    %cst_82 = arith.constant dense<0.000000e+00> : vector<128xf32>
    %79 = vector.multi_reduction <add>, %74, %cst_82 [0] : vector<64x128xf32> to vector<128xf32>
    %80 = vector.shape_cast %79 : vector<128xf32> to vector<1x128xf32>
    %c0_83 = arith.constant 0 : index
    %c0_84 = arith.constant 0 : index
    %c0_85 = arith.constant 0 : index
    %81 = vector.load %arg8[%c0_83, %c0_84, %c0_85] : memref<1x1x128xf32, #tpu.memory_space<vmem>>, vector<1x1x128xf32>
    %82 = vector.shape_cast %81 : vector<1x1x128xf32> to vector<1x128xf32>
    %83 = vector.shape_cast %80 : vector<1x128xf32> to vector<1x1x128xf32>
    tpu.vector_store %arg8[%c0_83, %c0_84, %c0_85], %83 {strides = array<i32>} : memref<1x1x128xf32, #tpu.memory_space<vmem>>, vector<1x1x128xf32>,
    %84 = arith.mulf %74, %74 : vector<64x128xf32>
    %cst_86 = arith.constant dense<0.000000e+00> : vector<128xf32>
    %85 = vector.multi_reduction <add>, %84, %cst_86 [0] : vector<64x128xf32> to vector<128xf32>
    %86 = vector.shape_cast %85 : vector<128xf32> to vector<1x128xf32>
    %c0_87 = arith.constant 0 : index
    %c0_88 = arith.constant 0 : index
    %c0_89 = arith.constant 0 : index
    %87 = vector.load %arg9[%c0_87, %c0_88, %c0_89] : memref<1x1x128xf32, #tpu.memory_space<vmem>>, vector<1x1x128xf32>
    %88 = vector.shape_cast %87 : vector<1x1x128xf32> to vector<1x128xf32>
    %89 = vector.shape_cast %86 : vector<1x128xf32> to vector<1x1x128xf32>
    tpu.vector_store %arg9[%c0_87, %c0_88, %c0_89], %89 {strides = array<i32>} : memref<1x1x128xf32, #tpu.memory_space<vmem>>, vector<1x1x128xf32>,
    return
  }
  func.func @transform_0(%arg0: i32) -> (i32, i32, i32, i32, i32) {
    %c0_i32 = arith.constant 0 : i32
    %c0_i32_0 = arith.constant 0 : i32
    %c0_i32_1 = arith.constant 0 : i32
    %c0_i32_2 = arith.constant 0 : i32
    %c0_i32_3 = arith.constant 0 : i32
    return %arg0, %c0_i32, %c0_i32_0, %c0_i32_1, %c0_i32_2 : i32, i32, i32, i32, i32
  }
  func.func @transform_1(%arg0: i32) -> (i32, i32) {
    %c0_i32 = arith.constant 0 : i32
    %c0_i32_0 = arith.constant 0 : i32
    %c0_i32_1 = arith.constant 0 : i32
    return %c0_i32, %c0_i32_0 : i32, i32
  }
  func.func @transform_2(%arg0: i32) -> (i32, i32) {
    %c0_i32 = arith.constant 0 : i32
    %c0_i32_0 = arith.constant 0 : i32
    %c0_i32_1 = arith.constant 0 : i32
    return %c0_i32, %c0_i32_0 : i32, i32
  }
  func.func @transform_3(%arg0: i32) -> (i32, i32, i32) {
    %c0_i32 = arith.constant 0 : i32
    %c0_i32_0 = arith.constant 0 : i32
    %c0_i32_1 = arith.constant 0 : i32
    return %arg0, %c0_i32, %c0_i32_0 : i32, i32, i32
  }
  func.func @transform_4(%arg0: i32) -> (i32, i32, i32) {
    %c0_i32 = arith.constant 0 : i32
    %c0_i32_0 = arith.constant 0 : i32
    %c0_i32_1 = arith.constant 0 : i32
    return %arg0, %c0_i32, %c0_i32_0 : i32, i32, i32
  }
  func.func @transform_5(%arg0: i32) -> (i32, i32, i32) {
    %c0_i32 = arith.constant 0 : i32
    %c0_i32_0 = arith.constant 0 : i32
    %c0_i32_1 = arith.constant 0 : i32
    return %arg0, %c0_i32, %c0_i32_0 : i32, i32, i32
  }
  func.func @transform_6(%arg0: i32) -> (i32, i32, i32) {
    %c0_i32 = arith.constant 0 : i32
    %c0_i32_0 = arith.constant 0 : i32
    %c0_i32_1 = arith.constant 0 : i32
    return %arg0, %c0_i32, %c0_i32_0 : i32, i32, i32
  }
  func.func @transform_7(%arg0: i32) -> (i32, i32, i32) {
    %c0_i32 = arith.constant 0 : i32
    %c0_i32_0 = arith.constant 0 : i32
    %c0_i32_1 = arith.constant 0 : i32
    return %arg0, %c0_i32, %c0_i32_0 : i32, i32, i32
  }
  func.func @transform_8(%arg0: i32) -> (i32, i32, i32) {
    %c0_i32 = arith.constant 0 : i32
    %c0_i32_0 = arith.constant 0 : i32
    %c0_i32_1 = arith.constant 0 : i32
    return %arg0, %c0_i32, %c0_i32_0 : i32, i32, i32
  }
}

module attributes {stable_mosaic.version = 11 : i64} {
  func.func @_bn_relu_pad_kernel(%arg0: i32, %arg1: memref<1x64x128xbf16, #tpu.memory_space<vmem>>, %arg2: memref<1x128xf32, #tpu.memory_space<vmem>>, %arg3: memref<1x128xf32, #tpu.memory_space<vmem>>, %arg4: memref<1x10x10x128xbf16, #tpu.memory_space<vmem>>) attributes {dimension_semantics = [#tpu.dimension_semantics<parallel>], iteration_bounds = array<i64: 2>, scalar_prefetch = 0 : i64, scratch_operands = 0 : i64, tpu.core_type = #tpu.core_type<tc>, window_params = [{transform_indices = @transform_0, window_bounds = array<i64: 1, 64, 128>}, {pipeline_mode = #tpu.pipeline_mode<synchronous>, transform_indices = @transform_1, window_bounds = array<i64: 1, 128>}, {pipeline_mode = #tpu.pipeline_mode<synchronous>, transform_indices = @transform_2, window_bounds = array<i64: 1, 128>}, {transform_indices = @transform_3, window_bounds = array<i64: 1, 10, 10, 128>}]} {
    %cst = arith.constant 0.000000e+00 : bf16
    %0 = vector.broadcast %cst : bf16 to vector<1x10x10x128xbf16>
    %c0 = arith.constant 0 : index
    %c0_0 = arith.constant 0 : index
    %c0_1 = arith.constant 0 : index
    %c0_2 = arith.constant 0 : index
    %1 = vector.load %arg4[%c0, %c0_0, %c0_1, %c0_2] : memref<1x10x10x128xbf16, #tpu.memory_space<vmem>>, vector<1x10x10x128xbf16>
    tpu.vector_store %arg4[%c0, %c0_0, %c0_1, %c0_2], %0 {strides = array<i32>} : memref<1x10x10x128xbf16, #tpu.memory_space<vmem>>, vector<1x10x10x128xbf16>,
    %c0_3 = arith.constant 0 : index
    %c0_4 = arith.constant 0 : index
    %c0_5 = arith.constant 0 : index
    %2 = vector.load %arg1[%c0_3, %c0_4, %c0_5] : memref<1x64x128xbf16, #tpu.memory_space<vmem>>, vector<1x64x128xbf16>
    %3 = vector.shape_cast %2 : vector<1x64x128xbf16> to vector<64x128xbf16>
    %4 = arith.extf %3 : vector<64x128xbf16> to vector<64x128xf32>
    %c0_6 = arith.constant 0 : index
    %c0_7 = arith.constant 0 : index
    %5 = vector.load %arg2[%c0_6, %c0_7] : memref<1x128xf32, #tpu.memory_space<vmem>>, vector<1x128xf32>
    %6 = vector.broadcast %5 : vector<1x128xf32> to vector<64x128xf32>
    %7 = arith.mulf %4, %6 : vector<64x128xf32>
    %c0_8 = arith.constant 0 : index
    %c0_9 = arith.constant 0 : index
    %8 = vector.load %arg3[%c0_8, %c0_9] : memref<1x128xf32, #tpu.memory_space<vmem>>, vector<1x128xf32>
    %9 = vector.broadcast %8 : vector<1x128xf32> to vector<64x128xf32>
    %10 = arith.addf %7, %9 : vector<64x128xf32>
    %cst_10 = arith.constant 0.000000e+00 : f32
    %11 = vector.broadcast %cst_10 : f32 to vector<64x128xf32>
    %12 = arith.maximumf %10, %11 : vector<64x128xf32>
    %13 = vector.shape_cast %12 : vector<64x128xf32> to vector<8x8x128xf32>
    %14 = arith.truncf %13 : vector<8x8x128xf32> to vector<8x8x128xbf16>
    %c0_11 = arith.constant 0 : index
    %c1 = arith.constant 1 : index
    %c1_12 = arith.constant 1 : index
    %c0_13 = arith.constant 0 : index
    %15 = vector.load %arg4[%c0_11, %c1, %c1_12, %c0_13] : memref<1x10x10x128xbf16, #tpu.memory_space<vmem>>, vector<1x8x8x128xbf16>
    %16 = vector.shape_cast %15 : vector<1x8x8x128xbf16> to vector<8x8x128xbf16>
    %17 = vector.shape_cast %14 : vector<8x8x128xbf16> to vector<1x8x8x128xbf16>
    tpu.vector_store %arg4[%c0_11, %c1, %c1_12, %c0_13], %17 {strides = array<i32>} : memref<1x10x10x128xbf16, #tpu.memory_space<vmem>>, vector<1x8x8x128xbf16>,
    return
  }
  func.func @transform_0(%arg0: i32) -> (i32, i32, i32) {
    %c0_i32 = arith.constant 0 : i32
    %c0_i32_0 = arith.constant 0 : i32
    %c0_i32_1 = arith.constant 0 : i32
    return %arg0, %c0_i32, %c0_i32_0 : i32, i32, i32
  }
  func.func @transform_1(%arg0: i32) -> (i32, i32) {
    %c0_i32 = arith.constant 0 : i32
    %c0_i32_0 = arith.constant 0 : i32
    %c0_i32_1 = arith.constant 0 : i32
    return %c0_i32, %c0_i32_0 : i32, i32
  }
  func.func @transform_2(%arg0: i32) -> (i32, i32) {
    %c0_i32 = arith.constant 0 : i32
    %c0_i32_0 = arith.constant 0 : i32
    %c0_i32_1 = arith.constant 0 : i32
    return %c0_i32, %c0_i32_0 : i32, i32
  }
  func.func @transform_3(%arg0: i32) -> (i32, i32, i32, i32) {
    %c0_i32 = arith.constant 0 : i32
    %c0_i32_0 = arith.constant 0 : i32
    %c0_i32_1 = arith.constant 0 : i32
    %c0_i32_2 = arith.constant 0 : i32
    return %arg0, %c0_i32, %c0_i32_0, %c0_i32_1 : i32, i32, i32, i32
  }
}

module attributes {stable_mosaic.version = 11 : i64} {
  func.func @_conv_bn_stats_kernel(%arg0: i32, %arg1: memref<1x1x10x10x128xbf16, #tpu.memory_space<vmem>>, %arg2: memref<1152x128xbf16, #tpu.memory_space<vmem>>, %arg3: memref<1x64x128xbf16, #tpu.memory_space<vmem>>, %arg4: memref<1x1x128xf32, #tpu.memory_space<vmem>>, %arg5: memref<1x1x128xf32, #tpu.memory_space<vmem>>) attributes {dimension_semantics = [#tpu.dimension_semantics<parallel>], iteration_bounds = array<i64: 2>, scalar_prefetch = 0 : i64, scratch_operands = 0 : i64, tpu.core_type = #tpu.core_type<tc>, window_params = [{transform_indices = @transform_0, window_bounds = array<i64: 1, 1, 10, 10, 128>}, {pipeline_mode = #tpu.pipeline_mode<synchronous>, transform_indices = @transform_1, window_bounds = array<i64: 1152, 128>}, {transform_indices = @transform_2, window_bounds = array<i64: 1, 64, 128>}, {transform_indices = @transform_3, window_bounds = array<i64: 1, 1, 128>}, {transform_indices = @transform_4, window_bounds = array<i64: 1, 1, 128>}]} {
    %cst = arith.constant 0.000000e+00 : f32
    %0 = vector.broadcast %cst : f32 to vector<64x128xf32>
    %c0 = arith.constant 0 : index
    %c0_0 = arith.constant 0 : index
    %c0_1 = arith.constant 0 : index
    %c0_2 = arith.constant 0 : index
    %c0_3 = arith.constant 0 : index
    %1 = vector.load %arg1[%c0, %c0_0, %c0_1, %c0_2, %c0_3] : memref<1x1x10x10x128xbf16, #tpu.memory_space<vmem>>, vector<1x1x8x8x128xbf16>
    %2 = vector.shape_cast %1 : vector<1x1x8x8x128xbf16> to vector<8x8x128xbf16>
    %3 = vector.shape_cast %2 : vector<8x8x128xbf16> to vector<64x128xbf16>
    %c0_4 = arith.constant 0 : index
    %c0_5 = arith.constant 0 : index
    %4 = vector.load %arg2[%c0_4, %c0_5] : memref<1152x128xbf16, #tpu.memory_space<vmem>>, vector<128x128xbf16>
    %cst_6 = arith.constant dense<0.000000e+00> : vector<64x128xf32>
    %5 = tpu.matmul %3, %4, %cst_6 {dimension_numbers = #tpu.dot_dimension_numbers<[1], [0], [0], [1], [0, 0, 1, 1], [], []>} : vector<64x128xbf16>, vector<128x128xbf16>, vector<64x128xf32> -> vector<64x128xf32>
    %6 = arith.addf %0, %5 : vector<64x128xf32>
    %c0_7 = arith.constant 0 : index
    %c0_8 = arith.constant 0 : index
    %c0_9 = arith.constant 0 : index
    %c1 = arith.constant 1 : index
    %c0_10 = arith.constant 0 : index
    %7 = vector.load %arg1[%c0_7, %c0_8, %c0_9, %c1, %c0_10] : memref<1x1x10x10x128xbf16, #tpu.memory_space<vmem>>, vector<1x1x8x8x128xbf16>
    %8 = vector.shape_cast %7 : vector<1x1x8x8x128xbf16> to vector<8x8x128xbf16>
    %9 = vector.shape_cast %8 : vector<8x8x128xbf16> to vector<64x128xbf16>
    %c128 = arith.constant 128 : index
    %c0_11 = arith.constant 0 : index
    %10 = vector.load %arg2[%c128, %c0_11] : memref<1152x128xbf16, #tpu.memory_space<vmem>>, vector<128x128xbf16>
    %cst_12 = arith.constant dense<0.000000e+00> : vector<64x128xf32>
    %11 = tpu.matmul %9, %10, %cst_12 {dimension_numbers = #tpu.dot_dimension_numbers<[1], [0], [0], [1], [0, 0, 1, 1], [], []>} : vector<64x128xbf16>, vector<128x128xbf16>, vector<64x128xf32> -> vector<64x128xf32>
    %12 = arith.addf %6, %11 : vector<64x128xf32>
    %c0_13 = arith.constant 0 : index
    %c0_14 = arith.constant 0 : index
    %c0_15 = arith.constant 0 : index
    %c2 = arith.constant 2 : index
    %c0_16 = arith.constant 0 : index
    %13 = vector.load %arg1[%c0_13, %c0_14, %c0_15, %c2, %c0_16] : memref<1x1x10x10x128xbf16, #tpu.memory_space<vmem>>, vector<1x1x8x8x128xbf16>
    %14 = vector.shape_cast %13 : vector<1x1x8x8x128xbf16> to vector<8x8x128xbf16>
    %15 = vector.shape_cast %14 : vector<8x8x128xbf16> to vector<64x128xbf16>
    %c256 = arith.constant 256 : index
    %c0_17 = arith.constant 0 : index
    %16 = vector.load %arg2[%c256, %c0_17] : memref<1152x128xbf16, #tpu.memory_space<vmem>>, vector<128x128xbf16>
    %cst_18 = arith.constant dense<0.000000e+00> : vector<64x128xf32>
    %17 = tpu.matmul %15, %16, %cst_18 {dimension_numbers = #tpu.dot_dimension_numbers<[1], [0], [0], [1], [0, 0, 1, 1], [], []>} : vector<64x128xbf16>, vector<128x128xbf16>, vector<64x128xf32> -> vector<64x128xf32>
    %18 = arith.addf %12, %17 : vector<64x128xf32>
    %c0_19 = arith.constant 0 : index
    %c0_20 = arith.constant 0 : index
    %c1_21 = arith.constant 1 : index
    %c0_22 = arith.constant 0 : index
    %c0_23 = arith.constant 0 : index
    %19 = vector.load %arg1[%c0_19, %c0_20, %c1_21, %c0_22, %c0_23] : memref<1x1x10x10x128xbf16, #tpu.memory_space<vmem>>, vector<1x1x8x8x128xbf16>
    %20 = vector.shape_cast %19 : vector<1x1x8x8x128xbf16> to vector<8x8x128xbf16>
    %21 = vector.shape_cast %20 : vector<8x8x128xbf16> to vector<64x128xbf16>
    %c384 = arith.constant 384 : index
    %c0_24 = arith.constant 0 : index
    %22 = vector.load %arg2[%c384, %c0_24] : memref<1152x128xbf16, #tpu.memory_space<vmem>>, vector<128x128xbf16>
    %cst_25 = arith.constant dense<0.000000e+00> : vector<64x128xf32>
    %23 = tpu.matmul %21, %22, %cst_25 {dimension_numbers = #tpu.dot_dimension_numbers<[1], [0], [0], [1], [0, 0, 1, 1], [], []>} : vector<64x128xbf16>, vector<128x128xbf16>, vector<64x128xf32> -> vector<64x128xf32>
    %24 = arith.addf %18, %23 : vector<64x128xf32>
    %c0_26 = arith.constant 0 : index
    %c0_27 = arith.constant 0 : index
    %c1_28 = arith.constant 1 : index
    %c1_29 = arith.constant 1 : index
    %c0_30 = arith.constant 0 : index
    %25 = vector.load %arg1[%c0_26, %c0_27, %c1_28, %c1_29, %c0_30] : memref<1x1x10x10x128xbf16, #tpu.memory_space<vmem>>, vector<1x1x8x8x128xbf16>
    %26 = vector.shape_cast %25 : vector<1x1x8x8x128xbf16> to vector<8x8x128xbf16>
    %27 = vector.shape_cast %26 : vector<8x8x128xbf16> to vector<64x128xbf16>
    %c512 = arith.constant 512 : index
    %c0_31 = arith.constant 0 : index
    %28 = vector.load %arg2[%c512, %c0_31] : memref<1152x128xbf16, #tpu.memory_space<vmem>>, vector<128x128xbf16>
    %cst_32 = arith.constant dense<0.000000e+00> : vector<64x128xf32>
    %29 = tpu.matmul %27, %28, %cst_32 {dimension_numbers = #tpu.dot_dimension_numbers<[1], [0], [0], [1], [0, 0, 1, 1], [], []>} : vector<64x128xbf16>, vector<128x128xbf16>, vector<64x128xf32> -> vector<64x128xf32>
    %30 = arith.addf %24, %29 : vector<64x128xf32>
    %c0_33 = arith.constant 0 : index
    %c0_34 = arith.constant 0 : index
    %c1_35 = arith.constant 1 : index
    %c2_36 = arith.constant 2 : index
    %c0_37 = arith.constant 0 : index
    %31 = vector.load %arg1[%c0_33, %c0_34, %c1_35, %c2_36, %c0_37] : memref<1x1x10x10x128xbf16, #tpu.memory_space<vmem>>, vector<1x1x8x8x128xbf16>
    %32 = vector.shape_cast %31 : vector<1x1x8x8x128xbf16> to vector<8x8x128xbf16>
    %33 = vector.shape_cast %32 : vector<8x8x128xbf16> to vector<64x128xbf16>
    %c640 = arith.constant 640 : index
    %c0_38 = arith.constant 0 : index
    %34 = vector.load %arg2[%c640, %c0_38] : memref<1152x128xbf16, #tpu.memory_space<vmem>>, vector<128x128xbf16>
    %cst_39 = arith.constant dense<0.000000e+00> : vector<64x128xf32>
    %35 = tpu.matmul %33, %34, %cst_39 {dimension_numbers = #tpu.dot_dimension_numbers<[1], [0], [0], [1], [0, 0, 1, 1], [], []>} : vector<64x128xbf16>, vector<128x128xbf16>, vector<64x128xf32> -> vector<64x128xf32>
    %36 = arith.addf %30, %35 : vector<64x128xf32>
    %c0_40 = arith.constant 0 : index
    %c0_41 = arith.constant 0 : index
    %c2_42 = arith.constant 2 : index
    %c0_43 = arith.constant 0 : index
    %c0_44 = arith.constant 0 : index
    %37 = vector.load %arg1[%c0_40, %c0_41, %c2_42, %c0_43, %c0_44] : memref<1x1x10x10x128xbf16, #tpu.memory_space<vmem>>, vector<1x1x8x8x128xbf16>
    %38 = vector.shape_cast %37 : vector<1x1x8x8x128xbf16> to vector<8x8x128xbf16>
    %39 = vector.shape_cast %38 : vector<8x8x128xbf16> to vector<64x128xbf16>
    %c768 = arith.constant 768 : index
    %c0_45 = arith.constant 0 : index
    %40 = vector.load %arg2[%c768, %c0_45] : memref<1152x128xbf16, #tpu.memory_space<vmem>>, vector<128x128xbf16>
    %cst_46 = arith.constant dense<0.000000e+00> : vector<64x128xf32>
    %41 = tpu.matmul %39, %40, %cst_46 {dimension_numbers = #tpu.dot_dimension_numbers<[1], [0], [0], [1], [0, 0, 1, 1], [], []>} : vector<64x128xbf16>, vector<128x128xbf16>, vector<64x128xf32> -> vector<64x128xf32>
    %42 = arith.addf %36, %41 : vector<64x128xf32>
    %c0_47 = arith.constant 0 : index
    %c0_48 = arith.constant 0 : index
    %c2_49 = arith.constant 2 : index
    %c1_50 = arith.constant 1 : index
    %c0_51 = arith.constant 0 : index
    %43 = vector.load %arg1[%c0_47, %c0_48, %c2_49, %c1_50, %c0_51] : memref<1x1x10x10x128xbf16, #tpu.memory_space<vmem>>, vector<1x1x8x8x128xbf16>
    %44 = vector.shape_cast %43 : vector<1x1x8x8x128xbf16> to vector<8x8x128xbf16>
    %45 = vector.shape_cast %44 : vector<8x8x128xbf16> to vector<64x128xbf16>
    %c896 = arith.constant 896 : index
    %c0_52 = arith.constant 0 : index
    %46 = vector.load %arg2[%c896, %c0_52] : memref<1152x128xbf16, #tpu.memory_space<vmem>>, vector<128x128xbf16>
    %cst_53 = arith.constant dense<0.000000e+00> : vector<64x128xf32>
    %47 = tpu.matmul %45, %46, %cst_53 {dimension_numbers = #tpu.dot_dimension_numbers<[1], [0], [0], [1], [0, 0, 1, 1], [], []>} : vector<64x128xbf16>, vector<128x128xbf16>, vector<64x128xf32> -> vector<64x128xf32>
    %48 = arith.addf %42, %47 : vector<64x128xf32>
    %c0_54 = arith.constant 0 : index
    %c0_55 = arith.constant 0 : index
    %c2_56 = arith.constant 2 : index
    %c2_57 = arith.constant 2 : index
    %c0_58 = arith.constant 0 : index
    %49 = vector.load %arg1[%c0_54, %c0_55, %c2_56, %c2_57, %c0_58] : memref<1x1x10x10x128xbf16, #tpu.memory_space<vmem>>, vector<1x1x8x8x128xbf16>
    %50 = vector.shape_cast %49 : vector<1x1x8x8x128xbf16> to vector<8x8x128xbf16>
    %51 = vector.shape_cast %50 : vector<8x8x128xbf16> to vector<64x128xbf16>
    %c1024 = arith.constant 1024 : index
    %c0_59 = arith.constant 0 : index
    %52 = vector.load %arg2[%c1024, %c0_59] : memref<1152x128xbf16, #tpu.memory_space<vmem>>, vector<128x128xbf16>
    %cst_60 = arith.constant dense<0.000000e+00> : vector<64x128xf32>
    %53 = tpu.matmul %51, %52, %cst_60 {dimension_numbers = #tpu.dot_dimension_numbers<[1], [0], [0], [1], [0, 0, 1, 1], [], []>} : vector<64x128xbf16>, vector<128x128xbf16>, vector<64x128xf32> -> vector<64x128xf32>
    %54 = arith.addf %48, %53 : vector<64x128xf32>
    %55 = arith.truncf %54 : vector<64x128xf32> to vector<64x128xbf16>
    %c0_61 = arith.constant 0 : index
    %c0_62 = arith.constant 0 : index
    %c0_63 = arith.constant 0 : index
    %56 = vector.load %arg3[%c0_61, %c0_62, %c0_63] : memref<1x64x128xbf16, #tpu.memory_space<vmem>>, vector<1x64x128xbf16>
    %57 = vector.shape_cast %56 : vector<1x64x128xbf16> to vector<64x128xbf16>
    %58 = vector.shape_cast %55 : vector<64x128xbf16> to vector<1x64x128xbf16>
    tpu.vector_store %arg3[%c0_61, %c0_62, %c0_63], %58 {strides = array<i32>} : memref<1x64x128xbf16, #tpu.memory_space<vmem>>, vector<1x64x128xbf16>,
    %cst_64 = arith.constant dense<0.000000e+00> : vector<128xf32>
    %59 = vector.multi_reduction <add>, %54, %cst_64 [0] : vector<64x128xf32> to vector<128xf32>
    %60 = vector.shape_cast %59 : vector<128xf32> to vector<1x128xf32>
    %c0_65 = arith.constant 0 : index
    %c0_66 = arith.constant 0 : index
    %c0_67 = arith.constant 0 : index
    %61 = vector.load %arg4[%c0_65, %c0_66, %c0_67] : memref<1x1x128xf32, #tpu.memory_space<vmem>>, vector<1x1x128xf32>
    %62 = vector.shape_cast %61 : vector<1x1x128xf32> to vector<1x128xf32>
    %63 = vector.shape_cast %60 : vector<1x128xf32> to vector<1x1x128xf32>
    tpu.vector_store %arg4[%c0_65, %c0_66, %c0_67], %63 {strides = array<i32>} : memref<1x1x128xf32, #tpu.memory_space<vmem>>, vector<1x1x128xf32>,
    %64 = arith.mulf %54, %54 : vector<64x128xf32>
    %cst_68 = arith.constant dense<0.000000e+00> : vector<128xf32>
    %65 = vector.multi_reduction <add>, %64, %cst_68 [0] : vector<64x128xf32> to vector<128xf32>
    %66 = vector.shape_cast %65 : vector<128xf32> to vector<1x128xf32>
    %c0_69 = arith.constant 0 : index
    %c0_70 = arith.constant 0 : index
    %c0_71 = arith.constant 0 : index
    %67 = vector.load %arg5[%c0_69, %c0_70, %c0_71] : memref<1x1x128xf32, #tpu.memory_space<vmem>>, vector<1x1x128xf32>
    %68 = vector.shape_cast %67 : vector<1x1x128xf32> to vector<1x128xf32>
    %69 = vector.shape_cast %66 : vector<1x128xf32> to vector<1x1x128xf32>
    tpu.vector_store %arg5[%c0_69, %c0_70, %c0_71], %69 {strides = array<i32>} : memref<1x1x128xf32, #tpu.memory_space<vmem>>, vector<1x1x128xf32>,
    return
  }
  func.func @transform_0(%arg0: i32) -> (i32, i32, i32, i32, i32) {
    %c0_i32 = arith.constant 0 : i32
    %c0_i32_0 = arith.constant 0 : i32
    %c0_i32_1 = arith.constant 0 : i32
    %c0_i32_2 = arith.constant 0 : i32
    %c0_i32_3 = arith.constant 0 : i32
    return %arg0, %c0_i32, %c0_i32_0, %c0_i32_1, %c0_i32_2 : i32, i32, i32, i32, i32
  }
  func.func @transform_1(%arg0: i32) -> (i32, i32) {
    %c0_i32 = arith.constant 0 : i32
    %c0_i32_0 = arith.constant 0 : i32
    %c0_i32_1 = arith.constant 0 : i32
    return %c0_i32, %c0_i32_0 : i32, i32
  }
  func.func @transform_2(%arg0: i32) -> (i32, i32, i32) {
    %c0_i32 = arith.constant 0 : i32
    %c0_i32_0 = arith.constant 0 : i32
    %c0_i32_1 = arith.constant 0 : i32
    return %arg0, %c0_i32, %c0_i32_0 : i32, i32, i32
  }
  func.func @transform_3(%arg0: i32) -> (i32, i32, i32) {
    %c0_i32 = arith.constant 0 : i32
    %c0_i32_0 = arith.constant 0 : i32
    %c0_i32_1 = arith.constant 0 : i32
    return %arg0, %c0_i32, %c0_i32_0 : i32, i32, i32
  }
  func.func @transform_4(%arg0: i32) -> (i32, i32, i32) {
    %c0_i32 = arith.constant 0 : i32
    %c0_i32_0 = arith.constant 0 : i32
    %c0_i32_1 = arith.constant 0 : i32
    return %arg0, %c0_i32, %c0_i32_0 : i32, i32, i32
  }
}

module attributes {stable_mosaic.version = 11 : i64} {
  func.func @_bn_add_relu_proj_kernel(%arg0: i32, %arg1: memref<1x64x128xbf16, #tpu.memory_space<vmem>>, %arg2: memref<1x64x128xbf16, #tpu.memory_space<vmem>>, %arg3: memref<1x128xf32, #tpu.memory_space<vmem>>, %arg4: memref<1x128xf32, #tpu.memory_space<vmem>>, %arg5: memref<1x128xf32, #tpu.memory_space<vmem>>, %arg6: memref<1x128xf32, #tpu.memory_space<vmem>>, %arg7: memref<1x64x128xf32, #tpu.memory_space<vmem>>) attributes {dimension_semantics = [#tpu.dimension_semantics<parallel>], iteration_bounds = array<i64: 2>, scalar_prefetch = 0 : i64, scratch_operands = 0 : i64, tpu.core_type = #tpu.core_type<tc>, window_params = [{transform_indices = @transform_0, window_bounds = array<i64: 1, 64, 128>}, {transform_indices = @transform_1, window_bounds = array<i64: 1, 64, 128>}, {pipeline_mode = #tpu.pipeline_mode<synchronous>, transform_indices = @transform_2, window_bounds = array<i64: 1, 128>}, {pipeline_mode = #tpu.pipeline_mode<synchronous>, transform_indices = @transform_3, window_bounds = array<i64: 1, 128>}, {pipeline_mode = #tpu.pipeline_mode<synchronous>, transform_indices = @transform_4, window_bounds = array<i64: 1, 128>}, {pipeline_mode = #tpu.pipeline_mode<synchronous>, transform_indices = @transform_5, window_bounds = array<i64: 1, 128>}, {transform_indices = @transform_6, window_bounds = array<i64: 1, 64, 128>}]} {
    %c0 = arith.constant 0 : index
    %c0_0 = arith.constant 0 : index
    %c0_1 = arith.constant 0 : index
    %0 = vector.load %arg1[%c0, %c0_0, %c0_1] : memref<1x64x128xbf16, #tpu.memory_space<vmem>>, vector<1x64x128xbf16>
    %1 = vector.shape_cast %0 : vector<1x64x128xbf16> to vector<64x128xbf16>
    %2 = arith.extf %1 : vector<64x128xbf16> to vector<64x128xf32>
    %c0_2 = arith.constant 0 : index
    %c0_3 = arith.constant 0 : index
    %3 = vector.load %arg3[%c0_2, %c0_3] : memref<1x128xf32, #tpu.memory_space<vmem>>, vector<1x128xf32>
    %4 = vector.broadcast %3 : vector<1x128xf32> to vector<64x128xf32>
    %5 = arith.mulf %2, %4 : vector<64x128xf32>
    %c0_4 = arith.constant 0 : index
    %c0_5 = arith.constant 0 : index
    %6 = vector.load %arg4[%c0_4, %c0_5] : memref<1x128xf32, #tpu.memory_space<vmem>>, vector<1x128xf32>
    %7 = vector.broadcast %6 : vector<1x128xf32> to vector<64x128xf32>
    %8 = arith.addf %5, %7 : vector<64x128xf32>
    %c0_6 = arith.constant 0 : index
    %c0_7 = arith.constant 0 : index
    %c0_8 = arith.constant 0 : index
    %9 = vector.load %arg2[%c0_6, %c0_7, %c0_8] : memref<1x64x128xbf16, #tpu.memory_space<vmem>>, vector<1x64x128xbf16>
    %10 = vector.shape_cast %9 : vector<1x64x128xbf16> to vector<64x128xbf16>
    %11 = arith.extf %10 : vector<64x128xbf16> to vector<64x128xf32>
    %c0_9 = arith.constant 0 : index
    %c0_10 = arith.constant 0 : index
    %12 = vector.load %arg5[%c0_9, %c0_10] : memref<1x128xf32, #tpu.memory_space<vmem>>, vector<1x128xf32>
    %13 = vector.broadcast %12 : vector<1x128xf32> to vector<64x128xf32>
    %14 = arith.mulf %11, %13 : vector<64x128xf32>
    %c0_11 = arith.constant 0 : index
    %c0_12 = arith.constant 0 : index
    %15 = vector.load %arg6[%c0_11, %c0_12] : memref<1x128xf32, #tpu.memory_space<vmem>>, vector<1x128xf32>
    %16 = vector.broadcast %15 : vector<1x128xf32> to vector<64x128xf32>
    %17 = arith.addf %14, %16 : vector<64x128xf32>
    %18 = arith.addf %8, %17 : vector<64x128xf32>
    %cst = arith.constant 0.000000e+00 : f32
    %19 = vector.broadcast %cst : f32 to vector<64x128xf32>
    %20 = arith.maximumf %18, %19 : vector<64x128xf32>
    %c0_13 = arith.constant 0 : index
    %c0_14 = arith.constant 0 : index
    %c0_15 = arith.constant 0 : index
    %21 = vector.load %arg7[%c0_13, %c0_14, %c0_15] : memref<1x64x128xf32, #tpu.memory_space<vmem>>, vector<1x64x128xf32>
    %22 = vector.shape_cast %21 : vector<1x64x128xf32> to vector<64x128xf32>
    %23 = vector.shape_cast %20 : vector<64x128xf32> to vector<1x64x128xf32>
    tpu.vector_store %arg7[%c0_13, %c0_14, %c0_15], %23 {strides = array<i32>} : memref<1x64x128xf32, #tpu.memory_space<vmem>>, vector<1x64x128xf32>,
    return
  }
  func.func @transform_0(%arg0: i32) -> (i32, i32, i32) {
    %c0_i32 = arith.constant 0 : i32
    %c0_i32_0 = arith.constant 0 : i32
    %c0_i32_1 = arith.constant 0 : i32
    return %arg0, %c0_i32, %c0_i32_0 : i32, i32, i32
  }
  func.func @transform_1(%arg0: i32) -> (i32, i32, i32) {
    %c0_i32 = arith.constant 0 : i32
    %c0_i32_0 = arith.constant 0 : i32
    %c0_i32_1 = arith.constant 0 : i32
    return %arg0, %c0_i32, %c0_i32_0 : i32, i32, i32
  }
  func.func @transform_2(%arg0: i32) -> (i32, i32) {
    %c0_i32 = arith.constant 0 : i32
    %c0_i32_0 = arith.constant 0 : i32
    %c0_i32_1 = arith.constant 0 : i32
    return %c0_i32, %c0_i32_0 : i32, i32
  }
  func.func @transform_3(%arg0: i32) -> (i32, i32) {
    %c0_i32 = arith.constant 0 : i32
    %c0_i32_0 = arith.constant 0 : i32
    %c0_i32_1 = arith.constant 0 : i32
    return %c0_i32, %c0_i32_0 : i32, i32
  }
  func.func @transform_4(%arg0: i32) -> (i32, i32) {
    %c0_i32 = arith.constant 0 : i32
    %c0_i32_0 = arith.constant 0 : i32
    %c0_i32_1 = arith.constant 0 : i32
    return %c0_i32, %c0_i32_0 : i32, i32
  }
  func.func @transform_5(%arg0: i32) -> (i32, i32) {
    %c0_i32 = arith.constant 0 : i32
    %c0_i32_0 = arith.constant 0 : i32
    %c0_i32_1 = arith.constant 0 : i32
    return %c0_i32, %c0_i32_0 : i32, i32
  }
  func.func @transform_6(%arg0: i32) -> (i32, i32, i32) {
    %c0_i32 = arith.constant 0 : i32
    %c0_i32_0 = arith.constant 0 : i32
    %c0_i32_1 = arith.constant 0 : i32
    return %arg0, %c0_i32, %c0_i32_0 : i32, i32, i32
  }
}

</mosaic_0001>

<bundles_post_ra>
// kernel: basic_block_forward.7
= control target key start
LH: loop header
LB: loop body
LE: loop exit
PB: predicated region body
PF: predicated region fallthrough
CT: control target
= control target key end

     0   :  { %s552_s21 = smov 0   ;;  %s650_s0 = inlined_call_operand.vmem [shape: bf16[2,64,128], index: 0, kind: input, shape index: {}]   ;;  %s651_s1 = inlined_call_operand.vmem [shape: bf16[2,64,128], index: 1, kind: input, shape index: {}]   ;;  %s652_s2 = inlined_call_operand.vmem [shape: f32[1,128], index: 2, kind: input, shape index: {}]   ;;  %s653_s3 = inlined_call_operand.vmem [shape: f32[1,128], index: 3, kind: input, shape index: {}]   ;;  %s654_s4 = inlined_call_operand.vmem [shape: f32[1,128], index: 4, kind: input, shape index: {}]   ;;  %s655_s5 = inlined_call_operand.vmem [shape: f32[1,128], index: 5, kind: input, shape index: {}]   ;;  %s656_s6 = inlined_call_operand.vmem [shape: f32[2,64,128], index: 6, kind: output, shape index: {}]  }
   0x1 LB: > { %s443_s22 = sadd.s32 4294967295, %s515_s21   ;;  %p447_p0 = scmp.ge.s32.totalorder %s515_s21, 1  ;;  %s515_s21 = sphi %s552_s21, %s16_s21  }
   0x2   : > { %p222_p1 = scmp.lt.s32.totalorder %s515_s21, 3 }
   0x4   : > { %p223_p2 = pnand %p447_p0, %p222_p1 }
   0x5   : > { %p257_p3 = scmp.lt.s32.totalorder (!%p223_p2), %s443_s22, 1 }
   0x6   : > { %226 = sbr.rel (%p223_p2) target bundleno = 37 (0x25), region = 44 }
   0xb   : > { %s658_s22 = smov (!%p257_p3, %s443_s22), 1  ;;  %v576_v0 = vld [vmem:[%s652_s2] ss:$0 sm:$0xff] }
   0xc   : > { %s456_s23 = sshll.u32 %s658_s22, 5  ;;  %v581_v1 = vld [vmem:[%s654_s4] ss:$0 sm:$0xff]  ;;  %s458_s14 = sshll.u32 %s658_s22, 6 }
   0xd   : > { %s566_s26 = scalar_lea.vmem %s650_s0, %s456_s23  ;;  %s571_s29 = scalar_lea.vmem %s651_s1, %s456_s23  ;;  %v589_v6 = vld [vmem:[%s653_s3] ss:$0 sm:$0xff] }
   0xe   : > { %v460_v2 = vld [vmem:[%s566_s26] sm:$0xff]   ;;  %v491_v4 = vld [vmem:[%s566_s26 + $0x8] sm:$0xff]   ;;  %v492_v24 = vld [vmem:[%s566_s26 + $0x10] sm:$0xff]   ;;  %s619_s17 = scalar_lea.vmem %s656_s6, %s458_s14 }
   0xf   : > { %v476_v3 = vld [vmem:[%s571_s29] sm:$0xff]   ;;  %v461_v5 = vunpack.c.l.bf16 %v460_v2  ;;  %v462_v9 = vunpack.c.h.bf16 %v460_v2  ;;  %v494_v11 = vld [vmem:[%s571_s29 + $0x8] sm:$0xff]   ;;  %v465_v12 = vunpack.c.l.bf16 %v491_v4  ;;  %v466_v14 = vunpack.c.h.bf16 %v491_v4  ;;  %v495_v25 = vld [vmem:[%s571_s29 + $0x10] sm:$0xff]  }
  0x10   : > { %v477_v7 = vunpack.c.l.bf16 %v476_v3  ;;  %v594_v8 = vld [vmem:[%s655_s5] ss:$0 sm:$0xff]  ;;  %v478_v10 = vunpack.c.h.bf16 %v476_v3  ;;  %v481_v13 = vunpack.c.l.bf16 %v494_v11  ;;  %v482_v15 = vunpack.c.h.bf16 %v494_v11  ;;  %v493_v42 = vld [vmem:[%s566_s26 + $0x18] sm:$0xff]  }
  0x11   : > { %v292_v16 = vmul.f32 %v576_v0, %v461_v5  ;;  %v293_v18 = vmul.f32 %v576_v0, %v462_v9  ;;  %v294_v20 = vmul.f32 %v576_v0, %v465_v12  ;;  %v295_v22 = vmul.f32 %v576_v0, %v466_v14  ;;  %v496_v43 = vld [vmem:[%s571_s29 + $0x18] sm:$0xff]  }
  0x12   : > { %v332_v17 = vmul.f32 %v581_v1, %v477_v7  ;;  %v333_v19 = vmul.f32 %v581_v1, %v478_v10  ;;  %v334_v21 = vmul.f32 %v581_v1, %v481_v13  ;;  %v335_v23 = vmul.f32 %v581_v1, %v482_v15 }
  0x13   : > { %v304_v26 = vadd.f32 %v589_v6, %v292_v16  ;;  %v305_v28 = vadd.f32 %v589_v6, %v293_v18  ;;  %v306_v30 = vadd.f32 %v589_v6, %v294_v20  ;;  %v307_v32 = vadd.f32 %v589_v6, %v295_v22 }
  0x14   : > { %v344_v27 = vadd.f32 %v594_v8, %v332_v17  ;;  %v345_v29 = vadd.f32 %v594_v8, %v333_v19  ;;  %v346_v31 = vadd.f32 %v594_v8, %v334_v21  ;;  %v347_v33 = vadd.f32 %v594_v8, %v335_v23 }
  0x15   : > { %v469_v36 = vunpack.c.l.bf16 %v492_v24  ;;  %v485_v37 = vunpack.c.l.bf16 %v495_v25  ;;  %v470_v40 = vunpack.c.h.bf16 %v492_v24  ;;  %v486_v41 = vunpack.c.h.bf16 %v495_v25 }
  0x16   : > { %v352_v34 = vadd.f32 %v344_v27, %v304_v26  ;;  %v353_v35 = vadd.f32 %v345_v29, %v305_v28  ;;  %v354_v38 = vadd.f32 %v346_v31, %v306_v30  ;;  %v355_v39 = vadd.f32 %v347_v33, %v307_v32 }
  0x17   : > { %v296_v46 = vmul.f32 %v576_v0, %v469_v36  ;;  %v336_v47 = vmul.f32 %v581_v1, %v485_v37  ;;  %v297_v50 = vmul.f32 %v576_v0, %v470_v40  ;;  %v337_v51 = vmul.f32 %v581_v1, %v486_v41 }
  0x18   : > { %v360_v44 = vmax.f32 %v352_v34, 0.0  ;;  %v361_v45 = vmax.f32 %v353_v35, 0.0  ;;  %v362_v48 = vmax.f32 %v354_v38, 0.0  ;;  %v363_v49 = vmax.f32 %v355_v39, 0.0 }
  0x19   : > { %v308_v52 = vadd.f32 %v589_v6, %v296_v46  ;;  %v348_v53 = vadd.f32 %v594_v8, %v336_v47  ;;  %v473_v54 = vunpack.c.l.bf16 %v493_v42  ;;  %v489_v55 = vunpack.c.l.bf16 %v496_v43 }
  0x1a   : > { %368 = vst [vmem:[%s619_s17] sm:$0xff] %v360_v44  ;;  %v309_v56 = vadd.f32 %v589_v6, %v297_v50  ;;  %v349_v57 = vadd.f32 %v594_v8, %v337_v51  ;;  %v474_v58 = vunpack.c.h.bf16 %v493_v42  ;;  %v490_v59 = vunpack.c.h.bf16 %v496_v43 }
  0x1b   : > { %369 = vst [vmem:[%s619_s17 + $0x8] sm:$0xff] %v361_v45  ;;  %v356_v60 = vadd.f32 %v348_v53, %v308_v52  ;;  %v298_v61 = vmul.f32 %v576_v0, %v473_v54  ;;  %v338_v62 = vmul.f32 %v581_v1, %v489_v55 }
  0x1c   : > { %370 = vst [vmem:[%s619_s17 + $0x10] sm:$0xff] %v362_v48  ;;  %v357_v63 = vadd.f32 %v349_v57, %v309_v56  ;;  %v299_v2 = vmul.f32 %v576_v0, %v474_v58  ;;  %v339_v3 = vmul.f32 %v581_v1, %v490_v59 }
  0x1d   : > { %371 = vst [vmem:[%s619_s17 + $0x18] sm:$0xff] %v363_v49  ;;  %v364_v4 = vmax.f32 %v356_v60, 0.0  ;;  %v310_v5 = vadd.f32 %v589_v6, %v298_v61  ;;  %v350_v7 = vadd.f32 %v594_v8, %v338_v62 }
  0x1e   : > { %v365_v9 = vmax.f32 %v357_v63, 0.0  ;;  %v311_v10 = vadd.f32 %v589_v6, %v299_v2  ;;  %v351_v11 = vadd.f32 %v594_v8, %v339_v3 }
  0x1f   : > { %372 = vst [vmem:[%s619_s17 + $0x20] sm:$0xff] %v364_v4  ;;  %v358_v12 = vadd.f32 %v350_v7, %v310_v5 }
  0x20   : > { %373 = vst [vmem:[%s619_s17 + $0x28] sm:$0xff] %v365_v9  ;;  %v359_v13 = vadd.f32 %v351_v11, %v311_v10 }
  0x21   : > { %v366_v14 = vmax.f32 %v358_v12, 0.0 }
  0x22   : > { %v367_v15 = vmax.f32 %v359_v13, 0.0 }
  0x23   : > { %374 = vst [vmem:[%s619_s17 + $0x30] sm:$0xff] %v366_v14 }
  0x24   : > { %375 = vst [vmem:[%s619_s17 + $0x38] sm:$0xff] %v367_v15 }
  0x25 PF: > { %s16_s21 = sadd.s32 1, %s515_s21  }
  0x26   : > { %p13_p4 = scmp.ge.s32.totalorder %s16_s21, 4  }
  0x28   :  { %15 = sbr.rel (!%p13_p4) target bundleno = 1 (0x1), region = 77 }

// kernel: basic_block_forward.5
= control target key start
LH: loop header
LB: loop body
LE: loop exit
PB: predicated region body
PF: predicated region fallthrough
CT: control target
= control target key end

     0   :  { %s541_s12 = smov 0   ;;  %s682_s0 = inlined_call_operand.vmem [shape: bf16[2,64,128], index: 0, kind: input, shape index: {}]   ;;  %s683_s1 = inlined_call_operand.vmem [shape: f32[1,128], index: 1, kind: input, shape index: {}]   ;;  %s684_s2 = inlined_call_operand.vmem [shape: f32[1,128], index: 2, kind: input, shape index: {}]   ;;  %s685_s3 = inlined_call_operand.vmem [shape: bf16[2,10,10,128], index: 3, kind: output, shape index: {}]  }
   0x1 LB: > { %s438_s13 = sadd.s32 4294967295, %s518_s12   ;;  %p442_p0 = scmp.ge.s32.totalorder %s518_s12, 1  ;;  %s518_s12 = sphi %s541_s12, %s13_s12  }
   0x2   : > { %p137_p1 = scmp.lt.s32.totalorder %s518_s12, 3 }
   0x4   : > { %p138_p2 = pnand %p442_p0, %p137_p1 }
   0x5   : > { %p161_p3 = scmp.lt.s32.totalorder (!%p138_p2), %s438_s13, 1 }
   0x6   : > { %141 = sbr.rel (%p138_p2) target bundleno = 51 (0x33), region = 32 }
   0xb   : > { %s691_s13 = smov (!%p161_p3, %s438_s13), 1  ;;  %v510_v0 = vld [vmem:[%s683_s1] ss:$0 sm:$0xff]  ;;  %v520_v4 = vmov 0   ;;  %vm329_vm0 = vcmask 1043456   ;;  %vm335_vm2 = vcmask 1040384  }
   0xc   : > { %s500_s14 = smul.u32 80, %s691_s13  ;;  %s480_s15 = sshll.u32 %s691_s13, 5  ;;  %v511_v6 = vld [vmem:[%s684_s2] ss:$0 sm:$0xff]  ;;  %vm330_vm1 = vsmask.f32 7938 }
   0xd   : > { %s165_s18 = scalar_lea.vmem %s682_s0, %s480_s15  ;;  %vm336_vm3 = vsmask.f32 256  ;;  %vm597_vm4 = vmand %vm329_vm0, %vm330_vm1 }
   0xe   : > { %s558_s23 = scalar_lea.vmem %s685_s3, %s500_s14  ;;  %v482_v1 = vld [vmem:[%s165_s18] sm:$0xff]   ;;  %v497_v2 = vld [vmem:[%s165_s18 + $0x8] sm:$0xff]   ;;  %v498_v3 = vld [vmem:[%s165_s18 + $0x10] sm:$0xff]  }
   0xf   : > { %174 = vst [vmem:[%s558_s23 + $0x8] sm:$0xf] %v520_v4  ;;  %v483_v5 = vunpack.c.l.bf16 %v482_v1  ;;  %v484_v7 = vunpack.c.h.bf16 %v482_v1  ;;  %v487_v8 = vunpack.c.l.bf16 %v497_v2  ;;  %v488_v9 = vunpack.c.h.bf16 %v497_v2  ;;  %v499_v10 = vld [vmem:[%s165_s18 + $0x18] sm:$0xff]   ;;  %vm606_vm5 = vmand %vm335_vm2, %vm336_vm3 }
  0x10   : > { %172 = vst [vmem:[%s558_s23] sm:$0xf] %v520_v4  ;;  %v491_v11 = vunpack.c.l.bf16 %v498_v3  ;;  %v492_v12 = vunpack.c.h.bf16 %v498_v3  ;;  %v495_v13 = vunpack.c.l.bf16 %v499_v10  ;;  %v496_v14 = vunpack.c.h.bf16 %v499_v10 }
  0x11   : > { %173 = vst [vmem:[%s558_s23 + $0x4] sm:$0x1] %v520_v4  ;;  %v212_v15 = vmul.f32 %v510_v0, %v483_v5  ;;  %v213_v16 = vmul.f32 %v510_v0, %v484_v7  ;;  %v214_v17 = vmul.f32 %v510_v0, %v487_v8  ;;  %v215_v18 = vmul.f32 %v510_v0, %v488_v9 }
  0x12   : > { %175 = vst [vmem:[%s558_s23 + $0xc] sm:$0x1] %v520_v4  ;;  %v216_v19 = vmul.f32 %v510_v0, %v491_v11  ;;  %v217_v20 = vmul.f32 %v510_v0, %v492_v12  ;;  %v218_v21 = vmul.f32 %v510_v0, %v495_v13  ;;  %v219_v22 = vmul.f32 %v510_v0, %v496_v14 }
  0x13   : > { %176 = vst [vmem:[%s558_s23 + $0x10] sm:$0xf] %v520_v4  ;;  %v224_v23 = vadd.f32 %v511_v6, %v212_v15  ;;  %v225_v24 = vadd.f32 %v511_v6, %v213_v16  ;;  %v226_v25 = vadd.f32 %v511_v6, %v214_v17  ;;  %v227_v26 = vadd.f32 %v511_v6, %v215_v18 }
  0x14   : > { %177 = vst [vmem:[%s558_s23 + $0x14] sm:$0x1] %v520_v4  ;;  %v228_v27 = vadd.f32 %v511_v6, %v216_v19  ;;  %v229_v31 = vadd.f32 %v511_v6, %v217_v20  ;;  %v230_v33 = vadd.f32 %v511_v6, %v218_v21  ;;  %v231_v37 = vadd.f32 %v511_v6, %v219_v22 }
  0x15   : > { %178 = vst [vmem:[%s558_s23 + $0x18] sm:$0xf] %v520_v4  ;;  %v232_v28 = vmax.f32 %v224_v23, 0.0  ;;  %v233_v29 = vmax.f32 %v225_v24, 0.0  ;;  %v234_v30 = vmax.f32 %v226_v25, 0.0  ;;  %v235_v32 = vmax.f32 %v227_v26, 0.0 }
  0x16   : > { %179 = vst [vmem:[%s558_s23 + $0x1c] sm:$0x1] %v520_v4  ;;  %v236_v38 = vmax.f32 %v228_v27, 0.0  ;;  %v237_v41 = vmax.f32 %v229_v31, 0.0  ;;  %v446_v46 = vld [vmem:[%s558_s23 + $0x8] sm:$0xf] }
  0x17   : > { %180 = vst [vmem:[%s558_s23 + $0x20] sm:$0xf] %v520_v4  ;;  %v240_v34 = vpack.c.bf16 %v232_v28, %v232_v28  ;;  %v241_v35 = vpack.c.bf16 %v233_v29, %v233_v29  ;;  %v242_v36 = vpack.c.bf16 %v234_v30, %v234_v30  ;;  %v243_v44 = vpack.c.bf16 %v235_v32, %v235_v32 }
  0x18   : > { %181 = vst [vmem:[%s558_s23 + $0x24] sm:$0x1] %v520_v4  ;;  %v238_v48 = vmax.f32 %v230_v33, 0.0  ;;  %v239_v49 = vmax.f32 %v231_v37, 0.0  ;;  %v244_v53 = vpack.c.bf16 %v236_v38, %v236_v38  ;;  %v245_v59 = vpack.c.bf16 %v237_v41, %v237_v41 }
  0x19   : > { %182 = vst [vmem:[%s558_s23 + $0x28] sm:$0xf] %v520_v4  ;;  %v249_v39 = vshrl.u32 %v240_v34, 16  ;;  %v252_v40 = vshll.u32 %v240_v34, 16  ;;  %v257_v42 = vshrl.u32 %v241_v35, 16  ;;  %v260_v43 = vshll.u32 %v241_v35, 16 }
  0x1a   : > { %183 = vst [vmem:[%s558_s23 + $0x2c] sm:$0x1] %v520_v4  ;;  %v265_v47 = vshrl.u32 %v242_v36, 16  ;;  %v448_v50 = vld [vmem:[%s558_s23 + $0xc] sm:$0x1]  ;;  %v268_v52 = vshll.u32 %v242_v36, 16  ;;  %v246_v3 = vpack.c.bf16 %v238_v48, %v238_v48  ;;  %v247_v18 = vpack.c.bf16 %v239_v49, %v239_v49 }
  0x1b   : > { %184 = vst [vmem:[%s558_s23 + $0x30] sm:$0xf] %v520_v4  ;;  %v251_v45 = vrot.slane %v249_v39, 7  ;;  %v259_v51 = vrot.slane %v257_v42, 7  ;;  %v450_v57 = vld [vmem:[%s558_s23 + $0x10] sm:$0xf] }
  0x1c   : > { %185 = vst [vmem:[%s558_s23 + $0x34] sm:$0x1] %v520_v4  ;;  %v267_v58 = vrot.slane %v265_v47, 7  ;;  %v452_v62 = vld [vmem:[%s558_s23 + $0x14] sm:$0x1]  ;;  %v273_v63 = vshrl.u32 %v243_v44, 16 }
  0x1d   : > { %186 = vst [vmem:[%s558_s23 + $0x38] sm:$0xf] %v520_v4  ;;  %v254_v54 = vor.u32 %v252_v40, %v251_v45  ;;  %v255_v56 = vrot.slane %v251_v45, 4  ;;  %v262_v61 = vor.u32 %v260_v43, %v259_v51  ;;  %v276_v0 = vshll.u32 %v243_v44, 16  ;;  %v454_v2 = vld [vmem:[%s558_s23 + $0x18] sm:$0xf] }
  0x1e   : > { %187 = vst [vmem:[%s558_s23 + $0x3c] sm:$0x1] %v520_v4  ;;  %v263_v1 = vrot.slane %v259_v51, 4  ;;  %v270_v6 = vor.u32 %v268_v52, %v267_v58  ;;  %v456_v7 = vld [vmem:[%s558_s23 + $0x1c] sm:$0x1]  ;;  %v275_v8 = vrot.slane %v273_v63, 7 }
  0x1f   : > { %188 = vst [vmem:[%s558_s23 + $0x40] sm:$0xf] %v520_v4  ;;  %v333_v5 = vsel %vm597_vm4, %v254_v54, %v446_v46  ;;  %v281_v9 = vshrl.u32 %v244_v53, 16  ;;  %v339_v10 = vsel %vm606_vm5, %v255_v56, %v448_v50  ;;  %v271_v11 = vrot.slane %v267_v58, 4  ;;  %v458_v16 = vld [vmem:[%s558_s23 + $0x20] sm:$0xf] }
  0x20   : > { %189 = vst [vmem:[%s558_s23 + $0x44] sm:$0x1] %v520_v4  ;;  %v284_v12 = vshll.u32 %v244_v53, 16  ;;  %v289_v13 = vshrl.u32 %v245_v59, 16  ;;  %v342_v14 = vsel %vm597_vm4, %v262_v61, %v450_v57  ;;  %v278_v15 = vor.u32 %v276_v0, %v275_v8  ;;  %v460_v23 = vld [vmem:[%s558_s23 + $0x24] sm:$0x1] }
  0x21   : > { %190 = vst [vmem:[%s558_s23 + $0x48] sm:$0xf] %v520_v4  ;;  %v283_v17 = vrot.slane %v281_v9, 7  ;;  %v345_v19 = vsel %vm606_vm5, %v263_v1, %v452_v62  ;;  %v279_v20 = vrot.slane %v275_v8, 4  ;;  %v292_v22 = vshll.u32 %v245_v59, 16 }
  0x22   : > { %191 = vst [vmem:[%s558_s23 + $0x4c] sm:$0x1] %v520_v4  ;;  %v291_v21 = vrot.slane %v289_v13, 7  ;;  %v348_v4 = vsel %vm597_vm4, %v270_v6, %v454_v2  ;;  %v462_v25 = vld [vmem:[%s558_s23 + $0x28] sm:$0xf]  ;;  %v351_v26 = vsel %vm606_vm5, %v271_v11, %v456_v7  ;;  %v297_v28 = vshrl.u32 %v246_v3, 16 }
  0x23   : > { %447 = vst [vmem:[%s558_s23 + $0x8] sm:$0xf] %v333_v5  ;;  %v286_v24 = vor.u32 %v284_v12, %v283_v17  ;;  %v287_v27 = vrot.slane %v283_v17, 4  ;;  %v300_v29 = vshll.u32 %v246_v3, 16  ;;  %v354_v30 = vsel %vm597_vm4, %v278_v15, %v458_v16  ;;  %v464_v31 = vld [vmem:[%s558_s23 + $0x2c] sm:$0x1] }
  0x24   : > { %449 = vst [vmem:[%s558_s23 + $0xc] sm:$0x1] %v339_v10  ;;  %v294_v32 = vor.u32 %v292_v22, %v291_v21  ;;  %v466_v33 = vld [vmem:[%s558_s23 + $0x30] sm:$0xf]  ;;  %v357_v34 = vsel %vm606_vm5, %v279_v20, %v460_v23  ;;  %v295_v35 = vrot.slane %v291_v21, 4  ;;  %v299_v36 = vrot.slane %v297_v28, 7 }
  0x25   : > { %451 = vst [vmem:[%s558_s23 + $0x10] sm:$0xf] %v342_v14  ;;  %v305_v37 = vshrl.u32 %v247_v18, 16  ;;  %v360_v38 = vsel %vm597_vm4, %v286_v24, %v462_v25  ;;  %v468_v39 = vld [vmem:[%s558_s23 + $0x34] sm:$0x1]  ;;  %v308_v40 = vshll.u32 %v247_v18, 16  ;;  %v363_v41 = vsel %vm606_vm5, %v287_v27, %v464_v31 }
  0x26   : > { %453 = vst [vmem:[%s558_s23 + $0x14] sm:$0x1] %v345_v19  ;;  %v302_v42 = vor.u32 %v300_v29, %v299_v36  ;;  %v470_v43 = vld [vmem:[%s558_s23 + $0x38] sm:$0xf]  ;;  %v303_v44 = vrot.slane %v299_v36, 4  ;;  %v366_v46 = vsel %vm597_vm4, %v294_v32, %v466_v33  ;;  %v369_v48 = vsel %vm606_vm5, %v295_v35, %v468_v39 }
  0x27   : > { %455 = vst [vmem:[%s558_s23 + $0x18] sm:$0xf] %v348_v4  ;;  %v307_v45 = vrot.slane %v305_v37, 7  ;;  %v472_v47 = vld [vmem:[%s558_s23 + $0x3c] sm:$0x1] }
  0x28   : > { %457 = vst [vmem:[%s558_s23 + $0x1c] sm:$0x1] %v351_v26  ;;  %v474_v50 = vld [vmem:[%s558_s23 + $0x40] sm:$0xf]  ;;  %v372_v52 = vsel %vm597_vm4, %v302_v42, %v470_v43  ;;  %v476_v53 = vld [vmem:[%s558_s23 + $0x44] sm:$0x1]  ;;  %v375_v54 = vsel %vm606_vm5, %v303_v44, %v472_v47 }
  0x29   : > { %459 = vst [vmem:[%s558_s23 + $0x20] sm:$0xf] %v354_v30  ;;  %v310_v49 = vor.u32 %v308_v40, %v307_v45  ;;  %v311_v51 = vrot.slane %v307_v45, 4 }
  0x2a   : > { %461 = vst [vmem:[%s558_s23 + $0x24] sm:$0x1] %v357_v34 }
  0x2b   : > { %463 = vst [vmem:[%s558_s23 + $0x28] sm:$0xf] %v360_v38  ;;  %v378_v56 = vsel %vm597_vm4, %v310_v49, %v474_v50  ;;  %v381_v57 = vsel %vm606_vm5, %v311_v51, %v476_v53 }
  0x2c   : > { %465 = vst [vmem:[%s558_s23 + $0x2c] sm:$0x1] %v363_v41 }
  0x2d   : > { %467 = vst [vmem:[%s558_s23 + $0x30] sm:$0xf] %v366_v46 }
  0x2e   : > { %469 = vst [vmem:[%s558_s23 + $0x34] sm:$0x1] %v369_v48 }
  0x2f   : > { %471 = vst [vmem:[%s558_s23 + $0x38] sm:$0xf] %v372_v52 }
  0x30   : > { %473 = vst [vmem:[%s558_s23 + $0x3c] sm:$0x1] %v375_v54 }
  0x31   : > { %475 = vst [vmem:[%s558_s23 + $0x40] sm:$0xf] %v378_v56 }
  0x32   : > { %477 = vst [vmem:[%s558_s23 + $0x44] sm:$0x1] %v381_v57 }
  0x33 PF: > { %s13_s12 = sadd.s32 1, %s518_s12  }
  0x34   : > { %p10_p4 = scmp.ge.s32.totalorder %s13_s12, 4  }
  0x36   :  { %12 = sbr.rel (!%p10_p4) target bundleno = 1 (0x1), region = 63 }

// kernel: basic_block_forward.4
= control target key start
LH: loop header
LB: loop body
LE: loop exit
PB: predicated region body
PF: predicated region fallthrough
CT: control target
= control target key end

     0   :  { %s2176_s27 = smov 0   ;;  %s2495_s0 = inlined_call_operand.vmem [shape: bf16[2,4,9,9,4], index: 0, kind: input, shape index: {}]   ;;  %s2496_s1 = inlined_call_operand.vmem [shape: bf16[36,128], index: 1, kind: input, shape index: {}]   ;;  %s2497_s2 = inlined_call_operand.vmem [shape: bf16[4,128], index: 2, kind: input, shape index: {}]   ;;  %s2498_s3 = inlined_call_operand.vmem [shape: bf16[2,64,128], index: 3, kind: output, shape index: {0}]   ;;  %s2499_s4 = inlined_call_operand.vmem [shape: bf16[2,64,128], index: 4, kind: output, shape index: {1}]   ;;  %s2500_s5 = inlined_call_operand.vmem [shape: f32[2,1,128], index: 5, kind: output, shape index: {2}]   ;;  %s2501_s6 = inlined_call_operand.vmem [shape: f32[2,1,128], index: 6, kind: output, shape index: {3}]   ;;  %s2502_s7 = inlined_call_operand.vmem [shape: f32[2,1,128], index: 7, kind: output, shape index: {4}]   ;;  %s2503_s8 = inlined_call_operand.vmem [shape: f32[2,1,128], index: 8, kind: output, shape index: {5}]  }
   0x1 LB: > { %s1792_s28 = sadd.s32 4294967295, %s2129_s27   ;;  %p1796_p0 = scmp.ge.s32.totalorder %s2129_s27, 1  ;;  %s2129_s27 = sphi %s2176_s27, %s19_s27  }
   0x2   : > { %p273_p1 = scmp.lt.s32.totalorder %s2129_s27, 3 }
   0x4   : > { %p274_p2 = pnand %p1796_p0, %p273_p1 }
   0x5   : > { %p324_p3 = scmp.lt.s32.totalorder (!%p274_p2), %s1792_s28, 1 }
   0x6   : > { %277 = sbr.rel (%p274_p2) target bundleno = 329 (0x149), region = 32 }
   0xb   : > { %v360_v0 = vld [vmem:[%s2496_s1] sm:$0x3]  ;;  %vm408_vm0 = vcmask 1041408   ;;  %v370_v1 = vld [vmem:[%s2496_s1] sm:$0xc]  ;;  %s2507_s28 = smov (!%p324_p3, %s1792_s28), 1 }
   0xc   : > { %v474_v2 = vsel %vm408_vm0, %v360_v0, 0  ;;  %v392_v3 = vunpack.c.l.b16 %v370_v1  ;;  %v710_v4 = vld [vmem:[%s2496_s1 + $0x4] sm:$0xc]  ;;  %v997_v6 = vld [vmem:[%s2496_s1 + $0x8] sm:$0xc]  ;;  %s2114_s19 = smul.u32 288, %s2507_s28  ;;  %s347_s20 = scalar_lea.vmem %s2502_s7, %s2507_s28 }
   0xd   : > { %483 = vmatpush.bf16.msra.mxu1 %v474_v2  ;;  %2113 = vmatpush.bf16.msra.mxu3 %v474_v2  ;;  %v732_v5 = vunpack.c.l.b16 %v710_v4  ;;  %v636_v8 = vld [vmem:[%s2496_s1 + $0x4] sm:$0x3]  ;;  %v796_v9 = vld [vmem:[%s2496_s1 + $0x8] sm:$0x3]  ;;  %v1011_v10 = vunpack.c.l.b16 %v997_v6  ;;  %vm395_vm1 = vcmask 31744   ;;  %s2036_s11 = sshll.u32 %s2507_s28, 5  ;;  %s350_s23 = scalar_lea.vmem %s2503_s8, %s2507_s28 }
   0xe   : > { %v393_v7 = vpack.c.b16 %v392_v3, %v392_v3  ;;  %s2209_s22 = scalar_lea.vmem %s2495_s0, %s2114_s19  ;;  %v662_v14 = vsel %vm408_vm0, %v636_v8, 0  ;;  %v830_v16 = vsel %vm408_vm0, %v796_v9, 0  ;;  %vm521_vm2 = vsmask.f32 3328  ;;  %v1075_v58 = vld [vmem:[%s2496_s1 + $0xc] sm:$0x3]  ;;  %s2454_s14 = scalar_lea.vmem %s2499_s4, %s2036_s11 }
   0xf   : > { %v733_v11 = vpack.c.b16 %v732_v5, %v732_v5  ;;  %v1012_v13 = vpack.c.b16 %v1011_v10, %v1011_v10  ;;  %v1832_v18 = vld [vmem:[%s2209_s22] sm:$0xf]  ;;  %v2038_v19 = vld [vmem:[%s2209_s22 + $0x4] sm:$0xf0]  ;;  %v2044_v26 = vld [vmem:[%s2209_s22 + $0x6c] sm:$0xf0]  ;;  %s2461_s17 = scalar_lea.vmem %s2498_s3, %s2036_s11  ;;  %s341_s26 = scalar_lea.vmem %s2500_s5, %s2507_s28 }
  0x10   : > { %v394_v12 = vrot.slane %v393_v7, 2  ;;  %v1833_v21 = vor.u32 %v2038_v19, %v1832_v18  ;;  %v1840_v22 = vld [vmem:[%s2209_s22 + $0x20] sm:$0xf]  ;;  %v2040_v23 = vld [vmem:[%s2209_s22 + $0x24] sm:$0xf0]  ;;  %v1109_v9 = vsel %vm408_vm0, %v1075_v58, 0  ;;  %s344_s9 = scalar_lea.vmem %s2501_s6, %s2507_s28 }
  0x11   : > { %v734_v15 = vrot.slane %v733_v11, 2  ;;  %v1013_v20 = vrot.slane %v1012_v13, 2  ;;  %v1820_v24 = vld [vmem:[%s2209_s22 + $0x68] sm:$0xf]  ;;  %v1841_v25 = vor.u32 %v2040_v23, %v1840_v22  ;;  %v2042_v28 = vld [vmem:[%s2209_s22 + $0x4c] sm:$0xf0] }
  0x12   : > { %v410_v17 = vsel %vm408_vm0, %v394_v12, 0  ;;  %v1812_v27 = vld [vmem:[%s2209_s22 + $0x48] sm:$0xf]  ;;  %1846 = vmatmul.msk.bf16.vlgmr.msra.gmra.mxu1 %vm395_vm1, %v1833_v21  ;;  %v1821_v29 = vor.u32 %v2044_v26, %v1820_v24  ;;  %v1910_v33 = vld [vmem:[%s2209_s22 + $0x90] sm:$0xf] }
  0x13   : > { %2112 = vmatpush.bf16.msra.mxu2 %v410_v17  ;;  %419 = vmatpush.bf16.msra.mxu0 %v410_v17  ;;  %v1813_v30 = vor.u32 %v2042_v28, %v1812_v27  ;;  %v748_v31 = vsel %vm408_vm0, %v734_v15, 0  ;;  %v1027_v32 = vsel %vm408_vm0, %v1013_v20, 0  ;;  %v1912_v34 = vld [vmem:[%s2209_s22 + $0x98] sm:$0xf]  ;;  %v1836_v35 = vld [vmem:[%s2209_s22 + $0x10] sm:$0xf] }
  0x14   : > { %1848 = vmatmul.msk.bf16.vlgmr.msra.gmra.mxu3 %vm395_vm1, %v1841_v25  ;;  %1036 = vmatpush.bf16.msrb.mxu1 %v1027_v32  ;;  %v2039_v36 = vld [vmem:[%s2209_s22 + $0x14] sm:$0xf0]  ;;  %v886_v37 = vshrl.u32 %v1910_v33, 16  ;;  %v889_v38 = vshll.u32 %v1910_v33, 16  ;;  %v900_v39 = vshrl.u32 %v1912_v34, 16  ;;  %v903_v43 = vshll.u32 %v1912_v34, 16 }
  0x15   : > { %757 = vmatpush.bf16.msrb.mxu3 %v748_v31  ;;  %v505_v40 = vld [vmem:[%s2209_s22] sm:$0xf]  ;;  %v1844_v41 = vld [vmem:[%s2209_s22 + $0x30] sm:$0xf]  ;;  %v2041_v42 = vld [vmem:[%s2209_s22 + $0x34] sm:$0xf0]  ;;  %v1837_v59 = vor.u32 %v2039_v36, %v1836_v35 }
  0x16   : > { %1828 = vmatmul.msk.bf16.vlgmr.msra.gmra.mxu2 %vm395_vm1, %v1821_v29  ;;  %1826 = vmatmul.msk.bf16.vlgmr.msra.gmra.mxu0 %vm395_vm1, %v1813_v30  ;;  %v507_v44 = vld [vmem:[%s2209_s22 + $0x8] sm:$0xf]  ;;  %v1824_v45 = vld [vmem:[%s2209_s22 + $0x78] sm:$0xf]  ;;  %v2045_v46 = vld [vmem:[%s2209_s22 + $0x7c] sm:$0xf0]  ;;  %v1845_v0 = vor.u32 %v2041_v42, %v1844_v41 }
  0x17   : > { %671 = vmatpush.bf16.msrb.mxu2 %v662_v14  ;;  %839 = vmatpush.bf16.msrb.mxu0 %v830_v16  ;;  %v1911_v47 = vld [vmem:[%s2209_s22 + $0x94] sm:$0x1]  ;;  %v1913_v48 = vld [vmem:[%s2209_s22 + $0x9c] sm:$0x1]  ;;  %v888_v49 = vrot.slane %v886_v37, 4  ;;  %v891_v50 = vrot.slane %v889_v38, 5  ;;  %v1825_v1 = vor.u32 %v2045_v46, %v1824_v45 }
  0x18   : > { %v525_v51 = vshrl.u32 %v505_v40, 16  ;;  %v528_v52 = vshll.u32 %v505_v40, 16  ;;  %v1816_v53 = vld [vmem:[%s2209_s22 + $0x58] sm:$0xf]  ;;  %v902_v54 = vrot.slane %v900_v39, 4  ;;  %v905_v55 = vrot.slane %v903_v43, 5 }
  0x19   : > { %v539_v56 = vshrl.u32 %v507_v44, 16  ;;  %v542_v57 = vshll.u32 %v507_v44, 16  ;;  %v506_v60 = vld [vmem:[%s2209_s22 + $0x4] sm:$0x1]  ;;  %v508_v61 = vld [vmem:[%s2209_s22 + $0xc] sm:$0x1]  ;;  %v892_v6 = vor.u32 %v891_v50, %v888_v49 }
  0x1a   : > { %v527_v62 = vrot.slane %v525_v51, 4  ;;  %v530_v63 = vrot.slane %v528_v52, 5  ;;  %v2043_v2 = vld [vmem:[%s2209_s22 + $0x5c] sm:$0xf0]  ;;  %v1157_v5 = vld [vmem:[%s2496_s1 + $0xc] sm:$0xc]  ;;  %v906_v11 = vor.u32 %v905_v55, %v902_v54 }
  0x1b   : > { %v541_v3 = vrot.slane %v539_v56, 4  ;;  %v544_v4 = vrot.slane %v542_v57, 5  ;;  %v895_v7 = vshll.u32 %v1911_v47, 16  ;;  %v909_v8 = vshll.u32 %v1913_v48, 16  ;;  %v1362_v10 = vld [vmem:[%s2496_s1 + $0x10] sm:$0x3]  ;;  %1118 = vmatpush.bf16.msra.mxu2 %v1109_v9 }
  0x1c   : > { %v534_v12 = vshll.u32 %v506_v60, 16  ;;  %v548_v13 = vshll.u32 %v508_v61, 16  ;;  %v1179_v14 = vunpack.c.l.b16 %v1157_v5  ;;  %v1487_v15 = vld [vmem:[%s2497_s2] sm:$0x3]  ;;  %v1817_v16 = vor.u32 %v2043_v2, %v1816_v53  ;;  %v1916_v30 = vld [vmem:[%s2209_s22 + $0xa8] sm:$0xf] }
  0x1d   : > { %v531_v17 = vor.u32 %v530_v63, %v527_v62  ;;  %v545_v18 = vor.u32 %v544_v4, %v541_v3  ;;  %v1388_v19 = vsel %vm408_vm0, %v1362_v10, 0  ;;  %vm522_vm3 = vsmask.f32 7440  ;;  %v1914_v22 = vld [vmem:[%s2209_s22 + $0xa0] sm:$0xf] }
  0x1e   : > { %v1180_v20 = vpack.c.b16 %v1179_v14, %v1179_v14  ;;  %1397 = vmatpush.bf16.msra.mxu0 %v1388_v19  ;;  %v1521_v21 = vsel %vm408_vm0, %v1487_v15, 0  ;;  %v893_v23 = vrot.slane %v892_v6, 4  ;;  %v897_v24 = vrot.slane %v895_v7, 5  ;;  %vm2267_vm4 = vmor %vm521_vm2, %vm522_vm3  ;;  %v509_v39 = vld [vmem:[%s2209_s22 + $0x10] sm:$0xf] }
  0x1f   : > { %v911_v25 = vrot.slane %v909_v8, 5  ;;  %v907_v26 = vrot.slane %v906_v11, 4  ;;  %v536_v27 = vrot.slane %v534_v12, 5  ;;  %v550_v28 = vrot.slane %v548_v13, 5  ;;  %1530 = vmatpush.bf16.msra.mxu1 %v1521_v21  ;;  %v511_v40 = vld [vmem:[%s2209_s22 + $0x18] sm:$0xf] }
  0x20   : > { %v1181_v29 = vrot.slane %v1180_v20, 2  ;;  %v532_v32 = vrot.slane %v531_v17, 4  ;;  %v546_v33 = vrot.slane %v545_v18, 4  ;;  %v914_v34 = vshrl.u32 %v1914_v22, 16  ;;  %v1915_v47 = vld [vmem:[%s2209_s22 + $0xa4] sm:$0x1] }
  0x21   : > { %v917_v35 = vshll.u32 %v1914_v22, 16  ;;  %v928_v37 = vshrl.u32 %v1916_v30, 16  ;;  %v931_v38 = vshll.u32 %v1916_v30, 16  ;;  %v898_v41 = vsel %vm2267_vm4, %v893_v23, %v897_v24  ;;  %v1864_v56 = vld [vmem:[%s2209_s22 + $0x90] sm:$0xf] }
  0x22   : > { %1847 = vmatmul.msk.bf16.gmra.mxu1 %vm395_vm1, %v1837_v59  ;;  %v1195_v36 = vsel %vm408_vm0, %v1181_v29, 0  ;;  %v912_v42 = vsel %vm2267_vm4, %v907_v26, %v911_v25  ;;  %v537_v43 = vsel %vm2267_vm4, %v532_v32, %v536_v27  ;;  %v551_v44 = vsel %vm2267_vm4, %v546_v33, %v550_v28  ;;  %v2046_v57 = vld [vmem:[%s2209_s22 + $0x94] sm:$0xf0]  ;;  %v1917_v58 = vld [vmem:[%s2209_s22 + $0xac] sm:$0x1] }
  0x23   : > { %1204 = vmatpush.bf16.msra.mxu3 %v1195_v36  ;;  %v916_v45 = vrot.slane %v914_v34, 4  ;;  %v919_v46 = vrot.slane %v917_v35, 5  ;;  %v553_v48 = vshrl.u32 %v509_v39, 16  ;;  %v556_v49 = vshll.u32 %v509_v39, 16  ;;  %v1892_v61 = vld [vmem:[%s2209_s22 + $0xd8] sm:$0xf] }
  0x24   : > { %1849 = vmatmul.msk.bf16.gmra.mxu3 %vm395_vm1, %v1845_v0  ;;  %v567_v50 = vshrl.u32 %v511_v40, 16  ;;  %v570_v51 = vshll.u32 %v511_v40, 16  ;;  %v998_v52 = vunpack.c.l.b16 %v898_v41  ;;  %v999_v53 = vunpack.c.l.b16 %v912_v42  ;;  %v2050_v62 = vld [vmem:[%s2209_s22 + $0xdc] sm:$0xf0]  ;;  %v512_v9 = vld [vmem:[%s2209_s22 + $0x1c] sm:$0x1] }
  0x25   : > { %v930_v54 = vrot.slane %v928_v37, 4  ;;  %v933_v55 = vrot.slane %v931_v38, 5  ;;  %v637_v59 = vunpack.c.l.b16 %v537_v43  ;;  %v638_v60 = vunpack.c.l.b16 %v551_v44  ;;  %v1918_v21 = vld [vmem:[%s2209_s22 + $0xb0] sm:$0xf]  ;;  %v1920_v22 = vld [vmem:[%s2209_s22 + $0xb8] sm:$0xf] }
  0x26   : > { %1829 = vmatmul.msk.bf16.gmra.mxu2 %vm395_vm1, %v1825_v1  ;;  %1827 = vmatmul.msk.bf16.gmra.mxu0 %vm395_vm1, %v1817_v16  ;;  %v920_v63 = vor.u32 %v919_v46, %v916_v45  ;;  %v923_v0 = vshll.u32 %v1915_v47, 16  ;;  %v510_v1 = vld [vmem:[%s2209_s22 + $0x14] sm:$0x1]  ;;  %v555_v2 = vrot.slane %v553_v48, 4  ;;  %v558_v3 = vrot.slane %v556_v49, 5 }
  0x27   : > { %v569_v4 = vrot.slane %v567_v50, 4  ;;  %v572_v5 = vrot.slane %v570_v51, 5  ;;  %v1006_v6 = vpack.c.b16 %v999_v53, %v998_v52  ;;  %v934_v7 = vor.u32 %v933_v55, %v930_v54  ;;  %v513_v25 = vld [vmem:[%s2209_s22 + $0x20] sm:$0xf]  ;;  %v515_v30 = vld [vmem:[%s2209_s22 + $0x28] sm:$0xf] }
  0x28   : > { %v937_v8 = vshll.u32 %v1917_v58, 16  ;;  %v1865_v10 = vor.u32 %v2046_v57, %v1864_v56  ;;  %v1893_v11 = vor.u32 %v2050_v62, %v1892_v61  ;;  %v645_v12 = vpack.c.b16 %v638_v60, %v637_v59  ;;  %v1868_v44 = vld [vmem:[%s2209_s22 + $0xa0] sm:$0xf]  ;;  %v1919_v45 = vld [vmem:[%s2209_s22 + $0xb4] sm:$0x1] }
  0x29   : > { %v921_v13 = vrot.slane %v920_v63, 4  ;;  %v925_v14 = vrot.slane %v923_v0, 5  ;;  %v562_v15 = vshll.u32 %v510_v1, 16  ;;  %v559_v16 = vor.u32 %v558_v3, %v555_v2  ;;  %v2047_v50 = vld [vmem:[%s2209_s22 + $0xa4] sm:$0xf0] }
  0x2a   : > { %v573_v17 = vor.u32 %v572_v5, %v569_v4  ;;  %v576_v18 = vshll.u32 %v512_v9, 16  ;;  %v935_v19 = vrot.slane %v934_v7, 4  ;;  %v939_v20 = vrot.slane %v937_v8, 5  ;;  %v1921_v51 = vld [vmem:[%s2209_s22 + $0xbc] sm:$0x1] }
  0x2b   : > { %v926_v23 = vsel %vm2267_vm4, %v921_v13, %v925_v14  ;;  %v564_v24 = vrot.slane %v562_v15, 5  ;;  %v560_v26 = vrot.slane %v559_v16, 4  ;;  %v942_v29 = vshrl.u32 %v1918_v21, 16  ;;  %v1896_v56 = vld [vmem:[%s2209_s22 + $0xe8] sm:$0xf] }
  0x2c   : > { %v574_v27 = vrot.slane %v573_v17, 4  ;;  %v578_v28 = vrot.slane %v576_v18, 5  ;;  %v940_v32 = vsel %vm2267_vm4, %v935_v19, %v939_v20  ;;  %v945_v33 = vshll.u32 %v1918_v21, 16  ;;  %v514_v57 = vld [vmem:[%s2209_s22 + $0x24] sm:$0x1] }
  0x2d   : > { %v956_v34 = vshrl.u32 %v1920_v22, 16  ;;  %v959_v35 = vshll.u32 %v1920_v22, 16  ;;  %v581_v36 = vshrl.u32 %v513_v25, 16  ;;  %v584_v37 = vshll.u32 %v513_v25, 16  ;;  %v2051_v60 = vld [vmem:[%s2209_s22 + $0xec] sm:$0xf0] }
  0x2e   : > { %v595_v38 = vshrl.u32 %v515_v30, 16  ;;  %v598_v39 = vshll.u32 %v515_v30, 16  ;;  %v1000_v40 = vunpack.c.l.b16 %v926_v23  ;;  %v1001_v41 = vunpack.c.l.b16 %v940_v32  ;;  %v516_v62 = vld [vmem:[%s2209_s22 + $0x2c] sm:$0x1]  ;;  %v1922_v16 = vld [vmem:[%s2209_s22 + $0xc0] sm:$0xf] }
  0x2f   : > { %v565_v42 = vsel %vm2267_vm4, %v560_v26, %v564_v24  ;;  %v579_v43 = vsel %vm2267_vm4, %v574_v27, %v578_v28  ;;  %v944_v46 = vrot.slane %v942_v29, 4  ;;  %v947_v47 = vrot.slane %v945_v33, 5  ;;  %v1924_v19 = vld [vmem:[%s2209_s22 + $0xc8] sm:$0xf]  ;;  %v517_v20 = vld [vmem:[%s2209_s22 + $0x30] sm:$0xf] }
  0x30   : > { %v958_v48 = vrot.slane %v956_v34, 4  ;;  %v961_v49 = vrot.slane %v959_v35, 5  ;;  %v583_v52 = vrot.slane %v581_v36, 4  ;;  %v586_v53 = vrot.slane %v584_v37, 5  ;;  %v519_v21 = vld [vmem:[%s2209_s22 + $0x38] sm:$0xf] }
  0x31   : > { %v639_v54 = vunpack.c.l.b16 %v565_v42  ;;  %v640_v55 = vunpack.c.l.b16 %v579_v43  ;;  %v597_v58 = vrot.slane %v595_v38, 4  ;;  %v600_v59 = vrot.slane %v598_v39, 5  ;;  %v1872_v35 = vld [vmem:[%s2209_s22 + $0xb0] sm:$0xf]  ;;  %v2048_v36 = vld [vmem:[%s2209_s22 + $0xb4] sm:$0xf0] }
  0x32   : > { %1926 = vmatmul.msk.bf16.vlgmr.msrb.gmra.mxu1 %vm395_vm1, %v1006_v6  ;;  %v951_v61 = vshll.u32 %v1919_v45, 16  ;;  %v1007_v63 = vpack.c.b16 %v1001_v41, %v1000_v40  ;;  %v948_v0 = vor.u32 %v947_v47, %v944_v46  ;;  %v962_v1 = vor.u32 %v961_v49, %v958_v48  ;;  %v1900_v39 = vld [vmem:[%s2209_s22 + $0xf8] sm:$0xf]  ;;  %v2052_v40 = vld [vmem:[%s2209_s22 + $0xfc] sm:$0xf0] }
  0x33   : > { %v965_v2 = vshll.u32 %v1921_v51, 16  ;;  %v1869_v3 = vor.u32 %v2047_v50, %v1868_v44  ;;  %v587_v4 = vor.u32 %v586_v53, %v583_v52  ;;  %v590_v5 = vshll.u32 %v514_v57, 16  ;;  %v1923_v45 = vld [vmem:[%s2209_s22 + $0xc4] sm:$0x1]  ;;  %v1925_v46 = vld [vmem:[%s2209_s22 + $0xcc] sm:$0x1] }
  0x34   : > { %1878 = vmatmul.msk.bf16.vlgmr.msrb.gmra.mxu3 %vm395_vm1, %v1865_v10  ;;  %v646_v6 = vpack.c.b16 %v640_v55, %v639_v54  ;;  %v1897_v7 = vor.u32 %v2051_v60, %v1896_v56  ;;  %v601_v8 = vor.u32 %v600_v59, %v597_v58  ;;  %v604_v9 = vshll.u32 %v516_v62, 16  ;;  %v518_v49 = vld [vmem:[%s2209_s22 + $0x34] sm:$0x1]  ;;  %v520_v54 = vld [vmem:[%s2209_s22 + $0x3c] sm:$0x1] }
  0x35   : > { %v949_v10 = vrot.slane %v948_v0, 4  ;;  %v967_v13 = vrot.slane %v965_v2, 5  ;;  %v588_v14 = vrot.slane %v587_v4, 4  ;;  %v592_v15 = vrot.slane %v590_v5, 5 }
  0x36   : > { %1850 = vmatmul.msk.bf16.vlgmr.msrb.gmra.mxu2 %vm395_vm1, %v645_v12  ;;  %1906 = vmatmul.msk.bf16.vlgmr.msrb.gmra.mxu0 %vm395_vm1, %v1893_v11  ;;  %v953_v11 = vrot.slane %v951_v61, 5  ;;  %v963_v12 = vrot.slane %v962_v1, 4  ;;  %v602_v17 = vrot.slane %v601_v8, 4  ;;  %v606_v18 = vrot.slane %v604_v9, 5 }
  0x37   : > { %v970_v24 = vshrl.u32 %v1922_v16, 16  ;;  %v973_v25 = vshll.u32 %v1922_v16, 16  ;;  %v593_v26 = vsel %vm2267_vm4, %v588_v14, %v592_v15  ;;  %v984_v27 = vshrl.u32 %v1924_v19, 16 }
  0x38   : > { %v954_v22 = vsel %vm2267_vm4, %v949_v10, %v953_v11  ;;  %v968_v23 = vsel %vm2267_vm4, %v963_v12, %v967_v13  ;;  %v987_v28 = vshll.u32 %v1924_v19, 16  ;;  %v609_v29 = vshrl.u32 %v517_v20, 16  ;;  %v1986_v11 = vld [vmem:[%s2209_s22 + $0x8] sm:$0xf]  ;;  %v1988_v12 = vld [vmem:[%s2209_s22 + $0x10] sm:$0xf] }
  0x39   : > { %v607_v30 = vsel %vm2267_vm4, %v602_v17, %v606_v18  ;;  %v612_v32 = vshll.u32 %v517_v20, 16  ;;  %v623_v33 = vshrl.u32 %v519_v21, 16  ;;  %v626_v34 = vshll.u32 %v519_v21, 16 }
  0x3a   : > { %v1002_v37 = vunpack.c.l.b16 %v954_v22  ;;  %v1003_v38 = vunpack.c.l.b16 %v968_v23  ;;  %v972_v41 = vrot.slane %v970_v24, 4  ;;  %v975_v42 = vrot.slane %v973_v25, 5  ;;  %v1876_v23 = vld [vmem:[%s2209_s22 + $0xc0] sm:$0xf]  ;;  %v2049_v24 = vld [vmem:[%s2209_s22 + $0xc4] sm:$0xf0] }
  0x3b   : > { %v641_v43 = vunpack.c.l.b16 %v593_v26  ;;  %v642_v44 = vunpack.c.l.b16 %v607_v30  ;;  %v986_v47 = vrot.slane %v984_v27, 4  ;;  %v989_v48 = vrot.slane %v987_v28, 5  ;;  %v1904_v27 = vld [vmem:[%s2209_s22 + $0x108] sm:$0xf]  ;;  %v2053_v28 = vld [vmem:[%s2209_s22 + $0x10c] sm:$0xf0] }
  0x3c   : > { %v611_v50 = vrot.slane %v609_v29, 4  ;;  %v614_v51 = vrot.slane %v612_v32, 5  ;;  %v625_v52 = vrot.slane %v623_v33, 4  ;;  %v628_v53 = vrot.slane %v626_v34, 5 }
  0x3d   : > { %v1873_v55 = vor.u32 %v2048_v36, %v1872_v35  ;;  %v1008_v56 = vpack.c.b16 %v1003_v38, %v1002_v37  ;;  %v1901_v57 = vor.u32 %v2052_v40, %v1900_v39  ;;  %v979_v58 = vshll.u32 %v1923_v45, 16  ;;  %v1987_v35 = vld [vmem:[%s2209_s22 + $0xc] sm:$0x1]  ;;  %v1989_v36 = vld [vmem:[%s2209_s22 + $0x14] sm:$0x1] }
  0x3e   : > { %v976_v59 = vor.u32 %v975_v42, %v972_v41  ;;  %v990_v60 = vor.u32 %v989_v48, %v986_v47  ;;  %v993_v61 = vshll.u32 %v1925_v46, 16  ;;  %v618_v62 = vshll.u32 %v518_v49, 16  ;;  %v1992_v45 = vld [vmem:[%s2209_s22 + $0x20] sm:$0xf] }
  0x3f   : > { %v615_v0 = vor.u32 %v614_v51, %v611_v50  ;;  %v629_v1 = vor.u32 %v628_v53, %v625_v52  ;;  %v632_v2 = vshll.u32 %v520_v54, 16  ;;  %v981_v4 = vrot.slane %v979_v58, 5  ;;  %v2016_v58 = vld [vmem:[%s2209_s22 + $0xd8] sm:$0xf] }
  0x40   : > { %v991_v5 = vrot.slane %v990_v60, 4  ;;  %v620_v8 = vrot.slane %v618_v62, 5  ;;  %v1251_v17 = vshrl.u32 %v1986_v11, 16  ;;  %v1254_v18 = vshll.u32 %v1986_v11, 16 }
  0x41   : > { %v630_v9 = vrot.slane %v629_v1, 4  ;;  %v634_v10 = vrot.slane %v632_v2, 5  ;;  %v1265_v19 = vshrl.u32 %v1988_v12, 16  ;;  %v1268_v20 = vshll.u32 %v1988_v12, 16  ;;  %v1991_v2 = vld [vmem:[%s2209_s22 + $0x1c] sm:$0x1] }
  0x42   : > { %1927 = vmatmul.msk.bf16.gmra.mxu1 %vm395_vm1, %v1007_v63  ;;  %v647_v63 = vpack.c.b16 %v642_v44, %v641_v43  ;;  %v1253_v29 = vrot.slane %v1251_v17, 4  ;;  %v1256_v30 = vrot.slane %v1254_v18, 5  ;;  %v1877_v37 = vor.u32 %v2049_v24, %v1876_v23  ;;  %v1990_v44 = vld [vmem:[%s2209_s22 + $0x18] sm:$0xf]  ;;  %v1994_v18 = vld [vmem:[%s2209_s22 + $0x28] sm:$0xf] }
  0x43   : > { %v635_v16 = vsel %vm2267_vm4, %v630_v9, %v634_v10  ;;  %v1267_v32 = vrot.slane %v1265_v19, 4  ;;  %v1270_v33 = vrot.slane %v1268_v20, 5  ;;  %v1905_v39 = vor.u32 %v2053_v28, %v1904_v27  ;;  %v1996_v19 = vld [vmem:[%s2209_s22 + $0x30] sm:$0xf]  ;;  %v2059_v27 = vld [vmem:[%s2209_s22 + $0x64] sm:$0xf0] }
  0x44   : > { %1879 = vmatmul.msk.bf16.gmra.mxu3 %vm395_vm1, %v1869_v3  ;;  %v977_v3 = vrot.slane %v976_v59, 4  ;;  %v644_v26 = vunpack.c.l.b16 %v635_v16  ;;  %v1257_v40 = vor.u32 %v1256_v30, %v1253_v29  ;;  %v1260_v41 = vshll.u32 %v1987_v35, 16  ;;  %v2062_v59 = vld [vmem:[%s2209_s22 + $0xdc] sm:$0xf0]  ;;  %v2020_v28 = vld [vmem:[%s2209_s22 + $0xe8] sm:$0xf] }
  0x45   : > { %v1271_v42 = vor.u32 %v1270_v33, %v1267_v32  ;;  %v1274_v43 = vshll.u32 %v1989_v36, 16  ;;  %v1279_v50 = vshrl.u32 %v1990_v44, 16  ;;  %v1282_v51 = vshll.u32 %v1990_v44, 16  ;;  %v2063_v29 = vld [vmem:[%s2209_s22 + $0xec] sm:$0xf0] }
  0x46   : > { %1851 = vmatmul.msk.bf16.gmra.mxu2 %vm395_vm1, %v646_v6  ;;  %1907 = vmatmul.msk.bf16.gmra.mxu0 %vm395_vm1, %v1897_v7  ;;  %v995_v6 = vrot.slane %v993_v61, 5  ;;  %v616_v7 = vrot.slane %v615_v0, 4  ;;  %v982_v13 = vsel %vm2267_vm4, %v977_v3, %v981_v4  ;;  %v1258_v46 = vrot.slane %v1257_v40, 4  ;;  %v1993_v3 = vld [vmem:[%s2209_s22 + $0x24] sm:$0x1] }
  0x47   : > { %v1004_v21 = vunpack.c.l.b16 %v982_v13  ;;  %v1262_v47 = vrot.slane %v1260_v41, 5  ;;  %v1272_v48 = vrot.slane %v1271_v42, 4  ;;  %v1276_v49 = vrot.slane %v1274_v43, 5  ;;  %v1940_v4 = vld [vmem:[%s2209_s22 + $0x8] sm:$0xf] }
  0x48   : > { %v996_v14 = vsel %vm2267_vm4, %v991_v5, %v995_v6  ;;  %v621_v15 = vsel %vm2267_vm4, %v616_v7, %v620_v8  ;;  %v1293_v52 = vshrl.u32 %v1992_v45, 16  ;;  %v1296_v53 = vshll.u32 %v1992_v45, 16  ;;  %v2054_v5 = vld [vmem:[%s2209_s22 + $0xc] sm:$0xf0]  ;;  %v1944_v30 = vld [vmem:[%s2209_s22 + $0x18] sm:$0xf] }
  0x49   : > { %v1005_v22 = vunpack.c.l.b16 %v996_v14  ;;  %v643_v25 = vunpack.c.l.b16 %v621_v15  ;;  %v1263_v54 = vsel %vm2267_vm4, %v1258_v46, %v1262_v47  ;;  %v1281_v60 = vrot.slane %v1279_v50, 4  ;;  %v1997_v40 = vld [vmem:[%s2209_s22 + $0x34] sm:$0x1] }
  0x4a   : > { %v1284_v61 = vrot.slane %v1282_v51, 5  ;;  %v1295_v62 = vrot.slane %v1293_v52, 4  ;;  %v1363_v0 = vunpack.c.l.b16 %v1263_v54  ;;  %v2017_v7 = vor.u32 %v2062_v59, %v2016_v58  ;;  %v2000_v54 = vld [vmem:[%s2209_s22 + $0x40] sm:$0xf] }
  0x4b   : > { %v1009_v34 = vpack.c.b16 %v1005_v22, %v1004_v21  ;;  %v648_v38 = vpack.c.b16 %v644_v26, %v643_v25  ;;  %v1288_v9 = vshll.u32 %v1991_v2, 16  ;;  %v1302_v11 = vshll.u32 %v1993_v3, 16  ;;  %v1972_v26 = vld [vmem:[%s2209_s22 + $0x60] sm:$0xf] }
  0x4c   : > { %v1285_v8 = vor.u32 %v1284_v61, %v1281_v60  ;;  %v1941_v12 = vor.u32 %v2054_v5, %v1940_v4  ;;  %v1307_v22 = vshrl.u32 %v1994_v18, 16  ;;  %v1310_v23 = vshll.u32 %v1994_v18, 16  ;;  %v2024_v61 = vld [vmem:[%s2209_s22 + $0xf8] sm:$0xf]  ;;  %v2056_v4 = vld [vmem:[%s2209_s22 + $0x2c] sm:$0xf0] }
  0x4d   : > { %v1290_v15 = vrot.slane %v1288_v9, 5  ;;  %v1304_v17 = vrot.slane %v1302_v11, 5  ;;  %v1321_v24 = vshrl.u32 %v1996_v19, 16  ;;  %v1324_v25 = vshll.u32 %v1996_v19, 16  ;;  %v2001_v11 = vld [vmem:[%s2209_s22 + $0x44] sm:$0x1] }
  0x4e   : > { %v1286_v14 = vrot.slane %v1285_v8, 4  ;;  %v1309_v35 = vrot.slane %v1307_v22, 4  ;;  %v1312_v36 = vrot.slane %v1310_v23, 5  ;;  %v2021_v41 = vor.u32 %v2063_v29, %v2020_v28 }
  0x4f   : > { %v1973_v42 = vor.u32 %v2059_v27, %v1972_v26  ;;  %v1349_v59 = vshrl.u32 %v2000_v54, 16  ;;  %v1352_v60 = vshll.u32 %v2000_v54, 16 }
  0x50   : > { %v1291_v20 = vsel %vm2267_vm4, %v1286_v14, %v1290_v15  ;;  %v1313_v45 = vor.u32 %v1312_v36, %v1309_v35  ;;  %v2028_v35 = vld [vmem:[%s2209_s22 + $0x108] sm:$0xf]  ;;  %v2065_v36 = vld [vmem:[%s2209_s22 + $0x10c] sm:$0xf0] }
  0x51   : > { %v1365_v32 = vunpack.c.l.b16 %v1291_v20  ;;  %v1354_v8 = vrot.slane %v1352_v60, 5  ;;  %v1358_v20 = vshll.u32 %v2001_v11, 16 }
  0x52   : > { %1928 = vmatmul.msk.bf16.gmra.mxu1 %vm395_vm1, %v1008_v56  ;;  %v1968_v56 = vld [vmem:[%s2209_s22 + $0x50] sm:$0xf] }
  0x54   : > { %1880 = vmatmul.msk.bf16.gmra.mxu3 %vm395_vm1, %v1873_v55  ;;  %v1277_v55 = vsel %vm2267_vm4, %v1272_v48, %v1276_v49  ;;  %v1330_v48 = vshll.u32 %v1997_v40, 16  ;;  %v1314_v49 = vrot.slane %v1313_v45, 4 }
  0x55   : > { %v1364_v1 = vunpack.c.l.b16 %v1277_v55 }
  0x56   : > { %1852 = vmatmul.msk.bf16.gmra.mxu2 %vm395_vm1, %v647_v63  ;;  %1908 = vmatmul.msk.bf16.gmra.mxu0 %vm395_vm1, %v1901_v57  ;;  %v2058_v57 = vld [vmem:[%s2209_s22 + $0x54] sm:$0xf0]  ;;  %v1298_v63 = vrot.slane %v1296_v53, 5  ;;  %v1332_v52 = vrot.slane %v1330_v48, 5 }
  0x57   : > { %v1969_v6 = vor.u32 %v2058_v57, %v1968_v56  ;;  %v1371_v13 = vpack.c.b16 %v1364_v1, %v1363_v0  ;;  %v1998_v53 = vld [vmem:[%s2209_s22 + $0x38] sm:$0xf]  ;;  %v1948_v1 = vld [vmem:[%s2209_s22 + $0x28] sm:$0xf] }
  0x58   : > { %v1299_v10 = vor.u32 %v1298_v63, %v1295_v62  ;;  %v1335_v57 = vshrl.u32 %v1998_v53, 16  ;;  %v1338_v58 = vshll.u32 %v1998_v53, 16  ;;  %v2064_v62 = vld [vmem:[%s2209_s22 + $0xfc] sm:$0xf0]  ;;  %v1976_v63 = vld [vmem:[%s2209_s22 + $0x70] sm:$0xf]  ;;  %v1949_v14 = vor.u32 %v2056_v4, %v1948_v1 }
  0x59   : > { %v2060_v0 = vld [vmem:[%s2209_s22 + $0x74] sm:$0xf0]  ;;  %v2025_v9 = vor.u32 %v2064_v62, %v2024_v61 }
  0x5a   : > { %v1300_v16 = vrot.slane %v1299_v10, 4  ;;  %v1337_v5 = vrot.slane %v1335_v57, 4  ;;  %v1999_v10 = vld [vmem:[%s2209_s22 + $0x3c] sm:$0x1] }
  0x5b   : > { %v1344_v18 = vshll.u32 %v1999_v10, 16 }
  0x5c   : > { %v1305_v21 = vsel %vm2267_vm4, %v1300_v16, %v1304_v17 }
  0x5d   : > { %v1366_v33 = vunpack.c.l.b16 %v1305_v21  ;;  %v1346_v23 = vrot.slane %v1344_v18, 5 }
  0x5f   : > { %v1372_v44 = vpack.c.b16 %v1366_v33, %v1365_v32 }
  0x62   : > { %1929 = vmatmul.msk.bf16.gmra.mxu1 %vm395_vm1, %v1009_v34  ;;  %v2055_v34 = vld [vmem:[%s2209_s22 + $0x1c] sm:$0xf0] }
  0x63   : > { %v1945_v43 = vor.u32 %v2055_v34, %v1944_v30 }
  0x64   : > { %1881 = vmatmul.msk.bf16.gmra.mxu3 %vm395_vm1, %v1877_v37  ;;  %v1323_v37 = vrot.slane %v1321_v24, 4 }
  0x66   : > { %1853 = vmatmul.msk.bf16.gmra.mxu2 %vm395_vm1, %v648_v38  ;;  %1909 = vmatmul.msk.bf16.gmra.mxu0 %vm395_vm1, %v1905_v39  ;;  %v1326_v38 = vrot.slane %v1324_v25, 5  ;;  %v1995_v39 = vld [vmem:[%s2209_s22 + $0x2c] sm:$0x1]  ;;  %v1360_v25 = vrot.slane %v1358_v20, 5 }
  0x67   : > { %v1316_v46 = vshll.u32 %v1995_v39, 16 }
  0x68   : > { %v1327_v47 = vor.u32 %v1326_v38, %v1323_v37  ;;  %v1980_v37 = vld [vmem:[%s2209_s22 + $0x80] sm:$0xf]  ;;  %v2061_v38 = vld [vmem:[%s2209_s22 + $0x84] sm:$0xf0] }
  0x69   : > { %v1318_v50 = vrot.slane %v1316_v46, 5 }
  0x6a   : > { %v1328_v51 = vrot.slane %v1327_v47, 4  ;;  %v1981_v47 = vor.u32 %v2061_v38, %v1980_v37 }
  0x6b   : > { %v1319_v55 = vsel %vm2267_vm4, %v1314_v49, %v1318_v50 }
  0x6c   : > { %v1333_v56 = vsel %vm2267_vm4, %v1328_v51, %v1332_v52  ;;  %v1367_v2 = vunpack.c.l.b16 %v1319_v55 }
  0x6d   : > { %v1368_v3 = vunpack.c.l.b16 %v1333_v56 }
  0x6f   : > { %v1373_v15 = vpack.c.b16 %v1368_v3, %v1367_v2 }
  0x72   : > { %2030 = vmatmul.msk.bf16.vlgmr.msra.gmra.mxu1 %vm395_vm1, %v2017_v7  ;;  %v1351_v7 = vrot.slane %v1349_v59, 4 }
  0x74   : > { %1982 = vmatmul.msk.bf16.vlgmr.msra.gmra.mxu3 %vm395_vm1, %v1969_v6  ;;  %v1340_v6 = vrot.slane %v1338_v58, 5  ;;  %v1355_v19 = vor.u32 %v1354_v8, %v1351_v7 }
  0x76   : > { %1954 = vmatmul.msk.bf16.vlgmr.msra.gmra.mxu2 %vm395_vm1, %v1941_v12  ;;  %2002 = vmatmul.msk.bf16.vlgmr.msra.gmra.mxu0 %vm395_vm1, %v1371_v13  ;;  %v1977_v13 = vor.u32 %v2060_v0, %v1976_v63  ;;  %v1341_v17 = vor.u32 %v1340_v6, %v1337_v5  ;;  %v1356_v24 = vrot.slane %v1355_v19, 4 }
  0x78   : > { %v1342_v22 = vrot.slane %v1341_v17, 4  ;;  %v1361_v33 = vsel %vm2267_vm4, %v1356_v24, %v1360_v25 }
  0x79   : > { %v1370_v40 = vunpack.c.l.b16 %v1361_v33 }
  0x7a   : > { %v1347_v32 = vsel %vm2267_vm4, %v1342_v22, %v1346_v23 }
  0x7b   : > { %v1369_v39 = vunpack.c.l.b16 %v1347_v32 }
  0x7d   : > { %v1374_v50 = vpack.c.b16 %v1370_v40, %v1369_v39 }
  0x82   : > { %2031 = vmatmul.msk.bf16.gmra.mxu1 %vm395_vm1, %v2021_v41  ;;  %v1952_v41 = vld [vmem:[%s2209_s22 + $0x38] sm:$0xf] }
  0x84   : > { %1983 = vmatmul.msk.bf16.gmra.mxu3 %vm395_vm1, %v1973_v42  ;;  %v2057_v42 = vld [vmem:[%s2209_s22 + $0x3c] sm:$0xf0] }
  0x85   : > { %v1953_v49 = vor.u32 %v2057_v42, %v1952_v41 }
  0x86   : > { %1955 = vmatmul.msk.bf16.gmra.mxu2 %vm395_vm1, %v1945_v43  ;;  %2003 = vmatmul.msk.bf16.gmra.mxu0 %vm395_vm1, %v1372_v44  ;;  %v2029_v44 = vor.u32 %v2065_v36, %v2028_v35 }
  0x8f   : > { %v485_v12 = vpop.f32.mrf.mxu1 }
  0x92   : > { %2032 = vmatmul.msk.bf16.gmra.mxu1 %vm395_vm1, %v2025_v9 }
  0x93   : > { %v421_v16 = vpop.f32.mrf.mxu0 }
  0x94   : > { %v486_v21 = vadd.f32 %v485_v12, %v421_v16  ;;  %1984 = vmatmul.msk.bf16.gmra.mxu3 %vm395_vm1, %v1977_v13 }
  0x96   : > { %1956 = vmatmul.msk.bf16.gmra.mxu2 %vm395_vm1, %v1949_v14  ;;  %2004 = vmatmul.msk.bf16.gmra.mxu0 %vm395_vm1, %v1373_v15 }
  0x97   : > { %v495_v26 = vpop.f32.mrf.mxu3  ;;  %v487_v28 = vpop.f32.mrf.mxu1 }
  0x99   : > { %v431_v27 = vpop.f32.mrf.mxu2 }
  0x9a   : > { %v2416_v29 = vadd.f32 %v495_v26, %v431_v27 }
  0x9b   : > { %v423_v30 = vpop.f32.mrf.mxu0 }
  0x9c   : > { %v488_v34 = vadd.f32 %v487_v28, %v423_v30 }
  0x9f   : > { %v497_v43 = vpop.f32.mrf.mxu3  ;;  %v490_v46 = vpop.f32.mrf.mxu1 }
  0xa1   : > { %v433_v45 = vpop.f32.mrf.mxu2 }
  0xa2   : > { %v2428_v48 = vadd.f32 %v497_v43, %v433_v45  ;;  %2033 = vmatmul.msk.bf16.gmra.mxu1 %vm395_vm1, %v2029_v44 }
  0xa3   : > { %v426_v31 = vpop.f32.mrf.mxu0 }
  0xa4   : > { %v491_v51 = vadd.f32 %v490_v46, %v426_v31  ;;  %1985 = vmatmul.msk.bf16.gmra.mxu3 %vm395_vm1, %v1981_v47 }
  0xa6   : > { %1957 = vmatmul.msk.bf16.gmra.mxu2 %vm395_vm1, %v1953_v49  ;;  %2005 = vmatmul.msk.bf16.gmra.mxu0 %vm395_vm1, %v1374_v50 }
  0xa7   : > { %v500_v52 = vpop.f32.mrf.mxu3  ;;  %v492_v54 = vpop.f32.mrf.mxu1 }
  0xa9   : > { %v436_v53 = vpop.f32.mrf.mxu2 }
  0xaa   : > { %v501_v55 = vadd.f32 %v500_v52, %v436_v53 }
  0xab   : > { %v428_v56 = vpop.f32.mrf.mxu0 }
  0xac   : > { %v493_v57 = vadd.f32 %v492_v54, %v428_v56 }
  0xaf   : > { %v502_v58 = vpop.f32.mrf.mxu3  ;;  %v1038_v60 = vpop.f32.mrf.mxu1 }
  0xb1   : > { %v438_v59 = vpop.f32.mrf.mxu2 }
  0xb2   : > { %v503_v61 = vadd.f32 %v502_v58, %v438_v59 }
  0xb3   : > { %v841_v62 = vpop.f32.mrf.mxu0 }
  0xb7   : > { %v759_v63 = vpop.f32.mrf.mxu3  ;;  %v1040_v1 = vpop.f32.mrf.mxu1 }
  0xb9   : > { %v673_v0 = vpop.f32.mrf.mxu2 }
  0xba   : > { %v693_v2 = vadd.f32 %v673_v0, %v486_v21 }
  0xbb   : > { %v843_v3 = vpop.f32.mrf.mxu0 }
  0xbc   : > { %v779_v4 = vadd.f32 %v759_v63, %v693_v2 }
  0xbe   : > { %v861_v5 = vadd.f32 %v841_v62, %v779_v4 }
  0xbf   : > { %v761_v6 = vpop.f32.mrf.mxu3  ;;  %v1043_v9 = vpop.f32.mrf.mxu1 }
  0xc0   : > { %v2434_v7 = vadd.f32 %v1038_v60, %v861_v5 }
  0xc1   : > { %v675_v8 = vpop.f32.mrf.mxu2 }
  0xc2   : > { %v694_v10 = vadd.f32 %v675_v8, %v488_v34 }
  0xc3   : > { %v846_v11 = vpop.f32.mrf.mxu0 }
  0xc4   : > { %v780_v12 = vadd.f32 %v761_v6, %v694_v10 }
  0xc6   : > { %v862_v13 = vadd.f32 %v843_v3, %v780_v12 }
  0xc7   : > { %v764_v14 = vpop.f32.mrf.mxu3  ;;  %v1045_v17 = vpop.f32.mrf.mxu1 }
  0xc8   : > { %v1059_v15 = vadd.f32 %v1040_v1, %v862_v13 }
  0xc9   : > { %v678_v16 = vpop.f32.mrf.mxu2 }
  0xca   : > { %v695_v18 = vadd.f32 %v678_v16, %v491_v51 }
  0xcb   : > { %v848_v19 = vpop.f32.mrf.mxu0 }
  0xcc   : > { %v781_v20 = vadd.f32 %v764_v14, %v695_v18 }
  0xce   : > { %v863_v21 = vadd.f32 %v846_v11, %v781_v20 }
  0xcf   : > { %v766_v22 = vpop.f32.mrf.mxu3  ;;  %v1048_v25 = vpop.f32.mrf.mxu1 }
  0xd0   : > { %v2436_v23 = vadd.f32 %v1043_v9, %v863_v21 }
  0xd1   : > { %v680_v24 = vpop.f32.mrf.mxu2 }
  0xd2   : > { %v696_v26 = vadd.f32 %v680_v24, %v493_v57 }
  0xd3   : > { %v851_v27 = vpop.f32.mrf.mxu0 }
  0xd4   : > { %v782_v28 = vadd.f32 %v766_v22, %v696_v26 }
  0xd6   : > { %v864_v30 = vadd.f32 %v848_v19, %v782_v28 }
  0xd7   : > { %v769_v32 = vpop.f32.mrf.mxu3  ;;  %v1050_v35 = vpop.f32.mrf.mxu1 }
  0xd8   : > { %v2438_v33 = vadd.f32 %v1045_v17, %v864_v30 }
  0xd9   : > { %v683_v34 = vpop.f32.mrf.mxu2 }
  0xda   : > { %v697_v36 = vadd.f32 %v683_v34, %v2416_v29 }
  0xdb   : > { %v853_v37 = vpop.f32.mrf.mxu0 }
  0xdc   : > { %v783_v38 = vadd.f32 %v769_v32, %v697_v36 }
  0xde   : > { %v865_v39 = vadd.f32 %v851_v27, %v783_v38 }
  0xdf   : > { %v771_v40 = vpop.f32.mrf.mxu3  ;;  %v1053_v43 = vpop.f32.mrf.mxu1 }
  0xe0   : > { %v2441_v41 = vadd.f32 %v1048_v25, %v865_v39 }
  0xe1   : > { %v685_v42 = vpop.f32.mrf.mxu2 }
  0xe2   : > { %v698_v44 = vadd.f32 %v685_v42, %v2428_v48 }
  0xe3   : > { %v856_v45 = vpop.f32.mrf.mxu0 }
  0xe4   : > { %v784_v46 = vadd.f32 %v771_v40, %v698_v44 }
  0xe6   : > { %v866_v47 = vadd.f32 %v853_v37, %v784_v46 }
  0xe7   : > { %v774_v49 = vpop.f32.mrf.mxu3  ;;  %v1055_v51 = vpop.f32.mrf.mxu1 }
  0xe8   : > { %v2444_v50 = vadd.f32 %v1050_v35, %v866_v47 }
  0xe9   : > { %v688_v31 = vpop.f32.mrf.mxu2 }
  0xea   : > { %v699_v29 = vadd.f32 %v688_v31, %v501_v55 }
  0xeb   : > { %v858_v52 = vpop.f32.mrf.mxu0 }
  0xec   : > { %v785_v53 = vadd.f32 %v774_v49, %v699_v29 }
  0xee   : > { %v867_v54 = vadd.f32 %v856_v45, %v785_v53 }
  0xef   : > { %v776_v56 = vpop.f32.mrf.mxu3  ;;  %v1532_v59 = vpop.f32.mrf.mxu1 }
  0xf0   : > { %v2446_v57 = vadd.f32 %v1053_v43, %v867_v54 }
  0xf1   : > { %v690_v58 = vpop.f32.mrf.mxu2 }
  0xf2   : > { %v700_v60 = vadd.f32 %v690_v58, %v503_v61 }
  0xf3   : > { %v1399_v48 = vpop.f32.mrf.mxu0 }
  0xf4   : > { %v786_v62 = vadd.f32 %v776_v56, %v700_v60 }
  0xf6   : > { %v868_v63 = vadd.f32 %v858_v52, %v786_v62 }
  0xf7   : > { %v1206_v0 = vpop.f32.mrf.mxu3  ;;  %v1534_v55 = vpop.f32.mrf.mxu1 }
  0xf8   : > { %v2449_v1 = vadd.f32 %v1055_v51, %v868_v63  ;;  %v2089_v3 = vpack.c.bf16 %v1534_v55, %v1532_v59  ;;  %v1582_v51 = vmul.f32 %v1532_v59, %v1532_v59  ;;  %v1583_v29 = vmul.f32 %v1534_v55, %v1534_v55 }
  0xf9   : > { %v1120_v2 = vpop.f32.mrf.mxu2  ;;  %v1568_v52 = vadd.f32 %v1534_v55, %v1532_v59 }
  0xfa   : > { %v1140_v5 = vadd.f32 %v1120_v2, %v2434_v7  ;;  %2090 = vst [vmem:[%s2454_s14] sm:$0xff] %v2089_v3   ;;  %v1590_v54 = vadd.f32 %v1583_v29, %v1582_v51 }
  0xfb   : > { %v1401_v4 = vpop.f32.mrf.mxu0 }
  0xfc   : > { %v1226_v61 = vadd.f32 %v1206_v0, %v1140_v5 }
  0xfe   : > { %v1419_v12 = vadd.f32 %v1399_v48, %v1226_v61 }
  0xff   : > { %v1208_v6 = vpop.f32.mrf.mxu3  ;;  %v1537_v9 = vpop.f32.mrf.mxu1 }
 0x100   : > { %v1457_v16 = vmul.f32 %v1419_v12, %v1419_v12  ;;  %v1584_v56 = vmul.f32 %v1537_v9, %v1537_v9  ;;  %v1569_v58 = vadd.f32 %v1568_v52, %v1537_v9 }
 0x101   : > { %v1122_v8 = vpop.f32.mrf.mxu2 }
 0x102   : > { %v1141_v10 = vadd.f32 %v1122_v8, %v1059_v15  ;;  %v1591_v61 = vadd.f32 %v1590_v54, %v1584_v56 }
 0x103   : > { %v1404_v11 = vpop.f32.mrf.mxu0 }
 0x104   : > { %v1227_v13 = vadd.f32 %v1208_v6, %v1141_v10 }
 0x106   : > { %v1420_v14 = vadd.f32 %v1401_v4, %v1227_v13 }
 0x107   : > { %v1211_v19 = vpop.f32.mrf.mxu3  ;;  %v1539_v21 = vpop.f32.mrf.mxu1 }
 0x108   : > { %v2069_v17 = vpack.c.bf16 %v1420_v14, %v1419_v12  ;;  %v1443_v7 = vadd.f32 %v1420_v14, %v1419_v12  ;;  %v1458_v18 = vmul.f32 %v1420_v14, %v1420_v14  ;;  %v2094_v24 = vpack.c.bf16 %v1539_v21, %v1537_v9 }
 0x109   : > { %v1125_v20 = vpop.f32.mrf.mxu2  ;;  %v1585_v0 = vmul.f32 %v1539_v21, %v1539_v21  ;;  %v1570_v4 = vadd.f32 %v1569_v58, %v1539_v21 }
 0x10a   : > { %2070 = vst [vmem:[%s2461_s17] sm:$0xff] %v2069_v17   ;;  %v1465_v15 = vadd.f32 %v1458_v18, %v1457_v16  ;;  %v1142_v22 = vadd.f32 %v1125_v20, %v2436_v23 }
 0x10b   : > { %2109 = vst [vmem:[%s2454_s14 + $0x8] sm:$0xff] %v2094_v24   ;;  %v1406_v26 = vpop.f32.mrf.mxu0  ;;  %v1592_v8 = vadd.f32 %v1591_v61, %v1585_v0 }
 0x10c   : > { %v1228_v25 = vadd.f32 %v1211_v19, %v1142_v22 }
 0x10e   : > { %v1421_v27 = vadd.f32 %v1404_v11, %v1228_v25 }
 0x10f   : > { %v1213_v32 = vpop.f32.mrf.mxu3  ;;  %v1542_v35 = vpop.f32.mrf.mxu1 }
 0x110   : > { %v1444_v28 = vadd.f32 %v1443_v7, %v1421_v27  ;;  %v1459_v30 = vmul.f32 %v1421_v27, %v1421_v27  ;;  %v1586_v6 = vmul.f32 %v1542_v35, %v1542_v35  ;;  %v1571_v59 = vadd.f32 %v1570_v4, %v1542_v35 }
 0x111   : > { %v1127_v34 = vpop.f32.mrf.mxu2 }
 0x112   : > { %v1466_v36 = vadd.f32 %v1465_v15, %v1459_v30  ;;  %v1143_v37 = vadd.f32 %v1127_v34, %v2438_v33  ;;  %v1593_v12 = vadd.f32 %v1592_v8, %v1586_v6 }
 0x113   : > { %v1409_v40 = vpop.f32.mrf.mxu0 }
 0x114   : > { %v1229_v38 = vadd.f32 %v1213_v32, %v1143_v37 }
 0x116   : > { %v1422_v39 = vadd.f32 %v1406_v26, %v1229_v38 }
 0x117   : > { %v1216_v44 = vpop.f32.mrf.mxu3  ;;  %v1544_v46 = vpop.f32.mrf.mxu1 }
 0x118   : > { %v2074_v42 = vpack.c.bf16 %v1422_v39, %v1421_v27  ;;  %v1445_v23 = vadd.f32 %v1444_v28, %v1422_v39  ;;  %v1460_v43 = vmul.f32 %v1422_v39, %v1422_v39  ;;  %v2099_v31 = vpack.c.bf16 %v1544_v46, %v1542_v35 }
 0x119   : > { %v1130_v45 = vpop.f32.mrf.mxu2  ;;  %v1587_v10 = vmul.f32 %v1544_v46, %v1544_v46  ;;  %v1572_v11 = vadd.f32 %v1571_v59, %v1544_v46 }
 0x11a   : > { %2106 = vst [vmem:[%s2461_s17 + $0x8] sm:$0xff] %v2074_v42   ;;  %v1467_v47 = vadd.f32 %v1466_v36, %v1460_v43  ;;  %v1144_v49 = vadd.f32 %v1130_v45, %v2441_v41 }
 0x11b   : > { %2110 = vst [vmem:[%s2454_s14 + $0x10] sm:$0xff] %v2099_v31   ;;  %v1411_v62 = vpop.f32.mrf.mxu0  ;;  %v1594_v19 = vadd.f32 %v1593_v12, %v1587_v10 }
 0x11c   : > { %v1230_v53 = vadd.f32 %v1216_v44, %v1144_v49 }
 0x11e   : > { %v1423_v33 = vadd.f32 %v1409_v40, %v1230_v53 }
 0x11f   : > { %v1218_v63 = vpop.f32.mrf.mxu3  ;;  %v1547_v3 = vpop.f32.mrf.mxu1 }
 0x120   : > { %v1446_v60 = vadd.f32 %v1445_v23, %v1423_v33  ;;  %v1461_v48 = vmul.f32 %v1423_v33, %v1423_v33  ;;  %v1588_v13 = vmul.f32 %v1547_v3, %v1547_v3  ;;  %v1573_v7 = vadd.f32 %v1572_v11, %v1547_v3 }
 0x121   : > { %v1132_v2 = vpop.f32.mrf.mxu2 }
 0x122   : > { %v1468_v5 = vadd.f32 %v1467_v47, %v1461_v48  ;;  %v1145_v41 = vadd.f32 %v1132_v2, %v2444_v50  ;;  %v1595_v25 = vadd.f32 %v1594_v19, %v1588_v13 }
 0x123   : > { %v1414_v26 = vpop.f32.mrf.mxu0 }
 0x124   : > { %v1231_v55 = vadd.f32 %v1218_v63, %v1145_v41 }
 0x126   : > { %v1424_v9 = vadd.f32 %v1411_v62, %v1231_v55 }
 0x127   : > { %v1221_v18 = vpop.f32.mrf.mxu3  ;;  %v1549_v50 = vpop.f32.mrf.mxu1 }
 0x128   : > { %v2079_v14 = vpack.c.bf16 %v1424_v9, %v1423_v33  ;;  %v1447_v16 = vadd.f32 %v1446_v60, %v1424_v9  ;;  %v1462_v17 = vmul.f32 %v1424_v9, %v1424_v9  ;;  %v2104_v22 = vpack.c.bf16 %v1549_v50, %v1547_v3 }
 0x129   : > { %v1135_v20 = vpop.f32.mrf.mxu2  ;;  %v1574_v24 = vadd.f32 %v1573_v7, %v1549_v50  ;;  %v1589_v27 = vmul.f32 %v1549_v50, %v1549_v50 }
 0x12a   : > { %2107 = vst [vmem:[%s2461_s17 + $0x10] sm:$0xff] %v2079_v14   ;;  %v1469_v21 = vadd.f32 %v1468_v5, %v1462_v17  ;;  %v1146_v15 = vadd.f32 %v1135_v20, %v2446_v57 }
 0x12b   : > { %2111 = vst [vmem:[%s2454_s14 + $0x18] sm:$0xff] %v2104_v22   ;;  %v1575_v30 = vrot.slane %v1574_v24, 4  ;;  %v1596_v32 = vadd.f32 %v1595_v25, %v1589_v27  ;;  %v1416_v31 = vpop.f32.mrf.mxu0 }
 0x12c   : > { %v1232_v28 = vadd.f32 %v1221_v18, %v1146_v15 }
 0x12d   : > { %v1576_v35 = vadd.f32 %v1575_v30, %v1574_v24  ;;  %v1597_v36 = vrot.slane %v1596_v32, 4 }
 0x12e   : > { %v1425_v34 = vadd.f32 %v1414_v26, %v1232_v28 }
 0x12f   : > { %v1577_v39 = vrot.slane %v1576_v35, 2  ;;  %v1598_v40 = vadd.f32 %v1597_v36, %v1596_v32  ;;  %v1223_v45 = vpop.f32.mrf.mxu3 }
 0x130   : > { %v1448_v37 = vadd.f32 %v1447_v16, %v1425_v34  ;;  %v1463_v38 = vmul.f32 %v1425_v34, %v1425_v34 }
 0x131   : > { %v1137_v42 = vpop.f32.mrf.mxu2  ;;  %v1578_v23 = vadd.f32 %v1577_v39, %v1576_v35  ;;  %v1599_v44 = vrot.slane %v1598_v40, 2 }
 0x132   : > { %v1470_v57 = vadd.f32 %v1469_v21, %v1463_v38  ;;  %v1147_v43 = vadd.f32 %v1137_v42, %v2449_v1 }
 0x133   : > { %v1579_v46 = vrot.slane %v1578_v23, 1  ;;  %v1600_v49 = vadd.f32 %v1599_v44, %v1598_v40 }
 0x134   : > { %v1233_v47 = vadd.f32 %v1223_v45, %v1147_v43 }
 0x135   : > { %v1580_v51 = vadd.f32 %v1579_v46, %v1578_v23  ;;  %v1601_v52 = vrot.slane %v1600_v49, 1 }
 0x136   : > { %v1426_v29 = vadd.f32 %v1416_v31, %v1233_v47 }
 0x137   : > { %1581 = vst [vmem:[%s347_s20] sm:$0x1] %v1580_v51  ;;  %v1602_v54 = vadd.f32 %v1601_v52, %v1600_v49 }
 0x138   : > { %v2084_v1 = vpack.c.bf16 %v1426_v29, %v1425_v34  ;;  %v1449_v53 = vadd.f32 %v1448_v37, %v1426_v29  ;;  %v1464_v33 = vmul.f32 %v1426_v29, %v1426_v29 }
 0x139   : > { %1603 = vst [vmem:[%s350_s23] sm:$0x1] %v1602_v54 }
 0x13a   : > { %2108 = vst [vmem:[%s2461_s17 + $0x18] sm:$0xff] %v2084_v1   ;;  %v1450_v56 = vrot.slane %v1449_v53, 4  ;;  %v1471_v58 = vadd.f32 %v1470_v57, %v1464_v33 }
 0x13c   : > { %v1451_v60 = vadd.f32 %v1450_v56, %v1449_v53  ;;  %v1472_v48 = vrot.slane %v1471_v58, 4 }
 0x13e   : > { %v1452_v62 = vrot.slane %v1451_v60, 2  ;;  %v1473_v63 = vadd.f32 %v1472_v48, %v1471_v58 }
 0x140   : > { %v1453_v0 = vadd.f32 %v1452_v62, %v1451_v60  ;;  %v1474_v2 = vrot.slane %v1473_v63, 2 }
 0x142   : > { %v1454_v3 = vrot.slane %v1453_v0, 1  ;;  %v1475_v4 = vadd.f32 %v1474_v2, %v1473_v63 }
 0x144   : > { %v1455_v5 = vadd.f32 %v1454_v3, %v1453_v0  ;;  %v1476_v41 = vrot.slane %v1475_v4, 1 }
 0x146   : > { %1456 = vst [vmem:[%s341_s26] sm:$0x1] %v1455_v5  ;;  %v1477_v61 = vadd.f32 %v1476_v41, %v1475_v4 }
 0x148   : > { %1478 = vst [vmem:[%s344_s9] sm:$0x1] %v1477_v61 }
 0x149 PF: > { %s19_s27 = sadd.s32 1, %s2129_s27  }
 0x14a   : > { %p16_p4 = scmp.ge.s32.totalorder %s19_s27, 4  }
 0x14c   :  { %18 = sbr.rel (!%p16_p4) target bundleno = 1 (0x1), region = 127 }

// kernel: basic_block_forward.6
= control target key start
LH: loop header
LB: loop body
LE: loop exit
PB: predicated region body
PF: predicated region fallthrough
CT: control target
= control target key end

     0   :  { %s2609_s15 = smov 0   ;;  %s3226_s0 = inlined_call_operand.vmem [shape: bf16[2,1,10,10,128], index: 0, kind: input, shape index: {}]   ;;  %s3227_s1 = inlined_call_operand.vmem [shape: bf16[1152,128], index: 1, kind: input, shape index: {}]   ;;  %s3228_s2 = inlined_call_operand.vmem [shape: bf16[2,64,128], index: 2, kind: output, shape index: {0}]   ;;  %s3229_s3 = inlined_call_operand.vmem [shape: f32[2,1,128], index: 3, kind: output, shape index: {1}]   ;;  %s3230_s4 = inlined_call_operand.vmem [shape: f32[2,1,128], index: 4, kind: output, shape index: {2}]  }
   0x1 LB: > { %s2009_s16 = sadd.s32 4294967295, %s2582_s15   ;;  %p2013_p0 = scmp.ge.s32.totalorder %s2582_s15, 1  ;;  %s2582_s15 = sphi %s2609_s15, %s15_s15  }
   0x2   : > { %p167_p1 = scmp.lt.s32.totalorder %s2582_s15, 3 }
   0x4   : > { %p168_p2 = pnand %p2013_p0, %p167_p1 }
   0x5   : > { %p199_p3 = scmp.lt.s32.totalorder (!%p168_p2), %s2009_s16, 1 }
   0x6   : > { %171 = sbr.rel (%p168_p2) target bundleno = 346 (0x15a), region = 28 }
   0xb   : > { %v2463_v0 = vld [vmem:[%s3227_s1 + $0x78] sm:$0xff]  ;;  %v2462_v2 = vld [vmem:[%s3227_s1 + $0x70] sm:$0xff]  ;;  %s3236_s16 = smov (!%p199_p3, %s2009_s16), 1  ;;  %v2461_v6 = vld [vmem:[%s3227_s1 + $0x68] sm:$0xff]  ;;  %vm247_vm0 = vsmask.f32 3328 }
   0xc   : > { %v2471_v1 = vld [vmem:[%s3227_s1 + $0xb8] sm:$0xff]  ;;  %2551 = vmatpush.bf16.msra.mxu1 %v2463_v0  ;;  %442 = vmatpush.bf16.msra.mxu0 %v2463_v0  ;;  %v2470_v3 = vld [vmem:[%s3227_s1 + $0xb0] sm:$0xff]  ;;  %s2567_s27 = smul.u32 80, %s3236_s16  ;;  %v2469_v7 = vld [vmem:[%s3227_s1 + $0xa8] sm:$0xff]  ;;  %vm248_vm1 = vsmask.f32 7440  ;;  %s211_s5 = scalar_lea.vmem %s3229_s3, %s3236_s16 }
   0xd   : > { %711 = vmatpush.bf16.msra.mxu2 %v2471_v1  ;;  %v2483_v4 = vld [vmem:[%s3227_s1 + $0xf8] sm:$0xff]  ;;  %v2482_v5 = vld [vmem:[%s3227_s1 + $0xf0] sm:$0xff]  ;;  %v2460_v11 = vld [vmem:[%s3227_s1 + $0x60] sm:$0xff]  ;;  %vm596_vm2 = vcmask 1042432   ;;  %vm597_vm3 = vcmask 1046532   ;;  %s214_s8 = scalar_lea.vmem %s3230_s4, %s3236_s16 }
   0xe   : > { %845 = vmatpush.bf16.msra.mxu3 %v2483_v4  ;;  %s2647_s10 = scalar_lea.vmem %s3226_s0, %s2567_s27  ;;  %v2468_v16 = vld [vmem:[%s3227_s1 + $0xa0] sm:$0xff]  ;;  %v2481_v17 = vld [vmem:[%s3227_s1 + $0xe8] sm:$0xff]  ;;  %v2459_v29 = vld [vmem:[%s3227_s1 + $0x58] sm:$0xff] }
   0xf   : > { %v219_v8 = vld [vmem:[%s2647_s10 + $0x20] sm:$0xf]  ;;  %v220_v9 = vld [vmem:[%s2647_s10 + $0x28] sm:$0xf]  ;;  %v2652_v10 = vld [vmem:[%s2647_s10 + $0x24] sm:$0x1] }
  0x10   : > { %2552 = vmatpush.bf16.msra.mxu1 %v2462_v2  ;;  %443 = vmatpush.bf16.msra.mxu0 %v2462_v2  ;;  %v2658_v12 = vld [vmem:[%s2647_s10 + $0x2c] sm:$0x1]  ;;  %v307_v13 = vshrl.u32 %v219_v8, 16  ;;  %v310_v14 = vshll.u32 %v219_v8, 16  ;;  %v321_v15 = vshrl.u32 %v220_v9, 16  ;;  %v324_v18 = vshll.u32 %v220_v9, 16  ;;  %vm2685_vm4 = vmor %vm247_vm0, %vm248_vm1 }
  0x11   : > { %712 = vmatpush.bf16.msra.mxu2 %v2470_v3  ;;  %v215_v19 = vld [vmem:[%s2647_s10] sm:$0xf]  ;;  %v316_v22 = vshll.u32 %v2652_v10, 16  ;;  %v216_v24 = vld [vmem:[%s2647_s10 + $0x8] sm:$0xf]  ;;  %v330_v26 = vshll.u32 %v2658_v12, 16  ;;  %vm2694_vm5 = vmor %vm596_vm2, %vm597_vm3 }
  0x12   : > { %846 = vmatpush.bf16.msra.mxu3 %v2482_v5  ;;  %v309_v20 = vrot.slane %v307_v13, 4  ;;  %v312_v21 = vrot.slane %v310_v14, 5  ;;  %v323_v23 = vrot.slane %v321_v15, 4  ;;  %v326_v25 = vrot.slane %v324_v18, 5  ;;  %v239_v27 = vld [vmem:[%s2647_s10 + $0x4] sm:$0x1] }
  0x13   : > { %v240_v28 = vld [vmem:[%s2647_s10 + $0xc] sm:$0x1]  ;;  %v251_v31 = vshrl.u32 %v215_v19, 16  ;;  %v254_v32 = vshll.u32 %v215_v19, 16  ;;  %v2480_v34 = vld [vmem:[%s3227_s1 + $0xe0] sm:$0xff]  ;;  %v260_v35 = vshll.u32 %v239_v27, 16 }
  0x14   : > { %2553 = vmatpush.bf16.msra.mxu1 %v2461_v6  ;;  %444 = vmatpush.bf16.msra.mxu0 %v2461_v6  ;;  %v313_v30 = vor.u32 %v312_v21, %v309_v20  ;;  %v327_v33 = vor.u32 %v326_v25, %v323_v23  ;;  %v265_v36 = vshrl.u32 %v216_v24, 16  ;;  %v268_v37 = vshll.u32 %v216_v24, 16  ;;  %v572_v38 = vld [vmem:[%s2647_s10] sm:$0xe]  ;;  %v573_v43 = vld [vmem:[%s2647_s10 + $0x8] sm:$0xe] }
  0x15   : > { %713 = vmatpush.bf16.msra.mxu2 %v2469_v7  ;;  %v318_v39 = vrot.slane %v316_v22, 5  ;;  %v253_v40 = vrot.slane %v251_v31, 4  ;;  %v256_v41 = vrot.slane %v254_v32, 5  ;;  %v274_v42 = vshll.u32 %v240_v28, 16  ;;  %v2467_v44 = vld [vmem:[%s3227_s1 + $0x98] sm:$0xff]  ;;  %v2458_v60 = vld [vmem:[%s3227_s1 + $0x50] sm:$0xff] }
  0x16   : > { %847 = vmatpush.bf16.msra.mxu3 %v2481_v17  ;;  %v314_v45 = vrot.slane %v313_v30, 4  ;;  %v332_v46 = vrot.slane %v330_v26, 5  ;;  %v267_v47 = vrot.slane %v265_v36, 4  ;;  %v270_v48 = vrot.slane %v268_v37, 5  ;;  %v2479_v56 = vld [vmem:[%s3227_s1 + $0xd8] sm:$0xff]  ;;  %v2466_v0 = vld [vmem:[%s3227_s1 + $0x90] sm:$0xff] }
  0x17   : > { %v328_v50 = vrot.slane %v327_v33, 4  ;;  %v257_v51 = vor.u32 %v256_v41, %v253_v40  ;;  %v2097_v52 = vrot.slane %v572_v38, 9  ;;  %v601_v53 = vrot.slane %v239_v27, 5  ;;  %v221_v59 = vld [vmem:[%s2647_s10 + $0x30] sm:$0xf]  ;;  %v2457_v14 = vld [vmem:[%s3227_s1 + $0x48] sm:$0xff] }
  0x18   : > { %2554 = vmatpush.bf16.msra.mxu1 %v2460_v11  ;;  %445 = vmatpush.bf16.msra.mxu0 %v2460_v11  ;;  %v262_v54 = vrot.slane %v260_v35, 5  ;;  %v271_v55 = vor.u32 %v270_v48, %v267_v47  ;;  %v2098_v58 = vrot.slane %v573_v43, 9  ;;  %v276_v62 = vrot.slane %v274_v42, 5  ;;  %v222_v3 = vld [vmem:[%s2647_s10 + $0x38] sm:$0xf]  ;;  %v2478_v11 = vld [vmem:[%s3227_s1 + $0xd0] sm:$0xff] }
  0x19   : > { %714 = vmatpush.bf16.msra.mxu2 %v2468_v16  ;;  %v258_v61 = vrot.slane %v257_v51, 4  ;;  %v605_v63 = vrot.slane %v240_v28, 5  ;;  %v319_v1 = vsel %vm2685_vm4, %v314_v45, %v318_v39  ;;  %v333_v4 = vsel %vm2685_vm4, %v328_v50, %v332_v46  ;;  %v217_v7 = vld [vmem:[%s2647_s10 + $0x10] sm:$0xf]  ;;  %v2465_v19 = vld [vmem:[%s3227_s1 + $0x88] sm:$0xff]  ;;  %v2456_v24 = vld [vmem:[%s3227_s1 + $0x40] sm:$0xff] }
  0x1a   : > { %848 = vmatpush.bf16.msra.mxu3 %v2480_v34  ;;  %v272_v2 = vrot.slane %v271_v55, 4  ;;  %v602_v5 = vsel %vm2694_vm5, %v2097_v52, %v601_v53  ;;  %v335_v6 = vshrl.u32 %v221_v59, 16  ;;  %v338_v13 = vshll.u32 %v221_v59, 16  ;;  %v218_v22 = vld [vmem:[%s2647_s10 + $0x18] sm:$0xf]  ;;  %v2477_v31 = vld [vmem:[%s3227_s1 + $0xc8] sm:$0xff] }
  0x1b   : > { %v263_v8 = vsel %vm2685_vm4, %v258_v61, %v262_v54  ;;  %v606_v9 = vsel %vm2694_vm5, %v2098_v58, %v605_v63  ;;  %v2723_v15 = vunpack.c.l.b16 %v319_v1  ;;  %v349_v17 = vshrl.u32 %v222_v3, 16  ;;  %v2741_v32 = vld [vmem:[%s2647_s10 + $0x34] sm:$0x1]  ;;  %v2744_v36 = vld [vmem:[%s2647_s10 + $0x3c] sm:$0x1]  ;;  %v2464_v42 = vld [vmem:[%s3227_s1 + $0x80] sm:$0xff] }
  0x1c   : > { %2555 = vmatpush.bf16.msra.mxu1 %v2459_v29  ;;  %446 = vmatpush.bf16.msra.mxu0 %v2459_v29  ;;  %v277_v16 = vsel %vm2685_vm4, %v272_v2, %v276_v62  ;;  %v383_v18 = vunpack.c.l.b16 %v333_v4  ;;  %v647_v20 = vunpack.c.l.b16 %v602_v5  ;;  %v352_v21 = vshll.u32 %v222_v3, 16  ;;  %v2455_v29 = vld [vmem:[%s3227_s1 + $0x38] sm:$0xff]  ;;  %v2751_v43 = vld [vmem:[%s2647_s10 + $0x14] sm:$0x1]  ;;  %v2147_v62 = vld [vmem:[%s2647_s10 + $0x8] sm:$0xf] }
  0x1d   : > { %715 = vmatpush.bf16.msra.mxu2 %v2467_v44  ;;  %v279_v23 = vshrl.u32 %v217_v7, 16  ;;  %v378_v25 = vunpack.c.l.b16 %v263_v8  ;;  %v648_v26 = vunpack.c.l.b16 %v606_v9  ;;  %v337_v27 = vrot.slane %v335_v6, 4  ;;  %v2754_v44 = vld [vmem:[%s2647_s10 + $0x1c] sm:$0x1]  ;;  %v2472_v63 = vld [vmem:[%s2647_s10 + $0xc] sm:$0xf0] }
  0x1e   : > { %849 = vmatpush.bf16.msra.mxu3 %v2479_v56  ;;  %v282_v28 = vshll.u32 %v217_v7, 16  ;;  %v379_v30 = vunpack.c.l.b16 %v277_v16  ;;  %v340_v33 = vrot.slane %v338_v13, 5  ;;  %v351_v34 = vrot.slane %v349_v17, 4  ;;  %v2491_v45 = vld [vmem:[%s3227_s1 + $0x138] sm:$0xff]  ;;  %v2476_v56 = vld [vmem:[%s3227_s1 + $0xc0] sm:$0xff]  ;;  %v2490_v1 = vld [vmem:[%s3227_s1 + $0x130] sm:$0xff] }
  0x1f   : > { %v354_v35 = vrot.slane %v352_v21, 5  ;;  %v281_v37 = vrot.slane %v279_v23, 4  ;;  %v293_v39 = vshrl.u32 %v218_v22, 16  ;;  %v296_v40 = vshll.u32 %v218_v22, 16  ;;  %v2511_v48 = vld [vmem:[%s3227_s1 + $0x1b8] sm:$0xff]  ;;  %v2510_v6 = vld [vmem:[%s3227_s1 + $0x1b0] sm:$0xff] }
  0x20   : > { %2556 = vmatpush.bf16.msra.mxu1 %v2458_v60  ;;  %447 = vmatpush.bf16.msra.mxu0 %v2458_v60  ;;  %v284_v38 = vrot.slane %v282_v28, 5  ;;  %v388_v41 = vpack.c.b16 %v383_v18, %v2723_v15  ;;  %v655_v46 = vpack.c.b16 %v648_v26, %v647_v20  ;;  %v344_v47 = vshll.u32 %v2741_v32, 16  ;;  %v2519_v2 = vld [vmem:[%s3227_s1 + $0x1f8] sm:$0xff]  ;;  %v574_v4 = vld [vmem:[%s2647_s10 + $0x10] sm:$0xe]  ;;  %v2509_v26 = vld [vmem:[%s3227_s1 + $0x1a8] sm:$0xff] }
  0x21   : > { %716 = vmatpush.bf16.msra.mxu2 %v2466_v0  ;;  %v295_v50 = vrot.slane %v293_v39, 4  ;;  %v298_v51 = vrot.slane %v296_v40, 5  ;;  %v386_v52 = vpack.c.b16 %v379_v30, %v378_v25  ;;  %v341_v53 = vor.u32 %v340_v33, %v337_v27  ;;  %v2454_v0 = vld [vmem:[%s3227_s1 + $0x30] sm:$0xff]  ;;  %v575_v5 = vld [vmem:[%s2647_s10 + $0x18] sm:$0xe]  ;;  %v2489_v25 = vld [vmem:[%s3227_s1 + $0x128] sm:$0xff] }
  0x22   : > { %850 = vmatpush.bf16.msra.mxu3 %v2478_v11  ;;  %v355_v54 = vor.u32 %v354_v35, %v351_v34  ;;  %v358_v55 = vshll.u32 %v2744_v36, 16  ;;  %v285_v58 = vor.u32 %v284_v38, %v281_v37  ;;  %v288_v59 = vshll.u32 %v2751_v43, 16  ;;  %v2193_v13 = vld [vmem:[%s2647_s10 + $0x8] sm:$0xf]  ;;  %v2195_v18 = vld [vmem:[%s2647_s10 + $0x10] sm:$0xf] }
  0x23   : > { %v299_v60 = vor.u32 %v298_v51, %v295_v50  ;;  %v302_v61 = vshll.u32 %v2754_v44, 16  ;;  %v346_v3 = vrot.slane %v344_v47, 5  ;;  %v342_v7 = vrot.slane %v341_v53, 4  ;;  %v2452_v37 = vld [vmem:[%s3227_s1 + $0x20] sm:$0xff]  ;;  %v2517_v40 = vld [vmem:[%s3227_s1 + $0x1e8] sm:$0xff] }
  0x24   : > { %2557 = vmatpush.bf16.msra.mxu1 %v2457_v14  ;;  %448 = vmatpush.bf16.msra.mxu0 %v2457_v14  ;;  %v356_v8 = vrot.slane %v355_v54, 4  ;;  %v360_v9 = vrot.slane %v358_v55, 5  ;;  %v2148_v11 = vor.u32 %v2472_v63, %v2147_v62  ;;  %v286_v14 = vrot.slane %v285_v58, 4  ;;  %v2826_v47 = vld [vmem:[%s2647_s10 + $0xc] sm:$0x1]  ;;  %v2451_v55 = vld [vmem:[%s3227_s1 + $0x18] sm:$0xff] }
  0x25   : > { %717 = vmatpush.bf16.msra.mxu2 %v2465_v19  ;;  %v290_v15 = vrot.slane %v288_v59, 5  ;;  %v300_v16 = vrot.slane %v299_v60, 4  ;;  %v304_v17 = vrot.slane %v302_v61, 5  ;;  %v2453_v19 = vld [vmem:[%s3227_s1 + $0x28] sm:$0xff]  ;;  %v2099_v20 = vrot.slane %v574_v4, 9  ;;  %v2487_v58 = vld [vmem:[%s3227_s1 + $0x118] sm:$0xff] }
  0x26   : > { %851 = vmatpush.bf16.msra.mxu3 %v2477_v31  ;;  %v609_v21 = vrot.slane %v2751_v43, 5  ;;  %v2100_v22 = vrot.slane %v575_v5, 9  ;;  %v613_v23 = vrot.slane %v2754_v44, 5  ;;  %v347_v27 = vsel %vm2685_vm4, %v342_v7, %v346_v3  ;;  %v2488_v43 = vld [vmem:[%s3227_s1 + $0x120] sm:$0xff]  ;;  %v2151_v62 = vld [vmem:[%s2647_s10 + $0x18] sm:$0xf] }
  0x27   : > { %v361_v28 = vsel %vm2685_vm4, %v356_v8, %v360_v9  ;;  %v902_v30 = vshll.u32 %v2193_v13, 16  ;;  %v291_v31 = vsel %vm2685_vm4, %v286_v14, %v290_v15  ;;  %v305_v33 = vsel %vm2685_vm4, %v300_v16, %v304_v17  ;;  %v2508_v44 = vld [vmem:[%s3227_s1 + $0x1a0] sm:$0xff]  ;;  %v577_v5 = vld [vmem:[%s2647_s10 + $0x28] sm:$0xe]  ;;  %v2486_v7 = vld [vmem:[%s3227_s1 + $0x110] sm:$0xff] }
  0x28   : > { %2558 = vmatpush.bf16.msra.mxu1 %v2456_v24  ;;  %449 = vmatpush.bf16.msra.mxu0 %v2456_v24  ;;  %v2518_v24 = vld [vmem:[%s3227_s1 + $0x1f0] sm:$0xff]  ;;  %v913_v34 = vshrl.u32 %v2195_v18, 16  ;;  %v916_v35 = vshll.u32 %v2195_v18, 16  ;;  %v610_v38 = vsel %vm2694_vm5, %v2099_v20, %v609_v21  ;;  %v614_v39 = vsel %vm2694_vm5, %v2100_v22, %v613_v23  ;;  %v2473_v63 = vld [vmem:[%s2647_s10 + $0x1c] sm:$0xf0]  ;;  %v2507_v17 = vld [vmem:[%s3227_s1 + $0x198] sm:$0xff] }
  0x29   : > { %718 = vmatpush.bf16.msra.mxu2 %v2464_v42  ;;  %v385_v42 = vunpack.c.l.b16 %v361_v28  ;;  %v904_v50 = vrot.slane %v902_v30, 5  ;;  %v649_v51 = vunpack.c.l.b16 %v610_v38  ;;  %v908_v59 = vshll.u32 %v2826_v47, 16  ;;  %v2197_v20 = vld [vmem:[%s2647_s10 + $0x18] sm:$0xf]  ;;  %v2516_v21 = vld [vmem:[%s3227_s1 + $0x1e0] sm:$0xff]  ;;  %v2506_v23 = vld [vmem:[%s3227_s1 + $0x190] sm:$0xff] }
  0x2a   : > { %852 = vmatpush.bf16.msra.mxu3 %v2476_v56  ;;  %v915_v53 = vrot.slane %v913_v34, 4  ;;  %v918_v54 = vrot.slane %v916_v35, 5  ;;  %v2832_v56 = vld [vmem:[%s2647_s10 + $0x14] sm:$0x1]  ;;  %v2152_v8 = vor.u32 %v2473_v63, %v2151_v62  ;;  %v617_v14 = vrot.slane %v2652_v10, 5  ;;  %v2449_v10 = vld [vmem:[%s3227_s1 + $0x8] sm:$0xff] }
  0x2b   : > { %460 = vmatmul.bf16.vlgmr.msra.gmra.mxu1 %v388_v41  ;;  %450 = vmatmul.bf16.vlgmr.msra.gmra.mxu0 %v386_v52  ;;  %v384_v41 = vunpack.c.l.b16 %v347_v27  ;;  %v650_v52 = vunpack.c.l.b16 %v614_v39  ;;  %v922_v4 = vshll.u32 %v2832_v56, 16  ;;  %v910_v9 = vrot.slane %v908_v59, 5  ;;  %v2199_v22 = vld [vmem:[%s2647_s10 + $0x20] sm:$0xf]  ;;  %v2444_v39 = vld [vmem:[%s2647_s10 + $0x4] sm:$0xf0] }
  0x2c   : > { %543 = vmatpush.bf16.msrb.mxu1 %v2455_v29  ;;  %1090 = vmatpush.bf16.msrb.mxu0 %v2491_v45  ;;  %v899_v29 = vshrl.u32 %v2193_v13, 16  ;;  %v380_v45 = vunpack.c.l.b16 %v291_v31  ;;  %v919_v3 = vor.u32 %v918_v54, %v915_v53  ;;  %v2102_v15 = vrot.slane %v577_v5, 9  ;;  %v2448_v34 = vld [vmem:[%s3227_s1] sm:$0xff]  ;;  %v2498_v53 = vld [vmem:[%s3227_s1 + $0x170] sm:$0xff]  ;;  %v579_v5 = vld [vmem:[%s2647_s10 + $0x38] sm:$0xe] }
  0x2d   : > { %1397 = vmatpush.bf16.msrb.mxu2 %v2511_v48  ;;  %853 = vmatmul.bf16.vlgmr.msra.gmra.mxu3 %v2148_v11  ;;  %v389_v60 = vpack.c.b16 %v385_v42, %v384_v41  ;;  %v621_v16 = vrot.slane %v2658_v12, 5  ;;  %v2485_v12 = vld [vmem:[%s3227_s1 + $0x108] sm:$0xff]  ;;  %v927_v28 = vshrl.u32 %v2197_v20, 16  ;;  %v930_v30 = vshll.u32 %v2197_v20, 16  ;;  %v2051_v35 = vld [vmem:[%s2647_s10] sm:$0xf] }
  0x2e   : > { %719 = vmatmul.bf16.vlgmr.msra.gmra.mxu2 %v655_v46  ;;  %1642 = vmatpush.bf16.msrb.mxu3 %v2519_v2  ;;  %v381_v46 = vunpack.c.l.b16 %v305_v33  ;;  %v901_v48 = vrot.slane %v899_v29, 4  ;;  %v656_v2 = vpack.c.b16 %v650_v52, %v649_v51  ;;  %v920_v18 = vrot.slane %v919_v3, 4  ;;  %v2484_v38 = vld [vmem:[%s3227_s1 + $0x100] sm:$0xff]  ;;  %v2474_v62 = vld [vmem:[%s2647_s10 + $0x2c] sm:$0xf0] }
  0x2f   : > { %v622_v27 = vsel %vm2694_vm5, %v2102_v15, %v621_v16  ;;  %v941_v31 = vshrl.u32 %v2199_v22, 16  ;;  %v944_v33 = vshll.u32 %v2199_v22, 16  ;;  %v2052_v54 = vor.u32 %v2444_v39, %v2051_v35  ;;  %v2201_v3 = vld [vmem:[%s2647_s10 + $0x28] sm:$0xf]  ;;  %v2504_v22 = vld [vmem:[%s3227_s1 + $0x180] sm:$0xff] }
  0x30   : > { %544 = vmatpush.bf16.msrb.mxu1 %v2454_v0  ;;  %1091 = vmatpush.bf16.msrb.mxu0 %v2490_v1  ;;  %v387_v61 = vpack.c.b16 %v381_v46, %v380_v45  ;;  %v905_v0 = vor.u32 %v904_v50, %v901_v48  ;;  %v576_v1 = vld [vmem:[%s2647_s10 + $0x20] sm:$0xe]  ;;  %v2896_v45 = vld [vmem:[%s2647_s10 + $0x1c] sm:$0x1]  ;;  %v2899_v46 = vld [vmem:[%s2647_s10 + $0x24] sm:$0x1] }
  0x31   : > { %1398 = vmatpush.bf16.msrb.mxu2 %v2510_v6  ;;  %v2450_v6 = vld [vmem:[%s3227_s1 + $0x10] sm:$0xff]  ;;  %v2101_v11 = vrot.slane %v576_v1, 9  ;;  %v929_v48 = vrot.slane %v927_v28, 4  ;;  %v932_v50 = vrot.slane %v930_v30, 5  ;;  %v943_v51 = vrot.slane %v941_v31, 4  ;;  %v2928_v15 = vld [vmem:[%s3227_s1 + $0x228] sm:$0xff] }
  0x32   : > { %1643 = vmatpush.bf16.msrb.mxu3 %v2518_v24  ;;  %v906_v13 = vrot.slane %v905_v0, 4  ;;  %v2515_v24 = vld [vmem:[%s3227_s1 + $0x1d8] sm:$0xff]  ;;  %v946_v52 = vrot.slane %v944_v33, 5  ;;  %v950_v59 = vshll.u32 %v2899_v46, 16  ;;  %v2912_v1 = vld [vmem:[%s3227_s1 + $0x230] sm:$0xff]  ;;  %v955_v16 = vshrl.u32 %v2201_v3, 16 }
  0x33   : > { %v933_v63 = vor.u32 %v932_v50, %v929_v48  ;;  %v625_v20 = vrot.slane %v2741_v32, 5  ;;  %v2513_v32 = vld [vmem:[%s3227_s1 + $0x1c8] sm:$0xff]  ;;  %v2952_v28 = vld [vmem:[%s3227_s1 + $0x220] sm:$0xff]  ;;  %v2495_v31 = vld [vmem:[%s3227_s1 + $0x158] sm:$0xff] }
  0x34   : > { %545 = vmatpush.bf16.msrb.mxu1 %v2453_v19  ;;  %1092 = vmatpush.bf16.msrb.mxu0 %v2489_v25  ;;  %v924_v19 = vrot.slane %v922_v4, 5  ;;  %v911_v25 = vsel %vm2685_vm4, %v906_v13, %v910_v9  ;;  %v947_v0 = vor.u32 %v946_v52, %v943_v51  ;;  %v578_v4 = vld [vmem:[%s2647_s10 + $0x30] sm:$0xe]  ;;  %v952_v9 = vrot.slane %v950_v59, 5  ;;  %v2962_v33 = vld [vmem:[%s2647_s10 + $0x2c] sm:$0x1] }
  0x35   : > { %1399 = vmatpush.bf16.msrb.mxu2 %v2509_v26  ;;  %v618_v26 = vsel %vm2694_vm5, %v2101_v11, %v617_v14  ;;  %v2203_v11 = vld [vmem:[%s2647_s10 + $0x30] sm:$0xf]  ;;  %v934_v13 = vrot.slane %v933_v63, 4  ;;  %v2965_v39 = vld [vmem:[%s2647_s10 + $0x34] sm:$0x1]  ;;  %v964_v52 = vshll.u32 %v2962_v33, 16 }
  0x36   : > { %1644 = vmatpush.bf16.msrb.mxu3 %v2517_v40  ;;  %v925_v29 = vsel %vm2685_vm4, %v920_v18, %v924_v19  ;;  %v1026_v40 = vunpack.c.l.b16 %v911_v25  ;;  %v651_v42 = vunpack.c.l.b16 %v618_v26  ;;  %v948_v14 = vrot.slane %v947_v0, 4  ;;  %v2514_v18 = vld [vmem:[%s3227_s1 + $0x1d0] sm:$0xff]  ;;  %v2347_v51 = vld [vmem:[%s2647_s10 + $0x18] sm:$0xf]  ;;  %v2475_v63 = vld [vmem:[%s2647_s10 + $0x3c] sm:$0xf0] }
  0x37   : > { %v1027_v41 = vunpack.c.l.b16 %v925_v29  ;;  %v2103_v19 = vrot.slane %v578_v4, 9  ;;  %v957_v26 = vrot.slane %v955_v16, 4  ;;  %v978_v59 = vshll.u32 %v2965_v39, 16  ;;  %v2205_v0 = vld [vmem:[%s2647_s10 + $0x38] sm:$0xf] }
  0x38   : > { %546 = vmatpush.bf16.msrb.mxu1 %v2452_v37  ;;  %1093 = vmatpush.bf16.msrb.mxu0 %v2488_v43  ;;  %v2499_v37 = vld [vmem:[%s3227_s1 + $0x178] sm:$0xff]  ;;  %v652_v43 = vunpack.c.l.b16 %v622_v27  ;;  %v953_v25 = vsel %vm2685_vm4, %v948_v14, %v952_v9 }
  0x39   : > { %1400 = vmatpush.bf16.msrb.mxu2 %v2508_v44  ;;  %v2893_v44 = vld [vmem:[%s3227_s1 + $0x238] sm:$0xff]  ;;  %v626_v29 = vsel %vm2694_vm5, %v2103_v19, %v625_v20  ;;  %v980_v16 = vrot.slane %v978_v59, 5  ;;  %v2512_v20 = vld [vmem:[%s3227_s1 + $0x1c0] sm:$0xff] }
  0x3a   : > { %1645 = vmatpush.bf16.msrb.mxu3 %v2516_v21  ;;  %v2104_v21 = vrot.slane %v579_v5, 9  ;;  %v2983_v5 = vld [vmem:[%s2647_s10 + $0x14] sm:$0x1]  ;;  %v2995_v19 = vld [vmem:[%s3227_s1 + $0x218] sm:$0xff] }
  0x3b   : > { %465 = vmatmul.bf16.gmra.mxu1 %v389_v60  ;;  %455 = vmatmul.bf16.gmra.mxu0 %v387_v61  ;;  %v657_v60 = vpack.c.b16 %v652_v43, %v651_v42  ;;  %v2155_v61 = vld [vmem:[%s2647_s10 + $0x28] sm:$0xf]  ;;  %v2445_v42 = vld [vmem:[%s2647_s10 + $0x14] sm:$0xf0]  ;;  %v653_v43 = vunpack.c.l.b16 %v626_v29 }
  0x3c   : > { %547 = vmatpush.bf16.msrb.mxu1 %v2451_v55  ;;  %1094 = vmatpush.bf16.msrb.mxu0 %v2487_v58  ;;  %v1034_v55 = vpack.c.b16 %v1027_v41, %v1026_v40  ;;  %v936_v58 = vshll.u32 %v2896_v45, 16  ;;  %v2345_v40 = vld [vmem:[%s2647_s10 + $0x10] sm:$0xf]  ;;  %v2241_v29 = vld [vmem:[%s2647_s10 + $0x8] sm:$0xe] }
  0x3d   : > { %1401 = vmatpush.bf16.msrb.mxu2 %v2507_v17  ;;  %858 = vmatmul.bf16.gmra.mxu3 %v2152_v8  ;;  %v958_v17 = vshll.u32 %v2201_v3, 16  ;;  %v2055_v41 = vld [vmem:[%s2647_s10 + $0x10] sm:$0xf] }
  0x3e   : > { %724 = vmatmul.bf16.gmra.mxu2 %v656_v2  ;;  %1646 = vmatpush.bf16.msrb.mxu3 %v2515_v24  ;;  %v2497_v2 = vld [vmem:[%s3227_s1 + $0x168] sm:$0xff]  ;;  %v938_v8 = vrot.slane %v936_v58, 5  ;;  %v972_v24 = vshll.u32 %v2203_v11, 16 }
  0x3f   : > { %v960_v27 = vrot.slane %v958_v17, 5  ;;  %v2207_v17 = vld [vmem:[%s2647_s10 + $0x40] sm:$0xf] }
  0x40   : > { %548 = vmatpush.bf16.msrb.mxu1 %v2450_v6  ;;  %1095 = vmatpush.bf16.msrb.mxu0 %v2486_v7  ;;  %v2505_v6 = vld [vmem:[%s3227_s1 + $0x188] sm:$0xff]  ;;  %v2156_v7 = vor.u32 %v2474_v62, %v2155_v61  ;;  %v974_v35 = vrot.slane %v972_v24, 5  ;;  %v2056_v61 = vor.u32 %v2445_v42, %v2055_v41  ;;  %v3021_v42 = vld [vmem:[%s2647_s10 + $0x3c] sm:$0x1] }
  0x41   : > { %1402 = vmatpush.bf16.msrb.mxu2 %v2506_v23  ;;  %v969_v23 = vshrl.u32 %v2203_v11, 16  ;;  %v961_v50 = vor.u32 %v960_v27, %v957_v26  ;;  %v3008_v27 = vld [vmem:[%s3227_s1 + $0x210] sm:$0xff] }
  0x42   : > { %1647 = vmatpush.bf16.msrb.mxu3 %v2514_v18  ;;  %v983_v18 = vshrl.u32 %v2205_v0, 16 }
  0x43   : > { %v962_v4 = vrot.slane %v961_v50, 4 }
  0x44   : > { %549 = vmatpush.bf16.msrb.mxu1 %v2449_v10  ;;  %1096 = vmatpush.bf16.msrb.mxu0 %v2485_v12  ;;  %v629_v10 = vrot.slane %v2744_v36, 5  ;;  %v2496_v12 = vld [vmem:[%s3227_s1 + $0x160] sm:$0xff]  ;;  %v939_v36 = vsel %vm2685_vm4, %v934_v13, %v938_v8 }
  0x45   : > { %1403 = vmatpush.bf16.msrb.mxu2 %v2505_v6  ;;  %v966_v6 = vrot.slane %v964_v52, 5 }
  0x46   : > { %v630_v30 = vsel %vm2694_vm5, %v2104_v21, %v629_v10  ;;  %1648 = vmatpush.bf16.msrb.mxu3 %v2513_v32  ;;  %v986_v21 = vshll.u32 %v2205_v0, 16  ;;  %v1157_v32 = vrot.slane %v2832_v56, 5  ;;  %v985_v56 = vrot.slane %v983_v18, 4 }
  0x47   : > { %v654_v48 = vunpack.c.l.b16 %v630_v30 }
  0x48   : > { %550 = vmatpush.bf16.msrb.mxu1 %v2448_v34  ;;  %1097 = vmatpush.bf16.msrb.mxu0 %v2484_v38  ;;  %v971_v34 = vrot.slane %v969_v23, 4  ;;  %v1029_v38 = vunpack.c.l.b16 %v953_v25  ;;  %v1153_v23 = vrot.slane %v2826_v47, 5  ;;  %v1000_v25 = vshll.u32 %v2207_v17, 16 }
  0x49   : > { %1404 = vmatpush.bf16.msrb.mxu2 %v2504_v22  ;;  %v658_v3 = vpack.c.b16 %v654_v48, %v653_v43  ;;  %v1460_v22 = vshll.u32 %v2983_v5, 16  ;;  %v967_v47 = vsel %vm2685_vm4, %v962_v4, %v966_v6  ;;  %v2299_v4 = vld [vmem:[%s2647_s10 + $0x10] sm:$0xf] }
  0x4a   : > { %v975_v58 = vor.u32 %v974_v35, %v971_v34  ;;  %1649 = vmatpush.bf16.msrb.mxu3 %v2512_v20  ;;  %v2242_v34 = vld [vmem:[%s2647_s10 + $0x10] sm:$0xe]  ;;  %v2249_v35 = vrot.slane %v2241_v29, 9  ;;  %v1002_v52 = vrot.slane %v1000_v25, 5 }
  0x4b   : > { %551 = vmatmul.bf16.vlgmr.msrb.gmra.mxu1 %v2052_v54  ;;  %1098 = vmatmul.bf16.vlgmr.msrb.gmra.mxu0 %v1034_v55  ;;  %v1454_v54 = vshll.u32 %v2345_v40, 16  ;;  %v1465_v55 = vshrl.u32 %v2347_v51, 16  ;;  %v2250_v41 = vrot.slane %v2242_v34, 9  ;;  %v2520_v34 = vld [vmem:[%s3227_s1 + $0x200] sm:$0xff] }
  0x4c   : > { %1263 = vmatpush.bf16.msra.mxu1 %v2499_v37  ;;  %1815 = vmatpush.bf16.msra.mxu0 %v2893_v44  ;;  %v1028_v37 = vunpack.c.l.b16 %v939_v36  ;;  %v976_v14 = vrot.slane %v975_v58, 4  ;;  %v997_v36 = vshrl.u32 %v2207_v17, 16  ;;  %v1154_v50 = vsel %vm2694_vm5, %v2249_v35, %v1153_v23  ;;  %v3054_v23 = vld [vmem:[%s2647_s10 + $0x2c] sm:$0x1] }
  0x4d   : > { %863 = vmatmul.bf16.gmra.mxu3 %v2156_v7  ;;  %2559 = vmatpush.bf16.msra.mxu2 %v2893_v44  ;;  %v2159_v44 = vld [vmem:[%s2647_s10 + $0x38] sm:$0xf]  ;;  %v2986_v7 = vld [vmem:[%s2647_s10 + $0x1c] sm:$0x1]  ;;  %v1456_v9 = vrot.slane %v1454_v54, 5  ;;  %v1467_v11 = vrot.slane %v1465_v55, 4  ;;  %v1199_v54 = vunpack.c.l.b16 %v1154_v50  ;;  %v1030_v58 = vunpack.c.l.b16 %v967_v47 }
  0x4e   : > { %729 = vmatmul.bf16.gmra.mxu2 %v657_v60  ;;  %v2494_v60 = vld [vmem:[%s3227_s1 + $0x150] sm:$0xff]  ;;  %v1035_v62 = vpack.c.b16 %v1029_v38, %v1028_v37  ;;  %v2160_v13 = vor.u32 %v2475_v63, %v2159_v44  ;;  %v1474_v24 = vshll.u32 %v2986_v7, 16  ;;  %v981_v30 = vsel %vm2685_vm4, %v976_v14, %v980_v16  ;;  %v2059_v55 = vld [vmem:[%s2647_s10 + $0x20] sm:$0xf]  ;;  %v2446_v44 = vld [vmem:[%s2647_s10 + $0x24] sm:$0xf0] }
  0x4f   : > { %v988_v37 = vrot.slane %v986_v21, 5  ;;  %v1031_v59 = vunpack.c.l.b16 %v981_v30  ;;  %v992_v63 = vshll.u32 %v3021_v42, 16  ;;  %v2060_v18 = vor.u32 %v2446_v44, %v2059_v55  ;;  %v2063_v55 = vld [vmem:[%s2647_s10 + $0x30] sm:$0xf] }
  0x50   : > { %1264 = vmatpush.bf16.msra.mxu1 %v2498_v53  ;;  %1816 = vmatpush.bf16.msra.mxu0 %v2912_v1  ;;  %v1451_v53 = vshrl.u32 %v2345_v40, 16  ;;  %v1462_v40 = vrot.slane %v1460_v22, 5  ;;  %v1476_v48 = vrot.slane %v1474_v24, 5 }
  0x51   : > { %2560 = vmatpush.bf16.msra.mxu2 %v2912_v1  ;;  %v2493_v1 = vld [vmem:[%s3227_s1 + $0x148] sm:$0xff] }
  0x52   : > { %v1453_v8 = vrot.slane %v1451_v53, 4  ;;  %v1158_v53 = vsel %vm2694_vm5, %v2250_v41, %v1157_v32 }
  0x54   : > { %1265 = vmatpush.bf16.msra.mxu1 %v2497_v2  ;;  %1817 = vmatpush.bf16.msra.mxu0 %v2928_v15  ;;  %v1468_v2 = vshll.u32 %v2347_v51, 16  ;;  %v1457_v10 = vor.u32 %v1456_v9, %v1453_v8  ;;  %v999_v51 = vrot.slane %v997_v36, 4 }
  0x55   : > { %2561 = vmatpush.bf16.msra.mxu2 %v2928_v15  ;;  %v2521_v15 = vld [vmem:[%s3227_s1 + $0x208] sm:$0xff] }
  0x56   : > { %v1458_v38 = vrot.slane %v1457_v10, 4 }
  0x58   : > { %1266 = vmatpush.bf16.msra.mxu1 %v2496_v12  ;;  %1818 = vmatpush.bf16.msra.mxu0 %v2952_v28  ;;  %v1470_v12 = vrot.slane %v1468_v2, 5  ;;  %v1463_v0 = vsel %vm2685_vm4, %v1458_v38, %v1462_v40  ;;  %v2349_v2 = vld [vmem:[%s2647_s10 + $0x20] sm:$0xf] }
  0x59   : > { %2562 = vmatpush.bf16.msra.mxu2 %v2952_v28  ;;  %v1479_v9 = vshrl.u32 %v2349_v2, 16  ;;  %v1003_v28 = vor.u32 %v1002_v52, %v999_v51  ;;  %v1578_v10 = vunpack.c.l.b16 %v1463_v0  ;;  %v2244_v38 = vld [vmem:[%s2647_s10 + $0x20] sm:$0xe]  ;;  %v1161_v52 = vrot.slane %v2896_v45, 5 }
  0x5a   : > { %v1471_v26 = vor.u32 %v1470_v12, %v1467_v11  ;;  %v1482_v11 = vshll.u32 %v2349_v2, 16  ;;  %v3051_v12 = vld [vmem:[%s2647_s10 + $0x24] sm:$0x1] }
  0x5b   : > { %556 = vmatmul.bf16.gmra.mxu1 %v2056_v61  ;;  %1103 = vmatmul.bf16.gmra.mxu0 %v1035_v62  ;;  %v1200_v61 = vunpack.c.l.b16 %v1158_v53  ;;  %v989_v62 = vor.u32 %v988_v37, %v985_v56  ;;  %v1481_v20 = vrot.slane %v1479_v9, 4  ;;  %v1004_v29 = vrot.slane %v1003_v28, 4  ;;  %v2243_v37 = vld [vmem:[%s2647_s10 + $0x18] sm:$0xe] }
  0x5c   : > { %1267 = vmatpush.bf16.msra.mxu1 %v2495_v31  ;;  %1819 = vmatpush.bf16.msra.mxu0 %v2995_v19  ;;  %v2492_v31 = vld [vmem:[%s3227_s1 + $0x140] sm:$0xff]  ;;  %v1472_v43 = vrot.slane %v1471_v26, 4  ;;  %v1484_v21 = vrot.slane %v1482_v11, 5  ;;  %v994_v26 = vrot.slane %v992_v63, 5  ;;  %v1488_v56 = vshll.u32 %v3051_v12, 16 }
  0x5d   : > { %868 = vmatmul.bf16.gmra.mxu3 %v2160_v13  ;;  %v3045_v8 = vpack.c.b16 %v1200_v61, %v1199_v54  ;;  %v2500_v13 = vld [vmem:[%s2647_s10 + $0x14] sm:$0xf0]  ;;  %2563 = vmatpush.bf16.msra.mxu2 %v2995_v19  ;;  %v990_v25 = vrot.slane %v989_v62, 4  ;;  %v1502_v19 = vshll.u32 %v3054_v23, 16  ;;  %v2251_v50 = vrot.slane %v2243_v37, 9 }
  0x5e   : > { %734 = vmatmul.bf16.gmra.mxu2 %v658_v3  ;;  %v2351_v3 = vld [vmem:[%s2647_s10 + $0x28] sm:$0xf]  ;;  %v1477_v6 = vsel %vm2685_vm4, %v1472_v43, %v1476_v48  ;;  %v2300_v36 = vor.u32 %v2500_v13, %v2299_v4  ;;  %v1485_v30 = vor.u32 %v1484_v21, %v1481_v20  ;;  %v1490_v43 = vrot.slane %v1488_v56, 5  ;;  %v2393_v63 = vld [vmem:[%s2647_s10 + $0x10] sm:$0xe] }
  0x5f   : > { %v1493_v16 = vshrl.u32 %v2351_v3, 16  ;;  %v1496_v17 = vshll.u32 %v2351_v3, 16  ;;  %v1579_v22 = vunpack.c.l.b16 %v1477_v6  ;;  %v995_v40 = vsel %vm2685_vm4, %v990_v25, %v994_v26  ;;  %v2394_v3 = vld [vmem:[%s2647_s10 + $0x18] sm:$0xe]  ;;  %v2353_v4 = vld [vmem:[%s2647_s10 + $0x30] sm:$0xf] }
  0x60   : > { %1268 = vmatpush.bf16.msra.mxu1 %v2494_v60  ;;  %1820 = vmatpush.bf16.msra.mxu0 %v3008_v27  ;;  %v3034_v60 = vld [vmem:[%s2647_s10 + $0x44] sm:$0x1]  ;;  %v1504_v48 = vrot.slane %v1502_v19, 5  ;;  %v2252_v53 = vrot.slane %v2244_v38, 9  ;;  %v1165_v54 = vrot.slane %v2899_v46, 5  ;;  %v1032_v44 = vunpack.c.l.b16 %v995_v40 }
  0x61   : > { %v1006_v14 = vshll.u32 %v3034_v60, 16  ;;  %v1495_v24 = vrot.slane %v1493_v16, 4  ;;  %v1498_v32 = vrot.slane %v1496_v17, 5  ;;  %2564 = vmatpush.bf16.msra.mxu2 %v3008_v27  ;;  %v1486_v27 = vrot.slane %v1485_v30, 4  ;;  %v2355_v6 = vld [vmem:[%s2647_s10 + $0x38] sm:$0xf] }
  0x62   : > { %v1166_v61 = vsel %vm2694_vm5, %v2252_v53, %v1165_v54  ;;  %v1705_v62 = vrot.slane %v2983_v5, 5  ;;  %v1507_v11 = vshrl.u32 %v2353_v4, 16  ;;  %v1510_v13 = vshll.u32 %v2353_v4, 16  ;;  %v2303_v17 = vld [vmem:[%s2647_s10 + $0x20] sm:$0xf] }
  0x63   : > { %v1008_v47 = vrot.slane %v1006_v14, 5  ;;  %v1499_v35 = vor.u32 %v1498_v32, %v1495_v24  ;;  %v1202_v0 = vunpack.c.l.b16 %v1166_v61  ;;  %v1491_v46 = vsel %vm2685_vm4, %v1486_v27, %v1490_v43  ;;  %v2245_v53 = vld [vmem:[%s2647_s10 + $0x28] sm:$0xe]  ;;  %v2246_v54 = vld [vmem:[%s2647_s10 + $0x30] sm:$0xe] }
  0x64   : > { %1269 = vmatpush.bf16.msra.mxu1 %v2493_v1  ;;  %1821 = vmatpush.bf16.msra.mxu0 %v2521_v15  ;;  %v1036_v1 = vpack.c.b16 %v1031_v59, %v1030_v58  ;;  %v1162_v59 = vsel %vm2694_vm5, %v2251_v50, %v1161_v52  ;;  %v1521_v5 = vshrl.u32 %v2355_v6, 16  ;;  %v1709_v16 = vrot.slane %v2986_v7, 5  ;;  %v2307_v50 = vld [vmem:[%s2647_s10 + $0x30] sm:$0xf]  ;;  %v2395_v4 = vld [vmem:[%s2647_s10 + $0x20] sm:$0xe] }
  0x65   : > { %v1009_v41 = vsel %vm2685_vm4, %v1004_v29, %v1008_v47  ;;  %2565 = vmatpush.bf16.msra.mxu2 %v2521_v15  ;;  %v1500_v51 = vrot.slane %v1499_v35, 4  ;;  %v2447_v15 = vld [vmem:[%s2647_s10 + $0x34] sm:$0xf0]  ;;  %v1201_v45 = vunpack.c.l.b16 %v1162_v59  ;;  %v1580_v20 = vunpack.c.l.b16 %v1491_v46  ;;  %v3091_v29 = vld [vmem:[%s2647_s10 + $0x34] sm:$0x1] }
  0x66   : > { %v1033_v58 = vunpack.c.l.b16 %v1009_v41  ;;  %v2064_v28 = vor.u32 %v2447_v15, %v2063_v55  ;;  %v1509_v24 = vrot.slane %v1507_v11, 4  ;;  %v1512_v32 = vrot.slane %v1510_v13, 5  ;;  %v3094_v47 = vld [vmem:[%s2647_s10 + $0x3c] sm:$0x1]  ;;  %v2357_v55 = vld [vmem:[%s2647_s10 + $0x40] sm:$0xf] }
  0x67   : > { %v1505_v2 = vsel %vm2685_vm4, %v1500_v51, %v1504_v48  ;;  %v3085_v9 = vpack.c.b16 %v1202_v0, %v1201_v45  ;;  %v1530_v35 = vshll.u32 %v3094_v47, 16  ;;  %v2254_v59 = vrot.slane %v2246_v54, 9  ;;  %v2359_v15 = vld [vmem:[%s2647_s10 + $0x48] sm:$0xf] }
  0x68   : > { %1270 = vmatpush.bf16.msra.mxu1 %v2492_v31  ;;  %v1586_v31 = vpack.c.b16 %v1579_v22, %v1578_v10  ;;  %1822 = vmatpush.bf16.msra.mxu0 %v2520_v34  ;;  %v1037_v14 = vpack.c.b16 %v1033_v58, %v1032_v44  ;;  %v1581_v21 = vunpack.c.l.b16 %v1505_v2  ;;  %v2401_v10 = vrot.slane %v2393_v63, 9  ;;  %v2396_v11 = vld [vmem:[%s2647_s10 + $0x28] sm:$0xe] }
  0x69   : > { %2566 = vmatpush.bf16.msra.mxu2 %v2520_v34  ;;  %v2402_v22 = vrot.slane %v2394_v3, 9  ;;  %v1513_v19 = vor.u32 %v1512_v32, %v1509_v24  ;;  %v1532_v43 = vrot.slane %v1530_v35, 5  ;;  %v2253_v44 = vrot.slane %v2245_v53, 9 }
  0x6a   : > { %v1587_v30 = vpack.c.b16 %v1581_v21, %v1580_v20  ;;  %v1706_v7 = vsel %vm2694_vm5, %v2401_v10, %v1705_v62  ;;  %v1169_v58 = vrot.slane %v2962_v33, 5  ;;  %v1173_v61 = vrot.slane %v2965_v39, 5  ;;  %v2502_v62 = vld [vmem:[%s2647_s10 + $0x34] sm:$0xf0] }
  0x6b   : > { %561 = vmatmul.bf16.gmra.mxu1 %v2060_v18  ;;  %1108 = vmatmul.bf16.gmra.mxu0 %v1036_v1  ;;  %v2501_v18 = vld [vmem:[%s2647_s10 + $0x24] sm:$0xf0]  ;;  %v1524_v1 = vshll.u32 %v2355_v6, 16  ;;  %v1710_v56 = vsel %vm2694_vm5, %v2402_v22, %v1709_v16  ;;  %v1751_v37 = vunpack.c.l.b16 %v1706_v7  ;;  %v1514_v40 = vrot.slane %v1513_v19, 4  ;;  %v3121_v16 = vld [vmem:[%s2647_s10 + $0x44] sm:$0x1] }
  0x6c   : > { %v2304_v26 = vor.u32 %v2501_v18, %v2303_v17  ;;  %v1752_v38 = vunpack.c.l.b16 %v1710_v56  ;;  %v1535_v63 = vshrl.u32 %v2357_v55, 16  ;;  %v1538_v45 = vshll.u32 %v2357_v55, 16  ;;  %v3124_v17 = vld [vmem:[%s2647_s10 + $0x4c] sm:$0x1] }
  0x6d   : > { %1650 = vmatmul.bf16.vlgmr.msrb.gmra.mxu3 %v1586_v31  ;;  %v1526_v25 = vrot.slane %v1524_v1, 5  ;;  %v1516_v31 = vshll.u32 %v3091_v29, 16  ;;  %v1549_v0 = vshrl.u32 %v2359_v15, 16  ;;  %v1552_v46 = vshll.u32 %v2359_v15, 16 }
  0x6e   : > { %1405 = vmatmul.bf16.vlgmr.msrb.gmra.mxu2 %v2300_v36  ;;  %v1523_v36 = vrot.slane %v1521_v5, 4  ;;  %v1759_v48 = vpack.c.b16 %v1752_v38, %v1751_v37  ;;  %v1170_v6 = vsel %vm2694_vm5, %v2253_v44, %v1169_v58  ;;  %v1174_v33 = vsel %vm2694_vm5, %v2254_v59, %v1173_v61  ;;  %v2247_v38 = vld [vmem:[%s2647_s10 + $0x38] sm:$0xe] }
  0x6f   : > { %v1518_v41 = vrot.slane %v1516_v31, 5  ;;  %v1203_v13 = vunpack.c.l.b16 %v1170_v6  ;;  %v1204_v39 = vunpack.c.l.b16 %v1174_v33  ;;  %v1537_v5 = vrot.slane %v1535_v63, 4  ;;  %v2398_v61 = vld [vmem:[%s2647_s10 + $0x38] sm:$0xe]  ;;  %v2400_v63 = vld [vmem:[%s2647_s10 + $0x48] sm:$0xe] }
  0x70   : > { %v1527_v34 = vor.u32 %v1526_v25, %v1523_v36  ;;  %v1551_v18 = vrot.slane %v1549_v0, 4  ;;  %v1554_v1 = vrot.slane %v1552_v46, 5  ;;  %v2403_v20 = vrot.slane %v2395_v4, 9 }
  0x71   : > { %v1519_v51 = vsel %vm2685_vm4, %v1514_v40, %v1518_v41  ;;  %v3126_v21 = vpack.c.b16 %v1204_v39, %v1203_v13  ;;  %v1713_v22 = vrot.slane %v3051_v12, 5  ;;  %v2404_v24 = vrot.slane %v2396_v11, 9  ;;  %v2248_v40 = vld [vmem:[%s2647_s10 + $0x40] sm:$0xe] }
  0x72   : > { %v1528_v27 = vrot.slane %v1527_v34, 4  ;;  %v1582_v2 = vunpack.c.l.b16 %v1519_v51  ;;  %v1717_v32 = vrot.slane %v3054_v23, 5  ;;  %v1544_v25 = vshll.u32 %v3121_v16, 16  ;;  %v2503_v51 = vld [vmem:[%s2647_s10 + $0x44] sm:$0xf0] }
  0x73   : > { %v1714_v7 = vsel %vm2694_vm5, %v2403_v20, %v1713_v22  ;;  %v2255_v41 = vrot.slane %v2247_v38, 9  ;;  %v1721_v0 = vrot.slane %v3091_v29, 5  ;;  %v2406_v46 = vrot.slane %v2398_v61, 9 }
  0x74   : > { %v1533_v52 = vsel %vm2685_vm4, %v1528_v27, %v1532_v43  ;;  %v1718_v12 = vsel %vm2694_vm5, %v2404_v24, %v1717_v32  ;;  %v1546_v23 = vrot.slane %v1544_v25, 5  ;;  %v1753_v31 = vunpack.c.l.b16 %v1714_v7 }
  0x75   : > { %v1583_v3 = vunpack.c.l.b16 %v1533_v52  ;;  %v1754_v34 = vunpack.c.l.b16 %v1718_v12  ;;  %v1177_v27 = vrot.slane %v3021_v42, 5  ;;  %v2256_v43 = vrot.slane %v2248_v40, 9  ;;  %v2397_v42 = vld [vmem:[%s2647_s10 + $0x30] sm:$0xe] }
  0x76   : > { %v1733_v4 = vrot.slane %v3124_v17, 5  ;;  %v2408_v33 = vrot.slane %v2400_v63, 9 }
  0x77   : > { %v1588_v10 = vpack.c.b16 %v1583_v3, %v1582_v2  ;;  %v1760_v52 = vpack.c.b16 %v1754_v34, %v1753_v31  ;;  %v1178_v53 = vsel %vm2694_vm5, %v2255_v41, %v1177_v27  ;;  %v1725_v2 = vrot.slane %v3094_v47, 5 }
  0x78   : > { %v1205_v44 = vunpack.c.l.b16 %v1178_v53  ;;  %v1729_v3 = vrot.slane %v3121_v16, 5  ;;  %v1734_v29 = vsel %vm2694_vm5, %v2408_v33, %v1733_v4 }
  0x7b   : > { %566 = vmatmul.bf16.gmra.mxu1 %v2064_v28  ;;  %1113 = vmatmul.bf16.gmra.mxu0 %v1037_v14  ;;  %v1540_v28 = vrot.slane %v1538_v45, 5  ;;  %v2308_v14 = vor.u32 %v2502_v62, %v2307_v50  ;;  %v2311_v50 = vld [vmem:[%s2647_s10 + $0x40] sm:$0xf]  ;;  %v2405_v45 = vrot.slane %v2397_v42, 9 }
  0x7c   : > { %v2312_v59 = vor.u32 %v2503_v51, %v2311_v50  ;;  %v2399_v62 = vld [vmem:[%s2647_s10 + $0x40] sm:$0xe]  ;;  %s2443_s10 = sshll.u32 %s3236_s16, 5 }
  0x7d   : > { %1655 = vmatmul.bf16.gmra.mxu3 %v1587_v30  ;;  %v1541_v36 = vor.u32 %v1540_v28, %v1537_v5  ;;  %v1558_v30 = vshll.u32 %v3124_v17, 16  ;;  %v2407_v6 = vrot.slane %v2399_v62, 9  ;;  %v1722_v11 = vsel %vm2694_vm5, %v2405_v45, %v1721_v0  ;;  %s3198_s28 = scalar_lea.vmem %s3228_s2, %s2443_s10 }
  0x7e   : > { %1410 = vmatmul.bf16.gmra.mxu2 %v2304_v26  ;;  %v1555_v26 = vor.u32 %v1554_v1, %v1551_v18  ;;  %v1755_v47 = vunpack.c.l.b16 %v1722_v11  ;;  %v1758_v28 = vunpack.c.l.b16 %v1734_v29 }
  0x7f   : > { %v1560_v19 = vrot.slane %v1558_v30, 5  ;;  %v1730_v13 = vsel %vm2694_vm5, %v2407_v6, %v1729_v3 }
  0x80   : > { %v1556_v56 = vrot.slane %v1555_v26, 4  ;;  %v1757_v5 = vunpack.c.l.b16 %v1730_v13 }
  0x82   : > { %v1561_v37 = vsel %vm2685_vm4, %v1556_v56, %v1560_v19  ;;  %v1762_v18 = vpack.c.b16 %v1758_v28, %v1757_v5 }
  0x83   : > { %v1585_v55 = vunpack.c.l.b16 %v1561_v37 }
  0x8b   : > { %1271 = vmatmul.bf16.vlgmr.msra.gmra.mxu1 %v3045_v8  ;;  %1823 = vmatmul.bf16.vlgmr.msra.gmra.mxu0 %v1759_v48  ;;  %v1542_v8 = vrot.slane %v1541_v36, 4  ;;  %v1181_v48 = vrot.slane %v3034_v60, 5 }
  0x8d   : > { %1660 = vmatmul.bf16.gmra.mxu3 %v1588_v10  ;;  %v1547_v35 = vsel %vm2685_vm4, %v1542_v8, %v1546_v23  ;;  %v1182_v49 = vsel %vm2694_vm5, %v2256_v43, %v1181_v48 }
  0x8e   : > { %1415 = vmatmul.bf16.gmra.mxu2 %v2308_v14  ;;  %v1584_v54 = vunpack.c.l.b16 %v1547_v35  ;;  %v1206_v58 = vunpack.c.l.b16 %v1182_v49 }
  0x90   : > { %v1210_v15 = vpack.c.b16 %v1206_v58, %v1205_v44  ;;  %v1589_v60 = vpack.c.b16 %v1585_v55, %v1584_v54 }
  0x9b   : > { %1276 = vmatmul.bf16.gmra.mxu1 %v3085_v9  ;;  %1828 = vmatmul.bf16.gmra.mxu0 %v1760_v52  ;;  %v1726_v9 = vsel %vm2694_vm5, %v2406_v46, %v1725_v2 }
  0x9c   : > { %v1756_v39 = vunpack.c.l.b16 %v1726_v9 }
  0x9d   : > { %1665 = vmatmul.bf16.gmra.mxu3 %v1589_v60 }
  0x9e   : > { %1420 = vmatmul.bf16.gmra.mxu2 %v2312_v59  ;;  %v1761_v14 = vpack.c.b16 %v1756_v39, %v1755_v47 }
  0xa8   : > { %v461_v16 = vpop.f32.mrf.mxu1  ;;  %v451_v17 = vpop.f32.mrf.mxu0 }
  0xab   : > { %1281 = vmatmul.bf16.gmra.mxu1 %v3126_v21  ;;  %1833 = vmatmul.bf16.gmra.mxu0 %v1761_v14 }
  0xae   : > { %1838 = vmatmul.bf16.vlgmr.msra.gmra.mxu2 %v1762_v18 }
  0xb0   : > { %v463_v20 = vpop.f32.mrf.mxu1  ;;  %v453_v10 = vpop.f32.mrf.mxu0 }
  0xb1   : > { %v720_v1 = vpop.f32.mrf.mxu2  ;;  %v854_v22 = vpop.f32.mrf.mxu3 }
  0xb8   : > { %v466_v32 = vpop.f32.mrf.mxu1  ;;  %v456_v57 = vpop.f32.mrf.mxu0 }
  0xb9   : > { %v722_v24 = vpop.f32.mrf.mxu2  ;;  %v3169_v36 = vpop.f32.mrf.mxu3 }
  0xbb   : > { %1286 = vmatmul.bf16.gmra.mxu1 %v1210_v15 }
  0xc0   : > { %v468_v26 = vpop.f32.mrf.mxu1  ;;  %v458_v30 = vpop.f32.mrf.mxu0 }
  0xc1   : > { %v725_v25 = vpop.f32.mrf.mxu2  ;;  %v859_v7 = vpop.f32.mrf.mxu3 }
  0xc8   : > { %v552_v8 = vpop.f32.mrf.mxu1  ;;  %v1099_v23 = vpop.f32.mrf.mxu0 }
  0xc9   : > { %v727_v12 = vpop.f32.mrf.mxu2  ;;  %v553_v21 = vadd.f32 %v552_v8, %v451_v17  ;;  %v3171_v19 = vpop.f32.mrf.mxu3 }
  0xcb   : > { %v740_v56 = vadd.f32 %v720_v1, %v553_v21 }
  0xcd   : > { %v874_v31 = vadd.f32 %v854_v22, %v740_v56 }
  0xcf   : > { %v1119_v34 = vadd.f32 %v1099_v23, %v874_v31 }
  0xd0   : > { %v554_v37 = vpop.f32.mrf.mxu1  ;;  %v1101_v38 = vpop.f32.mrf.mxu0 }
  0xd1   : > { %v730_v35 = vpop.f32.mrf.mxu2  ;;  %v555_v40 = vadd.f32 %v554_v37, %v453_v10  ;;  %v864_v27 = vpop.f32.mrf.mxu3 }
  0xd3   : > { %v741_v41 = vadd.f32 %v722_v24, %v555_v40 }
  0xd8   : > { %v557_v48 = vpop.f32.mrf.mxu1  ;;  %v1104_v50 = vpop.f32.mrf.mxu0 }
  0xd9   : > { %v732_v43 = vpop.f32.mrf.mxu2  ;;  %v558_v51 = vadd.f32 %v557_v48, %v456_v57  ;;  %v3173_v55 = vpop.f32.mrf.mxu3  ;;  %v875_v57 = vadd.f32 %v3169_v36, %v741_v41 }
  0xdb   : > { %v742_v52 = vadd.f32 %v725_v25, %v558_v51 }
  0xdd   : > { %v876_v53 = vadd.f32 %v859_v7, %v742_v52 }
  0xdf   : > { %v1121_v49 = vadd.f32 %v1104_v50, %v876_v53 }
  0xe0   : > { %v559_v44 = vpop.f32.mrf.mxu1  ;;  %v1106_v58 = vpop.f32.mrf.mxu0 }
  0xe1   : > { %v735_v54 = vpop.f32.mrf.mxu2  ;;  %v560_v59 = vadd.f32 %v559_v44, %v458_v30  ;;  %v3175_v60 = vpop.f32.mrf.mxu3 }
  0xe3   : > { %v743_v42 = vadd.f32 %v727_v12, %v560_v59 }
  0xe8   : > { %v562_v15 = vpop.f32.mrf.mxu1  ;;  %v1109_v62 = vpop.f32.mrf.mxu0 }
  0xe9   : > { %v737_v61 = vpop.f32.mrf.mxu2  ;;  %v563_v63 = vadd.f32 %v562_v15, %v461_v16  ;;  %v3183_v11 = vpop.f32.mrf.mxu3 }
  0xeb   : > { %v744_v45 = vadd.f32 %v730_v35, %v563_v63 }
  0xed   : > { %v878_v0 = vadd.f32 %v864_v27, %v744_v45 }
  0xef   : > { %v3177_v46 = vadd.f32 %v1109_v62, %v878_v0 }
  0xf0   : > { %v564_v3 = vpop.f32.mrf.mxu1  ;;  %v3179_v4 = vpop.f32.mrf.mxu0 }
  0xf1   : > { %v1406_v2 = vpop.f32.mrf.mxu2  ;;  %v565_v6 = vadd.f32 %v564_v3, %v463_v20  ;;  %v1651_v5 = vpop.f32.mrf.mxu3 }
  0xf3   : > { %v3181_v33 = vadd.f32 %v732_v43, %v565_v6  ;;  %v877_v43 = vadd.f32 %v3171_v19, %v743_v42 }
  0xf8   : > { %v567_v13 = vpop.f32.mrf.mxu1  ;;  %v3185_v29 = vpop.f32.mrf.mxu0 }
  0xf9   : > { %v1408_v9 = vpop.f32.mrf.mxu2  ;;  %v568_v47 = vadd.f32 %v567_v13, %v466_v32  ;;  %v1653_v1 = vpop.f32.mrf.mxu3  ;;  %v1120_v32 = vadd.f32 %v1101_v38, %v875_v57 }
  0xfb   : > { %v3187_v39 = vadd.f32 %v735_v54, %v568_v47  ;;  %v1122_v54 = vadd.f32 %v1106_v58, %v877_v43 }
 0x100   : > { %v569_v14 = vpop.f32.mrf.mxu1  ;;  %v3189_v16 = vpop.f32.mrf.mxu0 }
 0x101   : > { %v1411_v28 = vpop.f32.mrf.mxu2  ;;  %v570_v17 = vadd.f32 %v569_v14, %v468_v26  ;;  %v1656_v23 = vpop.f32.mrf.mxu3 }
 0x103   : > { %v3191_v18 = vadd.f32 %v737_v61, %v570_v17 }
 0x108   : > { %v1272_v20 = vpop.f32.mrf.mxu1  ;;  %v1824_v10 = vpop.f32.mrf.mxu0 }
 0x109   : > { %v1292_v22 = vadd.f32 %v1272_v20, %v1119_v34  ;;  %v1413_v24 = vpop.f32.mrf.mxu2  ;;  %v1658_v51 = vpop.f32.mrf.mxu3 }
 0x10b   : > { %v1426_v25 = vadd.f32 %v1406_v2, %v1292_v22 }
 0x10d   : > { %v1671_v30 = vadd.f32 %v1651_v5, %v1426_v25  ;;  %v879_v5 = vadd.f32 %v3173_v55, %v3181_v33 }
 0x10f   : > { %v1844_v56 = vadd.f32 %v1824_v10, %v1671_v30 }
 0x110   : > { %v1274_v7 = vpop.f32.mrf.mxu1  ;;  %v1826_v12 = vpop.f32.mrf.mxu0 }
 0x111   : > { %v1293_v8 = vadd.f32 %v1274_v7, %v1120_v32  ;;  %v1416_v26 = vpop.f32.mrf.mxu2  ;;  %v1882_v37 = vmul.f32 %v1844_v56, %v1844_v56 }
 0x113   : > { %v1427_v21 = vadd.f32 %v1408_v9, %v1293_v8 }
 0x115   : > { %v1672_v31 = vadd.f32 %v1653_v1, %v1427_v21  ;;  %v1124_v1 = vadd.f32 %v3179_v4, %v879_v5 }
 0x117   : > { %v1845_v35 = vadd.f32 %v1826_v12, %v1672_v31 }
 0x118   : > { %v1277_v36 = vpop.f32.mrf.mxu1  ;;  %v1829_v34 = vpop.f32.mrf.mxu0 }
 0x119   : > { %v2531_v38 = vpack.c.bf16 %v1845_v35, %v1844_v56  ;;  %v1868_v40 = vadd.f32 %v1845_v35, %v1844_v56  ;;  %v1883_v41 = vmul.f32 %v1845_v35, %v1845_v35  ;;  %v1294_v27 = vadd.f32 %v1277_v36, %v1121_v49  ;;  %v1418_v53 = vpop.f32.mrf.mxu2  ;;  %v1661_v49 = vpop.f32.mrf.mxu3 }
 0x11a   : > { %v881_v35 = vadd.f32 %v3183_v11, %v3191_v18 }
 0x11b   : > { %2532 = vst [vmem:[%s3198_s28] sm:$0xff] %v2531_v38   ;;  %v1890_v48 = vadd.f32 %v1883_v41, %v1882_v37  ;;  %v1428_v50 = vadd.f32 %v1411_v28, %v1294_v27 }
 0x11d   : > { %v1673_v52 = vadd.f32 %v1656_v23, %v1428_v50 }
 0x11f   : > { %v1846_v44 = vadd.f32 %v1829_v34, %v1673_v52  ;;  %v1126_v34 = vadd.f32 %v3189_v16, %v881_v35 }
 0x120   : > { %v1279_v59 = vpop.f32.mrf.mxu1  ;;  %v1831_v61 = vpop.f32.mrf.mxu0 }
 0x121   : > { %v1869_v15 = vadd.f32 %v1868_v40, %v1846_v44  ;;  %v1884_v62 = vmul.f32 %v1846_v44, %v1846_v44  ;;  %v1295_v63 = vadd.f32 %v1279_v59, %v1122_v54  ;;  %v1421_v19 = vpop.f32.mrf.mxu2  ;;  %v1663_v10 = vpop.f32.mrf.mxu3 }
 0x123   : > { %v1891_v45 = vadd.f32 %v1890_v48, %v1884_v62  ;;  %v1429_v0 = vadd.f32 %v1413_v24, %v1295_v63 }
 0x125   : > { %v1674_v2 = vadd.f32 %v1658_v51, %v1429_v0 }
 0x127   : > { %v1847_v3 = vadd.f32 %v1831_v61, %v1674_v2 }
 0x128   : > { %v1282_v42 = vpop.f32.mrf.mxu1  ;;  %v1834_v58 = vpop.f32.mrf.mxu0 }
 0x129   : > { %v2536_v6 = vpack.c.bf16 %v1847_v3, %v1846_v44  ;;  %v1870_v9 = vadd.f32 %v1869_v15, %v1847_v3  ;;  %v1885_v13 = vmul.f32 %v1847_v3, %v1847_v3  ;;  %v1296_v47 = vadd.f32 %v1282_v42, %v3177_v46  ;;  %v1423_v32 = vpop.f32.mrf.mxu2  ;;  %v1666_v31 = vpop.f32.mrf.mxu3 }
 0x12a   : > { %v880_v46 = vadd.f32 %v3175_v60, %v3187_v39 }
 0x12b   : > { %2548 = vst [vmem:[%s3198_s28 + $0x8] sm:$0xff] %v2536_v6   ;;  %v1892_v28 = vadd.f32 %v1891_v45, %v1885_v13  ;;  %v1430_v14 = vadd.f32 %v1416_v26, %v1296_v47 }
 0x12c   : > { %v1125_v12 = vadd.f32 %v3185_v29, %v880_v46 }
 0x12d   : > { %v1675_v17 = vadd.f32 %v1661_v49, %v1430_v14 }
 0x12f   : > { %v1848_v20 = vadd.f32 %v1834_v58, %v1675_v17 }
 0x130   : > { %v1284_v22 = vpop.f32.mrf.mxu1  ;;  %v1836_v55 = vpop.f32.mrf.mxu0 }
 0x131   : > { %v1871_v24 = vadd.f32 %v1870_v9, %v1848_v20  ;;  %v1886_v57 = vmul.f32 %v1848_v20, %v1848_v20  ;;  %v1297_v25 = vadd.f32 %v1284_v22, %v1124_v1  ;;  %v1839_v60 = vpop.f32.mrf.mxu2  ;;  %v1668_v50 = vpop.f32.mrf.mxu3 }
 0x133   : > { %v1893_v30 = vadd.f32 %v1892_v28, %v1886_v57  ;;  %v1431_v7 = vadd.f32 %v1418_v53, %v1297_v25 }
 0x135   : > { %v1676_v33 = vadd.f32 %v1663_v10, %v1431_v7 }
 0x137   : > { %v1849_v8 = vadd.f32 %v1836_v55, %v1676_v33 }
 0x138   : > { %v1287_v23 = vpop.f32.mrf.mxu1 }
 0x139   : > { %v2541_v4 = vpack.c.bf16 %v1849_v8, %v1848_v20  ;;  %v1872_v21 = vadd.f32 %v1871_v24, %v1849_v8  ;;  %v1887_v56 = vmul.f32 %v1849_v8, %v1849_v8  ;;  %v1298_v26 = vadd.f32 %v1287_v23, %v1125_v12  ;;  %v1841_v52 = vpop.f32.mrf.mxu2 }
 0x13b   : > { %2549 = vst [vmem:[%s3198_s28 + $0x10] sm:$0xff] %v2541_v4   ;;  %v1894_v37 = vadd.f32 %v1893_v30, %v1887_v56  ;;  %v1432_v36 = vadd.f32 %v1421_v19, %v1298_v26 }
 0x13d   : > { %v1677_v39 = vadd.f32 %v1666_v31, %v1432_v36 }
 0x13f   : > { %v1850_v38 = vadd.f32 %v1839_v60, %v1677_v39 }
 0x140   : > { %v1289_v29 = vpop.f32.mrf.mxu1 }
 0x141   : > { %v1873_v40 = vadd.f32 %v1872_v21, %v1850_v38  ;;  %v1888_v41 = vmul.f32 %v1850_v38, %v1850_v38  ;;  %v1299_v27 = vadd.f32 %v1289_v29, %v1126_v34 }
 0x143   : > { %v1895_v43 = vadd.f32 %v1894_v37, %v1888_v41  ;;  %v1433_v48 = vadd.f32 %v1423_v32, %v1299_v27 }
 0x145   : > { %v1678_v51 = vadd.f32 %v1668_v50, %v1433_v48 }
 0x147   : > { %v1851_v11 = vadd.f32 %v1841_v52, %v1678_v51 }
 0x149   : > { %v2546_v18 = vpack.c.bf16 %v1851_v11, %v1850_v38  ;;  %v1874_v53 = vadd.f32 %v1873_v40, %v1851_v11  ;;  %v1889_v54 = vmul.f32 %v1851_v11, %v1851_v11 }
 0x14b   : > { %2550 = vst [vmem:[%s3198_s28 + $0x18] sm:$0xff] %v2546_v18   ;;  %v1875_v44 = vrot.slane %v1874_v53, 4  ;;  %v1896_v59 = vadd.f32 %v1895_v43, %v1889_v54 }
 0x14d   : > { %v1876_v16 = vadd.f32 %v1875_v44, %v1874_v53  ;;  %v1897_v61 = vrot.slane %v1896_v59, 4 }
 0x14f   : > { %v1877_v15 = vrot.slane %v1876_v16, 2  ;;  %v1898_v62 = vadd.f32 %v1897_v61, %v1896_v59 }
 0x151   : > { %v1878_v63 = vadd.f32 %v1877_v15, %v1876_v16  ;;  %v1899_v45 = vrot.slane %v1898_v62, 2 }
 0x153   : > { %v1879_v0 = vrot.slane %v1878_v63, 1  ;;  %v1900_v2 = vadd.f32 %v1899_v45, %v1898_v62 }
 0x155   : > { %v1880_v49 = vadd.f32 %v1879_v0, %v1878_v63  ;;  %v1901_v3 = vrot.slane %v1900_v2, 1 }
 0x157   : > { %1881 = vst [vmem:[%s211_s5] sm:$0x1] %v1880_v49  ;;  %v1902_v19 = vadd.f32 %v1901_v3, %v1900_v2 }
 0x159   : > { %1903 = vst [vmem:[%s214_s8] sm:$0x1] %v1902_v19 }
 0x15a PF: > { %s15_s15 = sadd.s32 1, %s2582_s15  }
 0x15b   : > { %p12_p4 = scmp.ge.s32.totalorder %s15_s15, 4  }
 0x15d   :  { %14 = sbr.rel (!%p12_p4) target bundleno = 1 (0x1), region = 84 }

</bundles_post_ra>
